<compile_context>
chip_gen: v7x
topology: tpu7x:2x2x1
jax: 0.10.0
libtpu: 0.0.40
codegen_flags: <defaults>
</compile_context>

<pallas_src>
import functools

import jax
import jax.numpy as jnp
from jax import lax
from jax.experimental import pallas as pl
from jax.experimental.pallas import tpu as pltpu

EPS = 1e-5
LANE = 128


def _round_up(n, m):
    return ((n + m - 1) // m) * m


# ----------------------------- device queries --------------------------------


def _physical_vmem_bytes():
    try:
        info = pltpu.get_tpu_info()
        for name in ("vmem_capacity_bytes", "vmem_bytes", "vmem_size_bytes"):
            v = getattr(info, name, None)
            if isinstance(v, int) and v > 0:
                return v
    except Exception:
        pass
    return 64 * 2**20          # conservative fallback (v7x per-TensorCore)


def _vmem_budget():
    # Generation-aware scoped-VMEM request: ~112 MiB on 128 MiB parts
    # (v5e/v6e), ~56 MiB on v7x's 64 MiB -- always leaves 1/8 headroom.
    return int(_physical_vmem_bytes() * 7 // 8)


def _cparams(budget):
    return pltpu.CompilerParams(dimension_semantics=("parallel",),
                                vmem_limit_bytes=int(budget))


# --------------- pl.Buffered(1) (single-buffered constants) probe -------------

_BUFFERED_ONE = None
_BUFFERED_PROBED = False


def _buffered_one():
    """Return a pl.Buffered(1) pipeline mode if this JAX/Mosaic supports it
    (verified with a tiny copy kernel), else None."""
    global _BUFFERED_ONE, _BUFFERED_PROBED
    if _BUFFERED_PROBED:
        return _BUFFERED_ONE
    _BUFFERED_PROBED = True
    for ctor in (lambda: pl.Buffered(buffer_count=1), lambda: pl.Buffered(1)):
        try:
            mode = ctor()

            def _copy(x_ref, o_ref):
                o_ref[...] = x_ref[...]

            fn = pl.pallas_call(
                _copy,
                out_shape=jax.ShapeDtypeStruct((8, LANE), jnp.float32),
                grid=(1,),
                in_specs=[pl.BlockSpec((8, LANE), lambda i: (0, 0),
                                       pipeline_mode=mode)],
                out_specs=pl.BlockSpec((8, LANE), lambda i: (0, 0)))
            xp = jnp.arange(8 * LANE, dtype=jnp.float32).reshape(8, LANE)
            if bool(jnp.allclose(jax.block_until_ready(fn(xp)), xp)):
                _BUFFERED_ONE = mode
                return mode
        except Exception:
            continue
    _BUFFERED_ONE = None
    return None


def _const_spec(shape):
    """BlockSpec for grid-invariant inputs (weights / BN scale-shift / masks):
    single-buffered when supported so constants aren't double-buffered."""
    nd = len(shape)
    imap = lambda i, _nd=nd: (0,) * _nd
    mode = _buffered_one()
    if mode is not None:
        return pl.BlockSpec(shape, imap, pipeline_mode=mode)
    return pl.BlockSpec(shape, imap)


# ----------------------------- tiling helpers ---------------------------------


def _choose_row_tile(m, cap):
    """Row tile (multiple of 8) <= cap.  Prefers an exact divisor of m (no
    partial edge tile); otherwise returns cap and the kernels mask pad rows."""
    cap = max(8, (min(cap, m) // 8) * 8)
    if m <= cap:
        return _round_up(m, 8)
    t = cap
    while t >= max(8, cap - 256):
        if m % t == 0:
            return t
        t -= 8
    return cap


# --------------------------- stage kernels ------------------------------------


def _conv1_kernel(m_valid, tm, x_ref, w1_ref, h1_ref, st_ref):
    # 1x1 conv = one MXU matmul (bf16 operands, f32 accumulation), plus per-tile
    # BN partial statistics (sum, sum-of-squares) computed from the f32
    # accumulator.  The activation itself is written back to HBM as bf16.
    h = jnp.dot(x_ref[...].astype(jnp.bfloat16), w1_ref[...],
                preferred_element_type=jnp.float32)
    if m_valid is not None:                    # partial last tile: zero pad rows
        row = (pl.program_id(0) * tm
               + lax.broadcasted_iota(jnp.int32, (tm, 1), 0))
        h = jnp.where(row < m_valid, h, 0.0)
    h1_ref[...] = h.astype(jnp.bfloat16)
    ssum = jnp.sum(h, axis=0, keepdims=True)
    ssq = jnp.sum(h * h, axis=0, keepdims=True)
    st_ref[...] = jnp.concatenate([ssum, ssq], axis=0).reshape(1, 2, -1)


def _conv2_kernel(W, HW, h1_ref, s1_ref, t1_ref, w2_ref, m_ref, h2_ref, st_ref):
    # One image per grid step: bn1 (precomputed scale/shift) + ReLU in f32, then
    # the 3x3 conv as 9 K=Pp MXU matmuls on roll-shifted (XLU), boundary-masked
    # activations -- no im2col scratch, no extra VMEM stores (vst is the scarce
    # slot on v5e), and no W%8 alignment constraints.
    f32 = jnp.float32
    a = jnp.maximum(h1_ref[...].astype(f32) * s1_ref[...] + t1_ref[...], 0.0)

    # boundary masks (grid-invariant, single-buffered input):
    #   col 0: x > 0, col 1: x < W-1, col 2: y > 0, col 3: y < H-1
    mx = {-1: m_ref[:, 0:1], 1: m_ref[:, 1:2]}
    my = {-1: m_ref[:, 2:3], 1: m_ref[:, 3:4]}

    acc = jnp.zeros(a.shape, f32)
    for ky in (-1, 0, 1):
        for kx in (-1, 0, 1):
            d = ky * W + kx                     # flat offset of tap (ky, kx)
            b = a if d == 0 else pltpu.roll(a, (-d) % HW, axis=0)
            m = None
            if kx != 0:
                m = mx[kx]
            if ky != 0:
                m = my[ky] if m is None else m * my[ky]
            if m is not None:
                b = b * m
            tap = (ky + 1) * 3 + (kx + 1)
            acc = acc + jnp.dot(b.astype(jnp.bfloat16), w2_ref[tap],
                                preferred_element_type=f32)

    h2_ref[...] = acc.astype(jnp.bfloat16)
    ssum = jnp.sum(acc, axis=0, keepdims=True)
    ssq = jnp.sum(acc * acc, axis=0, keepdims=True)
    st_ref[...] = jnp.concatenate([ssum, ssq], axis=0).reshape(1, 2, -1)


def _conv3_kernel(m_valid, tm, h2_ref, s2_ref, t2_ref, w3_ref, h3_ref, st_ref):
    # bn2 + ReLU in f32, 1x1 expansion conv on the MXU, one-pass BN stats.
    # h2 arrives bf16; h3 is kept f32 (bn3 + residual precision).
    a = jnp.maximum(
        h2_ref[...].astype(jnp.float32) * s2_ref[...] + t2_ref[...], 0.0)
    if m_valid is not None:                    # partial last tile: zero pad rows
        row = (pl.program_id(0) * tm
               + lax.broadcasted_iota(jnp.int32, (tm, 1), 0))
        a = jnp.where(row < m_valid, a, 0.0)
    h = jnp.dot(a.astype(jnp.bfloat16), w3_ref[...],
                preferred_element_type=jnp.float32)
    h3_ref[...] = h
    ssum = jnp.sum(h, axis=0, keepdims=True)
    ssq = jnp.sum(h * h, axis=0, keepdims=True)
    st_ref[...] = jnp.concatenate([ssum, ssq], axis=0).reshape(1, 2, -1)


def _out_kernel(h3_ref, x_ref, s3_ref, t3_ref, o_ref):
    # bn3 + residual add (x re-read here, not kept live) + ReLU, all f32.
    # h3 is aliased with the output buffer (input_output_aliases={0: 0}).
    o_ref[...] = jnp.maximum(
        h3_ref[...] * s3_ref[...] + t3_ref[...] + x_ref[...], 0.0)


# ------------------------------ wrapper --------------------------------------


def bottleneck_forward(x_nchw, params, *, row_tile_cap=None):
    """x_nchw: (N, Cin, H, W) float32, PyTorch layout. Returns NCHW."""
    w1, w2, w3, g1, b1, g2, b2, g3, b3 = params
    N, Cin, H, W = x_nchw.shape
    P = w1.shape[1]
    assert Cin == 4 * P, "downsample=None requires inplanes == planes * expansion"
    HW = H * W
    assert HW % 8 == 0, "H*W must be a multiple of 8"

    f32, bf16 = jnp.float32, jnp.bfloat16
    Cp = _round_up(Cin, LANE)     # lane-dense padded inplanes (= 4*planes)
    Pp = _round_up(P, LANE)       # lane-dense padded planes
    M = N * HW

    budget = _vmem_budget()
    if row_tile_cap is None:
        # keep the double-buffered f32 (TM, Cp) blocks of stages 3/4 well under
        # the per-generation VMEM budget
        row_tile_cap = max(64, min(4096, budget // (48 * Cp)))
    TM = _choose_row_tile(M, row_tile_cap)
    G = pl.cdiv(M, TM)
    m_valid = M if G * TM != M else None   # mask pad rows of a partial last tile

    # ---- host-side layout prep (NCHW -> NHWC flat, channel padding) ----
    # TODO(synk): in a full model keep activations NHWC end-to-end so these
    #             transposes (an extra HBM round trip) disappear.
    x = jnp.transpose(x_nchw, (0, 2, 3, 1)).astype(f32)
    x = jnp.pad(x, ((0, 0), (0, 0), (0, 0), (0, Cp - Cin))).reshape(M, Cp)

    w1p = jnp.pad(w1, ((0, Cp - Cin), (0, Pp - P))).astype(bf16)           # (Cp, Pp)
    w2p = jnp.pad(w2, ((0, 0), (0, 0), (0, Pp - P), (0, Pp - P))).astype(bf16)
    w2p = w2p.reshape(9, Pp, Pp)                                           # (tap, ci, co)
    w3p = jnp.pad(w3, ((0, Pp - P), (0, Cp - Cin))).astype(bf16)           # (Pp, Cp)

    def padvec(v, n):
        v = v.reshape(-1).astype(f32)
        return jnp.pad(v, (0, n - v.shape[0]))

    g1p, b1p = padvec(g1, Pp), padvec(b1, Pp)
    g2p, b2p = padvec(g2, Pp), padvec(b2, Pp)
    g3p, b3p = padvec(g3, Cp), padvec(b3, Cp)

    # conv2 spatial-boundary masks, packed into one tiny grid-invariant input:
    # columns [x>0, x<W-1, y>0, y<H-1] over flattened (y, x) pixels.
    idx = jnp.arange(HW, dtype=jnp.int32)
    col = idx % W
    rowi = idx // W
    masks = jnp.stack([col != 0, col != W - 1, rowi != 0, rowi != H - 1],
                      axis=1).astype(f32)                                  # (HW, 4)

    def bn_affine(stats, gamma, beta):
        # Reduce per-tile partial sums (tiny) and fold BN into scale/shift.
        # TODO(synk): for very large M switch to mean-centered per-tile partials
        #             (Welford merge) to avoid E[x^2]-E[x]^2 cancellation.
        s1 = jnp.sum(stats[:, 0, :], axis=0)
        s2 = jnp.sum(stats[:, 1, :], axis=0)
        mean = s1 / M
        var = jnp.maximum(s2 / M - mean * mean, 0.0)
        scale = gamma * lax.rsqrt(var + EPS)
        shift = beta - mean * scale
        return scale.reshape(1, -1), shift.reshape(1, -1)

    cp = _cparams(budget)

    # ---------------- stage 1: conv1 (1x1) + bn1 statistics ----------------
    h1, st1 = pl.pallas_call(
        functools.partial(_conv1_kernel, m_valid, TM),
        out_shape=(jax.ShapeDtypeStruct((M, Pp), bf16),
                   jax.ShapeDtypeStruct((G, 2, Pp), f32)),
        grid=(G,),
        in_specs=[pl.BlockSpec((TM, Cp), lambda i: (i, 0)),
                  _const_spec((Cp, Pp))],
        out_specs=(pl.BlockSpec((TM, Pp), lambda i: (i, 0)),
                   pl.BlockSpec((1, 2, Pp), lambda i: (i, 0, 0))),
        compiler_params=cp,
    )(x, w1p)
    s1c, t1c = bn_affine(st1, g1p, b1p)

    # ---- stage 2: bn1 + relu -> conv2 (3x3, roll-based) + bn2 statistics ----
    # TODO(synk): for very large H*W*planes (v7x 64 MiB VMEM, small N) tile
    #             conv2 over row bands with an explicit 1-row halo exchange
    #             instead of one whole image per grid step.
    h2, st2 = pl.pallas_call(
        functools.partial(_conv2_kernel, W, HW),
        out_shape=(jax.ShapeDtypeStruct((M, Pp), bf16),
                   jax.ShapeDtypeStruct((N, 2, Pp), f32)),
        grid=(N,),
        in_specs=[pl.BlockSpec((HW, Pp), lambda n: (n, 0)),
                  _const_spec((1, Pp)),
                  _const_spec((1, Pp)),
                  _const_spec((9, Pp, Pp)),
                  _const_spec((HW, 4))],
        out_specs=(pl.BlockSpec((HW, Pp), lambda n: (n, 0)),
                   pl.BlockSpec((1, 2, Pp), lambda n: (n, 0, 0))),
        compiler_params=cp,
    )(h1, s1c, t1c, w2p, masks)
    s2c, t2c = bn_affine(st2, g2p, b2p)

    # -------- stage 3: bn2 + relu -> conv3 (1x1, x4) + bn3 statistics --------
    h3, st3 = pl.pallas_call(
        functools.partial(_conv3_kernel, m_valid, TM),
        out_shape=(jax.ShapeDtypeStruct((M, Cp), f32),
                   jax.ShapeDtypeStruct((G, 2, Cp), f32)),
        grid=(G,),
        in_specs=[pl.BlockSpec((TM, Pp), lambda i: (i, 0)),
                  _const_spec((1, Pp)),
                  _const_spec((1, Pp)),
                  _const_spec((Pp, Cp))],
        out_specs=(pl.BlockSpec((TM, Cp), lambda i: (i, 0)),
                   pl.BlockSpec((1, 2, Cp), lambda i: (i, 0, 0))),
        compiler_params=cp,
    )(h2, s2c, t2c, w3p)
    s3c, t3c = bn_affine(st3, g3p, b3p)

    # ---------------- stage 4: bn3 + residual + relu ----------------
    out = pl.pallas_call(
        _out_kernel,
        out_shape=jax.ShapeDtypeStruct((M, Cp), f32),
        grid=(G,),
        in_specs=[pl.BlockSpec((TM, Cp), lambda i: (i, 0)),
                  pl.BlockSpec((TM, Cp), lambda i: (i, 0)),
                  _const_spec((1, Cp)),
                  _const_spec((1, Cp))],
        out_specs=pl.BlockSpec((TM, Cp), lambda i: (i, 0)),
        input_output_aliases={0: 0},            # reuse h3's buffer for the output
        compiler_params=cp,
    )(h3, x, s3c, t3c)

    out = out.reshape(N, H, W, Cp)[..., :Cin]
    return jnp.transpose(out, (0, 3, 1, 2))                       # -> NCHW


# ------------------------------ test harness ----------------------------------


def init_params(key, inplanes, planes):
    ks = jax.random.split(key, 9)
    w1 = jax.random.normal(ks[0], (inplanes, planes), jnp.float32) * 0.1       # conv1 (Cin, P)
    w2 = jax.random.normal(ks[1], (3, 3, planes, planes), jnp.float32) * 0.1   # conv2 HWIO
    w3 = jax.random.normal(ks[2], (planes, planes * 4), jnp.float32) * 0.1     # conv3 (P, 4P)
    g1 = 1.0 + 0.1 * jax.random.normal(ks[3], (1, planes), jnp.float32)
    b1 = 0.1 * jax.random.normal(ks[4], (1, planes), jnp.float32)
    g2 = 1.0 + 0.1 * jax.random.normal(ks[5], (1, planes), jnp.float32)
    b2 = 0.1 * jax.random.normal(ks[6], (1, planes), jnp.float32)
    g3 = 1.0 + 0.1 * jax.random.normal(ks[7], (1, planes * 4), jnp.float32)
    b3 = 0.1 * jax.random.normal(ks[8], (1, planes * 4), jnp.float32)
    return (w1, w2, w3, g1, b1, g2, b2, g3, b3)


def reference_forward(x_nchw, params):
    """Pure-JAX reference mirroring the kernel's precision policy: bf16 conv
    operands with f32 accumulation, BN statistics from the f32 accumulator,
    inter-stage activations h1/h2 stored as bf16, h3/residual in f32."""
    w1, w2, w3, g1, b1, g2, b2, g3, b3 = params
    f32, bf16 = jnp.float32, jnp.bfloat16
    x = jnp.transpose(x_nchw, (0, 2, 3, 1)).astype(f32)
    dn = ('NHWC', 'HWIO', 'NHWC')

    def conv(v, w, pad):
        return lax.conv_general_dilated(
            v.astype(bf16), w.astype(bf16), (1, 1), pad,
            dimension_numbers=dn, preferred_element_type=f32)

    def bn(v_f32, store_bf16, g, b):
        mean = jnp.mean(v_f32, axis=(0, 1, 2), keepdims=True)
        var = jnp.maximum(
            jnp.mean(v_f32 * v_f32, axis=(0, 1, 2), keepdims=True) - mean * mean, 0.0)
        v = v_f32.astype(bf16).astype(f32) if store_bf16 else v_f32
        return ((v - mean) * lax.rsqrt(var + EPS) * g.reshape(1, 1, 1, -1)
                + b.reshape(1, 1, 1, -1))

    h = conv(x, w1.reshape(1, 1, *w1.shape), 'VALID')
    h = jnp.maximum(bn(h, True, g1, b1), 0.0)
    h = conv(h, w2, 'SAME')
    h = jnp.maximum(bn(h, True, g2, b2), 0.0)
    h = conv(h, w3.reshape(1, 1, *w3.shape), 'VALID')
    h = bn(h, False, g3, b3)
    out = jnp.maximum(h + x, 0.0)
    return jnp.transpose(out, (0, 3, 1, 2))


if __name__ == "__main__":
    key = jax.random.PRNGKey(0)
    k_x, k_p = jax.random.split(key)

    inplanes, planes = 16, 4          # inplanes == planes * expansion (4)
    N, H, W = 2, 16, 16
    x = jax.random.normal(k_x, (N, inplanes, H, W), jnp.float32)
    params = init_params(k_p, inplanes, planes)

    # small row_tile_cap so the toy problem exercises multi-tile grids; the
    # default (None) sizes the tile from the device's VMEM budget.
    fwd = jax.jit(lambda xx, pp: bottleneck_forward(xx, pp, row_tile_cap=128))
    out = jax.block_until_ready(fwd(x, params))

    ref = reference_forward(x, params)
    assert out.shape == (N, inplanes, H, W)
    err = float(jnp.max(jnp.abs(out - ref)))
    assert jnp.allclose(out, ref, atol=2e-3, rtol=2e-3), f"max abs err {err}"

    print("KERNEL_OK")
</pallas_src>

<mosaic_0001>
module attributes {stable_mosaic.version = 11 : i64} {
  func.func @_conv1_kernel(%arg0: i32, %arg1: memref<128x128xf32, #tpu.memory_space<vmem>>, %arg2: memref<128x128xbf16, #tpu.memory_space<vmem>>, %arg3: memref<128x128xbf16, #tpu.memory_space<vmem>>, %arg4: memref<1x2x128xf32, #tpu.memory_space<vmem>>) attributes {dimension_semantics = [#tpu.dimension_semantics<parallel>], iteration_bounds = array<i64: 4>, scalar_prefetch = 0 : i64, scratch_operands = 0 : i64, tpu.core_type = #tpu.core_type<tc>, window_params = [{transform_indices = @transform_0, window_bounds = array<i64: 128, 128>}, {pipeline_mode = #tpu.pipeline_mode<synchronous>, transform_indices = @transform_1, window_bounds = array<i64: 128, 128>}, {transform_indices = @transform_2, window_bounds = array<i64: 128, 128>}, {transform_indices = @transform_3, window_bounds = array<i64: 1, 2, 128>}]} {
    %c0 = arith.constant 0 : index
    %c0_0 = arith.constant 0 : index
    %0 = vector.load %arg1[%c0, %c0_0] : memref<128x128xf32, #tpu.memory_space<vmem>>, vector<128x128xf32>
    %1 = arith.truncf %0 : vector<128x128xf32> to vector<128x128xbf16>
    %c0_1 = arith.constant 0 : index
    %c0_2 = arith.constant 0 : index
    %2 = vector.load %arg2[%c0_1, %c0_2] : memref<128x128xbf16, #tpu.memory_space<vmem>>, vector<128x128xbf16>
    %cst = arith.constant dense<0.000000e+00> : vector<128x128xf32>
    %3 = tpu.matmul %1, %2, %cst {dimension_numbers = #tpu.dot_dimension_numbers<[1], [0], [0], [1], [0, 0, 1, 1], [], []>} : vector<128x128xbf16>, vector<128x128xbf16>, vector<128x128xf32> -> vector<128x128xf32>
    %4 = arith.truncf %3 : vector<128x128xf32> to vector<128x128xbf16>
    %c0_3 = arith.constant 0 : index
    %c0_4 = arith.constant 0 : index
    %5 = vector.load %arg3[%c0_3, %c0_4] : memref<128x128xbf16, #tpu.memory_space<vmem>>, vector<128x128xbf16>
    tpu.vector_store %arg3[%c0_3, %c0_4], %4 {strides = array<i32>} : memref<128x128xbf16, #tpu.memory_space<vmem>>, vector<128x128xbf16>,
    %cst_5 = arith.constant dense<0.000000e+00> : vector<128xf32>
    %6 = vector.multi_reduction <add>, %3, %cst_5 [0] : vector<128x128xf32> to vector<128xf32>
    %7 = vector.shape_cast %6 : vector<128xf32> to vector<1x128xf32>
    %8 = arith.mulf %3, %3 : vector<128x128xf32>
    %cst_6 = arith.constant dense<0.000000e+00> : vector<128xf32>
    %9 = vector.multi_reduction <add>, %8, %cst_6 [0] : vector<128x128xf32> to vector<128xf32>
    %10 = vector.shape_cast %9 : vector<128xf32> to vector<1x128xf32>
    %11 = tpu.concatenate %7, %10 in 0 : vector<1x128xf32>, vector<1x128xf32> -> vector<2x128xf32>
    %12 = vector.shape_cast %11 : vector<2x128xf32> to vector<1x2x128xf32>
    %c0_7 = arith.constant 0 : index
    %c0_8 = arith.constant 0 : index
    %c0_9 = arith.constant 0 : index
    %13 = vector.load %arg4[%c0_7, %c0_8, %c0_9] : memref<1x2x128xf32, #tpu.memory_space<vmem>>, vector<1x2x128xf32>
    tpu.vector_store %arg4[%c0_7, %c0_8, %c0_9], %12 {strides = array<i32>} : memref<1x2x128xf32, #tpu.memory_space<vmem>>, vector<1x2x128xf32>,
    return
  }
  func.func @transform_0(%arg0: i32) -> (i32, i32) {
    %c0_i32 = arith.constant 0 : i32
    %c0_i32_0 = arith.constant 0 : i32
    return %arg0, %c0_i32 : i32, i32
  }
  func.func @transform_1(%arg0: i32) -> (i32, i32) {
    %c0_i32 = arith.constant 0 : i32
    %c0_i32_0 = arith.constant 0 : i32
    %c0_i32_1 = arith.constant 0 : i32
    return %c0_i32, %c0_i32_0 : i32, i32
  }
  func.func @transform_2(%arg0: i32) -> (i32, i32) {
    %c0_i32 = arith.constant 0 : i32
    %c0_i32_0 = arith.constant 0 : i32
    return %arg0, %c0_i32 : i32, i32
  }
  func.func @transform_3(%arg0: i32) -> (i32, i32, i32) {
    %c0_i32 = arith.constant 0 : i32
    %c0_i32_0 = arith.constant 0 : i32
    %c0_i32_1 = arith.constant 0 : i32
    return %arg0, %c0_i32, %c0_i32_0 : i32, i32, i32
  }
}

module attributes {stable_mosaic.version = 11 : i64} {
  func.func @_conv3_kernel(%arg0: i32, %arg1: memref<128x128xbf16, #tpu.memory_space<vmem>>, %arg2: memref<1x128xf32, #tpu.memory_space<vmem>>, %arg3: memref<1x128xf32, #tpu.memory_space<vmem>>, %arg4: memref<128x128xbf16, #tpu.memory_space<vmem>>, %arg5: memref<128x128xf32, #tpu.memory_space<vmem>>, %arg6: memref<1x2x128xf32, #tpu.memory_space<vmem>>) attributes {dimension_semantics = [#tpu.dimension_semantics<parallel>], iteration_bounds = array<i64: 4>, scalar_prefetch = 0 : i64, scratch_operands = 0 : i64, tpu.core_type = #tpu.core_type<tc>, window_params = [{transform_indices = @transform_0, window_bounds = array<i64: 128, 128>}, {pipeline_mode = #tpu.pipeline_mode<synchronous>, transform_indices = @transform_1, window_bounds = array<i64: 1, 128>}, {pipeline_mode = #tpu.pipeline_mode<synchronous>, transform_indices = @transform_2, window_bounds = array<i64: 1, 128>}, {pipeline_mode = #tpu.pipeline_mode<synchronous>, transform_indices = @transform_3, window_bounds = array<i64: 128, 128>}, {transform_indices = @transform_4, window_bounds = array<i64: 128, 128>}, {transform_indices = @transform_5, window_bounds = array<i64: 1, 2, 128>}]} {
    %c0 = arith.constant 0 : index
    %c0_0 = arith.constant 0 : index
    %0 = vector.load %arg1[%c0, %c0_0] : memref<128x128xbf16, #tpu.memory_space<vmem>>, vector<128x128xbf16>
    %1 = arith.extf %0 : vector<128x128xbf16> to vector<128x128xf32>
    %c0_1 = arith.constant 0 : index
    %c0_2 = arith.constant 0 : index
    %2 = vector.load %arg2[%c0_1, %c0_2] : memref<1x128xf32, #tpu.memory_space<vmem>>, vector<1x128xf32>
    %3 = vector.broadcast %2 : vector<1x128xf32> to vector<128x128xf32>
    %4 = arith.mulf %1, %3 : vector<128x128xf32>
    %c0_3 = arith.constant 0 : index
    %c0_4 = arith.constant 0 : index
    %5 = vector.load %arg3[%c0_3, %c0_4] : memref<1x128xf32, #tpu.memory_space<vmem>>, vector<1x128xf32>
    %6 = vector.broadcast %5 : vector<1x128xf32> to vector<128x128xf32>
    %7 = arith.addf %4, %6 : vector<128x128xf32>
    %cst = arith.constant 0.000000e+00 : f32
    %8 = vector.broadcast %cst : f32 to vector<128x128xf32>
    %9 = arith.maximumf %7, %8 : vector<128x128xf32>
    %10 = arith.truncf %9 : vector<128x128xf32> to vector<128x128xbf16>
    %c0_5 = arith.constant 0 : index
    %c0_6 = arith.constant 0 : index
    %11 = vector.load %arg4[%c0_5, %c0_6] : memref<128x128xbf16, #tpu.memory_space<vmem>>, vector<128x128xbf16>
    %cst_7 = arith.constant dense<0.000000e+00> : vector<128x128xf32>
    %12 = tpu.matmul %10, %11, %cst_7 {dimension_numbers = #tpu.dot_dimension_numbers<[1], [0], [0], [1], [0, 0, 1, 1], [], []>} : vector<128x128xbf16>, vector<128x128xbf16>, vector<128x128xf32> -> vector<128x128xf32>
    %c0_8 = arith.constant 0 : index
    %c0_9 = arith.constant 0 : index
    %13 = vector.load %arg5[%c0_8, %c0_9] : memref<128x128xf32, #tpu.memory_space<vmem>>, vector<128x128xf32>
    tpu.vector_store %arg5[%c0_8, %c0_9], %12 {strides = array<i32>} : memref<128x128xf32, #tpu.memory_space<vmem>>, vector<128x128xf32>,
    %cst_10 = arith.constant dense<0.000000e+00> : vector<128xf32>
    %14 = vector.multi_reduction <add>, %12, %cst_10 [0] : vector<128x128xf32> to vector<128xf32>
    %15 = vector.shape_cast %14 : vector<128xf32> to vector<1x128xf32>
    %16 = arith.mulf %12, %12 : vector<128x128xf32>
    %cst_11 = arith.constant dense<0.000000e+00> : vector<128xf32>
    %17 = vector.multi_reduction <add>, %16, %cst_11 [0] : vector<128x128xf32> to vector<128xf32>
    %18 = vector.shape_cast %17 : vector<128xf32> to vector<1x128xf32>
    %19 = tpu.concatenate %15, %18 in 0 : vector<1x128xf32>, vector<1x128xf32> -> vector<2x128xf32>
    %20 = vector.shape_cast %19 : vector<2x128xf32> to vector<1x2x128xf32>
    %c0_12 = arith.constant 0 : index
    %c0_13 = arith.constant 0 : index
    %c0_14 = arith.constant 0 : index
    %21 = vector.load %arg6[%c0_12, %c0_13, %c0_14] : memref<1x2x128xf32, #tpu.memory_space<vmem>>, vector<1x2x128xf32>
    tpu.vector_store %arg6[%c0_12, %c0_13, %c0_14], %20 {strides = array<i32>} : memref<1x2x128xf32, #tpu.memory_space<vmem>>, vector<1x2x128xf32>,
    return
  }
  func.func @transform_0(%arg0: i32) -> (i32, i32) {
    %c0_i32 = arith.constant 0 : i32
    %c0_i32_0 = arith.constant 0 : i32
    return %arg0, %c0_i32 : i32, i32
  }
  func.func @transform_1(%arg0: i32) -> (i32, i32) {
    %c0_i32 = arith.constant 0 : i32
    %c0_i32_0 = arith.constant 0 : i32
    %c0_i32_1 = arith.constant 0 : i32
    return %c0_i32, %c0_i32_0 : i32, i32
  }
  func.func @transform_2(%arg0: i32) -> (i32, i32) {
    %c0_i32 = arith.constant 0 : i32
    %c0_i32_0 = arith.constant 0 : i32
    %c0_i32_1 = arith.constant 0 : i32
    return %c0_i32, %c0_i32_0 : i32, i32
  }
  func.func @transform_3(%arg0: i32) -> (i32, i32) {
    %c0_i32 = arith.constant 0 : i32
    %c0_i32_0 = arith.constant 0 : i32
    %c0_i32_1 = arith.constant 0 : i32
    return %c0_i32, %c0_i32_0 : i32, i32
  }
  func.func @transform_4(%arg0: i32) -> (i32, i32) {
    %c0_i32 = arith.constant 0 : i32
    %c0_i32_0 = arith.constant 0 : i32
    return %arg0, %c0_i32 : i32, i32
  }
  func.func @transform_5(%arg0: i32) -> (i32, i32, i32) {
    %c0_i32 = arith.constant 0 : i32
    %c0_i32_0 = arith.constant 0 : i32
    %c0_i32_1 = arith.constant 0 : i32
    return %arg0, %c0_i32, %c0_i32_0 : i32, i32, i32
  }
}

module attributes {stable_mosaic.version = 11 : i64} {
  func.func @_conv2_kernel(%arg0: i32, %arg1: memref<256x128xbf16, #tpu.memory_space<vmem>>, %arg2: memref<1x128xf32, #tpu.memory_space<vmem>>, %arg3: memref<1x128xf32, #tpu.memory_space<vmem>>, %arg4: memref<9x128x128xbf16, #tpu.memory_space<vmem>>, %arg5: memref<256x4xf32, #tpu.memory_space<vmem>>, %arg6: memref<256x128xbf16, #tpu.memory_space<vmem>>, %arg7: memref<1x2x128xf32, #tpu.memory_space<vmem>>) attributes {dimension_semantics = [#tpu.dimension_semantics<parallel>], iteration_bounds = array<i64: 2>, scalar_prefetch = 0 : i64, scratch_operands = 0 : i64, tpu.core_type = #tpu.core_type<tc>, window_params = [{transform_indices = @transform_0, window_bounds = array<i64: 256, 128>}, {pipeline_mode = #tpu.pipeline_mode<synchronous>, transform_indices = @transform_1, window_bounds = array<i64: 1, 128>}, {pipeline_mode = #tpu.pipeline_mode<synchronous>, transform_indices = @transform_2, window_bounds = array<i64: 1, 128>}, {pipeline_mode = #tpu.pipeline_mode<synchronous>, transform_indices = @transform_3, window_bounds = array<i64: 9, 128, 128>}, {pipeline_mode = #tpu.pipeline_mode<synchronous>, transform_indices = @transform_4, window_bounds = array<i64: 256, 4>}, {transform_indices = @transform_5, window_bounds = array<i64: 256, 128>}, {transform_indices = @transform_6, window_bounds = array<i64: 1, 2, 128>}]} {
    %c0 = arith.constant 0 : index
    %c0_0 = arith.constant 0 : index
    %0 = vector.load %arg1[%c0, %c0_0] : memref<256x128xbf16, #tpu.memory_space<vmem>>, vector<256x128xbf16>
    %1 = arith.extf %0 : vector<256x128xbf16> to vector<256x128xf32>
    %c0_1 = arith.constant 0 : index
    %c0_2 = arith.constant 0 : index
    %2 = vector.load %arg2[%c0_1, %c0_2] : memref<1x128xf32, #tpu.memory_space<vmem>>, vector<1x128xf32>
    %3 = vector.broadcast %2 : vector<1x128xf32> to vector<256x128xf32>
    %4 = arith.mulf %1, %3 : vector<256x128xf32>
    %c0_3 = arith.constant 0 : index
    %c0_4 = arith.constant 0 : index
    %5 = vector.load %arg3[%c0_3, %c0_4] : memref<1x128xf32, #tpu.memory_space<vmem>>, vector<1x128xf32>
    %6 = vector.broadcast %5 : vector<1x128xf32> to vector<256x128xf32>
    %7 = arith.addf %4, %6 : vector<256x128xf32>
    %cst = arith.constant 0.000000e+00 : f32
    %8 = vector.broadcast %cst : f32 to vector<256x128xf32>
    %9 = arith.maximumf %7, %8 : vector<256x128xf32>
    %c0_5 = arith.constant 0 : index
    %c0_6 = arith.constant 0 : index
    %10 = vector.load %arg5[%c0_5, %c0_6] : memref<256x4xf32, #tpu.memory_space<vmem>>, vector<256x1xf32>
    %c0_7 = arith.constant 0 : index
    %c1 = arith.constant 1 : index
    %11 = vector.load %arg5[%c0_7, %c1] : memref<256x4xf32, #tpu.memory_space<vmem>>, vector<256x1xf32>
    %c0_8 = arith.constant 0 : index
    %c2 = arith.constant 2 : index
    %12 = vector.load %arg5[%c0_8, %c2] : memref<256x4xf32, #tpu.memory_space<vmem>>, vector<256x1xf32>
    %c0_9 = arith.constant 0 : index
    %c3 = arith.constant 3 : index
    %13 = vector.load %arg5[%c0_9, %c3] : memref<256x4xf32, #tpu.memory_space<vmem>>, vector<256x1xf32>
    %cst_10 = arith.constant 0.000000e+00 : f32
    %14 = vector.broadcast %cst_10 : f32 to vector<256x128xf32>
    %c17_i32 = arith.constant 17 : i32
    %15 = tpu.dynamic_rotate %9 by %c17_i32 dim 0 : vector<256x128xf32>, i32 -> vector<256x128xf32>
    %16 = arith.mulf %10, %12 : vector<256x1xf32>
    %17 = vector.broadcast %16 : vector<256x1xf32> to vector<256x128xf32>
    %18 = arith.mulf %15, %17 : vector<256x128xf32>
    %19 = arith.truncf %18 : vector<256x128xf32> to vector<256x128xbf16>
    %c0_11 = arith.constant 0 : index
    %c0_12 = arith.constant 0 : index
    %c0_13 = arith.constant 0 : index
    %20 = vector.load %arg4[%c0_11, %c0_12, %c0_13] : memref<9x128x128xbf16, #tpu.memory_space<vmem>>, vector<1x128x128xbf16>
    %21 = vector.shape_cast %20 : vector<1x128x128xbf16> to vector<128x128xbf16>
    %cst_14 = arith.constant dense<0.000000e+00> : vector<256x128xf32>
    %22 = tpu.matmul %19, %21, %cst_14 {dimension_numbers = #tpu.dot_dimension_numbers<[1], [0], [0], [1], [0, 0, 1, 1], [], []>} : vector<256x128xbf16>, vector<128x128xbf16>, vector<256x128xf32> -> vector<256x128xf32>
    %23 = arith.addf %14, %22 : vector<256x128xf32>
    %c16_i32 = arith.constant 16 : i32
    %24 = tpu.dynamic_rotate %9 by %c16_i32 dim 0 : vector<256x128xf32>, i32 -> vector<256x128xf32>
    %25 = vector.broadcast %12 : vector<256x1xf32> to vector<256x128xf32>
    %26 = arith.mulf %24, %25 : vector<256x128xf32>
    %27 = arith.truncf %26 : vector<256x128xf32> to vector<256x128xbf16>
    %c1_15 = arith.constant 1 : index
    %c0_16 = arith.constant 0 : index
    %c0_17 = arith.constant 0 : index
    %28 = vector.load %arg4[%c1_15, %c0_16, %c0_17] : memref<9x128x128xbf16, #tpu.memory_space<vmem>>, vector<1x128x128xbf16>
    %29 = vector.shape_cast %28 : vector<1x128x128xbf16> to vector<128x128xbf16>
    %cst_18 = arith.constant dense<0.000000e+00> : vector<256x128xf32>
    %30 = tpu.matmul %27, %29, %cst_18 {dimension_numbers = #tpu.dot_dimension_numbers<[1], [0], [0], [1], [0, 0, 1, 1], [], []>} : vector<256x128xbf16>, vector<128x128xbf16>, vector<256x128xf32> -> vector<256x128xf32>
    %31 = arith.addf %23, %30 : vector<256x128xf32>
    %c15_i32 = arith.constant 15 : i32
    %32 = tpu.dynamic_rotate %9 by %c15_i32 dim 0 : vector<256x128xf32>, i32 -> vector<256x128xf32>
    %33 = arith.mulf %11, %12 : vector<256x1xf32>
    %34 = vector.broadcast %33 : vector<256x1xf32> to vector<256x128xf32>
    %35 = arith.mulf %32, %34 : vector<256x128xf32>
    %36 = arith.truncf %35 : vector<256x128xf32> to vector<256x128xbf16>
    %c2_19 = arith.constant 2 : index
    %c0_20 = arith.constant 0 : index
    %c0_21 = arith.constant 0 : index
    %37 = vector.load %arg4[%c2_19, %c0_20, %c0_21] : memref<9x128x128xbf16, #tpu.memory_space<vmem>>, vector<1x128x128xbf16>
    %38 = vector.shape_cast %37 : vector<1x128x128xbf16> to vector<128x128xbf16>
    %cst_22 = arith.constant dense<0.000000e+00> : vector<256x128xf32>
    %39 = tpu.matmul %36, %38, %cst_22 {dimension_numbers = #tpu.dot_dimension_numbers<[1], [0], [0], [1], [0, 0, 1, 1], [], []>} : vector<256x128xbf16>, vector<128x128xbf16>, vector<256x128xf32> -> vector<256x128xf32>
    %40 = arith.addf %31, %39 : vector<256x128xf32>
    %c1_i32 = arith.constant 1 : i32
    %41 = tpu.dynamic_rotate %9 by %c1_i32 dim 0 : vector<256x128xf32>, i32 -> vector<256x128xf32>
    %42 = vector.broadcast %10 : vector<256x1xf32> to vector<256x128xf32>
    %43 = arith.mulf %41, %42 : vector<256x128xf32>
    %44 = arith.truncf %43 : vector<256x128xf32> to vector<256x128xbf16>
    %c3_23 = arith.constant 3 : index
    %c0_24 = arith.constant 0 : index
    %c0_25 = arith.constant 0 : index
    %45 = vector.load %arg4[%c3_23, %c0_24, %c0_25] : memref<9x128x128xbf16, #tpu.memory_space<vmem>>, vector<1x128x128xbf16>
    %46 = vector.shape_cast %45 : vector<1x128x128xbf16> to vector<128x128xbf16>
    %cst_26 = arith.constant dense<0.000000e+00> : vector<256x128xf32>
    %47 = tpu.matmul %44, %46, %cst_26 {dimension_numbers = #tpu.dot_dimension_numbers<[1], [0], [0], [1], [0, 0, 1, 1], [], []>} : vector<256x128xbf16>, vector<128x128xbf16>, vector<256x128xf32> -> vector<256x128xf32>
    %48 = arith.addf %40, %47 : vector<256x128xf32>
    %49 = arith.truncf %9 : vector<256x128xf32> to vector<256x128xbf16>
    %c4 = arith.constant 4 : index
    %c0_27 = arith.constant 0 : index
    %c0_28 = arith.constant 0 : index
    %50 = vector.load %arg4[%c4, %c0_27, %c0_28] : memref<9x128x128xbf16, #tpu.memory_space<vmem>>, vector<1x128x128xbf16>
    %51 = vector.shape_cast %50 : vector<1x128x128xbf16> to vector<128x128xbf16>
    %cst_29 = arith.constant dense<0.000000e+00> : vector<256x128xf32>
    %52 = tpu.matmul %49, %51, %cst_29 {dimension_numbers = #tpu.dot_dimension_numbers<[1], [0], [0], [1], [0, 0, 1, 1], [], []>} : vector<256x128xbf16>, vector<128x128xbf16>, vector<256x128xf32> -> vector<256x128xf32>
    %53 = arith.addf %48, %52 : vector<256x128xf32>
    %c255_i32 = arith.constant 255 : i32
    %54 = tpu.dynamic_rotate %9 by %c255_i32 dim 0 : vector<256x128xf32>, i32 -> vector<256x128xf32>
    %55 = vector.broadcast %11 : vector<256x1xf32> to vector<256x128xf32>
    %56 = arith.mulf %54, %55 : vector<256x128xf32>
    %57 = arith.truncf %56 : vector<256x128xf32> to vector<256x128xbf16>
    %c5 = arith.constant 5 : index
    %c0_30 = arith.constant 0 : index
    %c0_31 = arith.constant 0 : index
    %58 = vector.load %arg4[%c5, %c0_30, %c0_31] : memref<9x128x128xbf16, #tpu.memory_space<vmem>>, vector<1x128x128xbf16>
    %59 = vector.shape_cast %58 : vector<1x128x128xbf16> to vector<128x128xbf16>
    %cst_32 = arith.constant dense<0.000000e+00> : vector<256x128xf32>
    %60 = tpu.matmul %57, %59, %cst_32 {dimension_numbers = #tpu.dot_dimension_numbers<[1], [0], [0], [1], [0, 0, 1, 1], [], []>} : vector<256x128xbf16>, vector<128x128xbf16>, vector<256x128xf32> -> vector<256x128xf32>
    %61 = arith.addf %53, %60 : vector<256x128xf32>
    %c241_i32 = arith.constant 241 : i32
    %62 = tpu.dynamic_rotate %9 by %c241_i32 dim 0 : vector<256x128xf32>, i32 -> vector<256x128xf32>
    %63 = arith.mulf %10, %13 : vector<256x1xf32>
    %64 = vector.broadcast %63 : vector<256x1xf32> to vector<256x128xf32>
    %65 = arith.mulf %62, %64 : vector<256x128xf32>
    %66 = arith.truncf %65 : vector<256x128xf32> to vector<256x128xbf16>
    %c6 = arith.constant 6 : index
    %c0_33 = arith.constant 0 : index
    %c0_34 = arith.constant 0 : index
    %67 = vector.load %arg4[%c6, %c0_33, %c0_34] : memref<9x128x128xbf16, #tpu.memory_space<vmem>>, vector<1x128x128xbf16>
    %68 = vector.shape_cast %67 : vector<1x128x128xbf16> to vector<128x128xbf16>
    %cst_35 = arith.constant dense<0.000000e+00> : vector<256x128xf32>
    %69 = tpu.matmul %66, %68, %cst_35 {dimension_numbers = #tpu.dot_dimension_numbers<[1], [0], [0], [1], [0, 0, 1, 1], [], []>} : vector<256x128xbf16>, vector<128x128xbf16>, vector<256x128xf32> -> vector<256x128xf32>
    %70 = arith.addf %61, %69 : vector<256x128xf32>
    %c240_i32 = arith.constant 240 : i32
    %71 = tpu.dynamic_rotate %9 by %c240_i32 dim 0 : vector<256x128xf32>, i32 -> vector<256x128xf32>
    %72 = vector.broadcast %13 : vector<256x1xf32> to vector<256x128xf32>
    %73 = arith.mulf %71, %72 : vector<256x128xf32>
    %74 = arith.truncf %73 : vector<256x128xf32> to vector<256x128xbf16>
    %c7 = arith.constant 7 : index
    %c0_36 = arith.constant 0 : index
    %c0_37 = arith.constant 0 : index
    %75 = vector.load %arg4[%c7, %c0_36, %c0_37] : memref<9x128x128xbf16, #tpu.memory_space<vmem>>, vector<1x128x128xbf16>
    %76 = vector.shape_cast %75 : vector<1x128x128xbf16> to vector<128x128xbf16>
    %cst_38 = arith.constant dense<0.000000e+00> : vector<256x128xf32>
    %77 = tpu.matmul %74, %76, %cst_38 {dimension_numbers = #tpu.dot_dimension_numbers<[1], [0], [0], [1], [0, 0, 1, 1], [], []>} : vector<256x128xbf16>, vector<128x128xbf16>, vector<256x128xf32> -> vector<256x128xf32>
    %78 = arith.addf %70, %77 : vector<256x128xf32>
    %c239_i32 = arith.constant 239 : i32
    %79 = tpu.dynamic_rotate %9 by %c239_i32 dim 0 : vector<256x128xf32>, i32 -> vector<256x128xf32>
    %80 = arith.mulf %11, %13 : vector<256x1xf32>
    %81 = vector.broadcast %80 : vector<256x1xf32> to vector<256x128xf32>
    %82 = arith.mulf %79, %81 : vector<256x128xf32>
    %83 = arith.truncf %82 : vector<256x128xf32> to vector<256x128xbf16>
    %c8 = arith.constant 8 : index
    %c0_39 = arith.constant 0 : index
    %c0_40 = arith.constant 0 : index
    %84 = vector.load %arg4[%c8, %c0_39, %c0_40] : memref<9x128x128xbf16, #tpu.memory_space<vmem>>, vector<1x128x128xbf16>
    %85 = vector.shape_cast %84 : vector<1x128x128xbf16> to vector<128x128xbf16>
    %cst_41 = arith.constant dense<0.000000e+00> : vector<256x128xf32>
    %86 = tpu.matmul %83, %85, %cst_41 {dimension_numbers = #tpu.dot_dimension_numbers<[1], [0], [0], [1], [0, 0, 1, 1], [], []>} : vector<256x128xbf16>, vector<128x128xbf16>, vector<256x128xf32> -> vector<256x128xf32>
    %87 = arith.addf %78, %86 : vector<256x128xf32>
    %88 = arith.truncf %87 : vector<256x128xf32> to vector<256x128xbf16>
    %c0_42 = arith.constant 0 : index
    %c0_43 = arith.constant 0 : index
    %89 = vector.load %arg6[%c0_42, %c0_43] : memref<256x128xbf16, #tpu.memory_space<vmem>>, vector<256x128xbf16>
    tpu.vector_store %arg6[%c0_42, %c0_43], %88 {strides = array<i32>} : memref<256x128xbf16, #tpu.memory_space<vmem>>, vector<256x128xbf16>,
    %cst_44 = arith.constant dense<0.000000e+00> : vector<128xf32>
    %90 = vector.multi_reduction <add>, %87, %cst_44 [0] : vector<256x128xf32> to vector<128xf32>
    %91 = vector.shape_cast %90 : vector<128xf32> to vector<1x128xf32>
    %92 = arith.mulf %87, %87 : vector<256x128xf32>
    %cst_45 = arith.constant dense<0.000000e+00> : vector<128xf32>
    %93 = vector.multi_reduction <add>, %92, %cst_45 [0] : vector<256x128xf32> to vector<128xf32>
    %94 = vector.shape_cast %93 : vector<128xf32> to vector<1x128xf32>
    %95 = tpu.concatenate %91, %94 in 0 : vector<1x128xf32>, vector<1x128xf32> -> vector<2x128xf32>
    %96 = vector.shape_cast %95 : vector<2x128xf32> to vector<1x2x128xf32>
    %c0_46 = arith.constant 0 : index
    %c0_47 = arith.constant 0 : index
    %c0_48 = arith.constant 0 : index
    %97 = vector.load %arg7[%c0_46, %c0_47, %c0_48] : memref<1x2x128xf32, #tpu.memory_space<vmem>>, vector<1x2x128xf32>
    tpu.vector_store %arg7[%c0_46, %c0_47, %c0_48], %96 {strides = array<i32>} : memref<1x2x128xf32, #tpu.memory_space<vmem>>, vector<1x2x128xf32>,
    return
  }
  func.func @transform_0(%arg0: i32) -> (i32, i32) {
    %c0_i32 = arith.constant 0 : i32
    %c0_i32_0 = arith.constant 0 : i32
    return %arg0, %c0_i32 : i32, i32
  }
  func.func @transform_1(%arg0: i32) -> (i32, i32) {
    %c0_i32 = arith.constant 0 : i32
    %c0_i32_0 = arith.constant 0 : i32
    %c0_i32_1 = arith.constant 0 : i32
    return %c0_i32, %c0_i32_0 : i32, i32
  }
  func.func @transform_2(%arg0: i32) -> (i32, i32) {
    %c0_i32 = arith.constant 0 : i32
    %c0_i32_0 = arith.constant 0 : i32
    %c0_i32_1 = arith.constant 0 : i32
    return %c0_i32, %c0_i32_0 : i32, i32
  }
  func.func @transform_3(%arg0: i32) -> (i32, i32, i32) {
    %c0_i32 = arith.constant 0 : i32
    %c0_i32_0 = arith.constant 0 : i32
    %c0_i32_1 = arith.constant 0 : i32
    %c0_i32_2 = arith.constant 0 : i32
    return %c0_i32, %c0_i32_0, %c0_i32_1 : i32, i32, i32
  }
  func.func @transform_4(%arg0: i32) -> (i32, i32) {
    %c0_i32 = arith.constant 0 : i32
    %c0_i32_0 = arith.constant 0 : i32
    %c0_i32_1 = arith.constant 0 : i32
    return %c0_i32, %c0_i32_0 : i32, i32
  }
  func.func @transform_5(%arg0: i32) -> (i32, i32) {
    %c0_i32 = arith.constant 0 : i32
    %c0_i32_0 = arith.constant 0 : i32
    return %arg0, %c0_i32 : i32, i32
  }
  func.func @transform_6(%arg0: i32) -> (i32, i32, i32) {
    %c0_i32 = arith.constant 0 : i32
    %c0_i32_0 = arith.constant 0 : i32
    %c0_i32_1 = arith.constant 0 : i32
    return %arg0, %c0_i32, %c0_i32_0 : i32, i32, i32
  }
}

module attributes {stable_mosaic.version = 11 : i64} {
  func.func @_out_kernel(%arg0: i32, %arg1: memref<128x128xf32, #tpu.memory_space<vmem>>, %arg2: memref<128x128xf32, #tpu.memory_space<vmem>>, %arg3: memref<1x128xf32, #tpu.memory_space<vmem>>, %arg4: memref<1x128xf32, #tpu.memory_space<vmem>>, %arg5: memref<128x128xf32, #tpu.memory_space<vmem>>) attributes {dimension_semantics = [#tpu.dimension_semantics<parallel>], iteration_bounds = array<i64: 4>, scalar_prefetch = 0 : i64, scratch_operands = 0 : i64, tpu.core_type = #tpu.core_type<tc>, window_params = [{transform_indices = @transform_0, window_bounds = array<i64: 128, 128>}, {transform_indices = @transform_1, window_bounds = array<i64: 128, 128>}, {pipeline_mode = #tpu.pipeline_mode<synchronous>, transform_indices = @transform_2, window_bounds = array<i64: 1, 128>}, {pipeline_mode = #tpu.pipeline_mode<synchronous>, transform_indices = @transform_3, window_bounds = array<i64: 1, 128>}, {transform_indices = @transform_4, window_bounds = array<i64: 128, 128>}]} {
    %c0 = arith.constant 0 : index
    %c0_0 = arith.constant 0 : index
    %0 = vector.load %arg1[%c0, %c0_0] : memref<128x128xf32, #tpu.memory_space<vmem>>, vector<128x128xf32>
    %c0_1 = arith.constant 0 : index
    %c0_2 = arith.constant 0 : index
    %1 = vector.load %arg3[%c0_1, %c0_2] : memref<1x128xf32, #tpu.memory_space<vmem>>, vector<1x128xf32>
    %2 = vector.broadcast %1 : vector<1x128xf32> to vector<128x128xf32>
    %3 = arith.mulf %0, %2 : vector<128x128xf32>
    %c0_3 = arith.constant 0 : index
    %c0_4 = arith.constant 0 : index
    %4 = vector.load %arg4[%c0_3, %c0_4] : memref<1x128xf32, #tpu.memory_space<vmem>>, vector<1x128xf32>
    %5 = vector.broadcast %4 : vector<1x128xf32> to vector<128x128xf32>
    %6 = arith.addf %3, %5 : vector<128x128xf32>
    %c0_5 = arith.constant 0 : index
    %c0_6 = arith.constant 0 : index
    %7 = vector.load %arg2[%c0_5, %c0_6] : memref<128x128xf32, #tpu.memory_space<vmem>>, vector<128x128xf32>
    %8 = arith.addf %6, %7 : vector<128x128xf32>
    %cst = arith.constant 0.000000e+00 : f32
    %9 = vector.broadcast %cst : f32 to vector<128x128xf32>
    %10 = arith.maximumf %8, %9 : vector<128x128xf32>
    %c0_7 = arith.constant 0 : index
    %c0_8 = arith.constant 0 : index
    %11 = vector.load %arg5[%c0_7, %c0_8] : memref<128x128xf32, #tpu.memory_space<vmem>>, vector<128x128xf32>
    tpu.vector_store %arg5[%c0_7, %c0_8], %10 {strides = array<i32>} : memref<128x128xf32, #tpu.memory_space<vmem>>, vector<128x128xf32>,
    return
  }
  func.func @transform_0(%arg0: i32) -> (i32, i32) {
    %c0_i32 = arith.constant 0 : i32
    %c0_i32_0 = arith.constant 0 : i32
    return %arg0, %c0_i32 : i32, i32
  }
  func.func @transform_1(%arg0: i32) -> (i32, i32) {
    %c0_i32 = arith.constant 0 : i32
    %c0_i32_0 = arith.constant 0 : i32
    return %arg0, %c0_i32 : i32, i32
  }
  func.func @transform_2(%arg0: i32) -> (i32, i32) {
    %c0_i32 = arith.constant 0 : i32
    %c0_i32_0 = arith.constant 0 : i32
    %c0_i32_1 = arith.constant 0 : i32
    return %c0_i32, %c0_i32_0 : i32, i32
  }
  func.func @transform_3(%arg0: i32) -> (i32, i32) {
    %c0_i32 = arith.constant 0 : i32
    %c0_i32_0 = arith.constant 0 : i32
    %c0_i32_1 = arith.constant 0 : i32
    return %c0_i32, %c0_i32_0 : i32, i32
  }
  func.func @transform_4(%arg0: i32) -> (i32, i32) {
    %c0_i32 = arith.constant 0 : i32
    %c0_i32_0 = arith.constant 0 : i32
    return %arg0, %c0_i32 : i32, i32
  }
}

</mosaic_0001>

<bundles_post_ra>
// kernel: _lambda_.4
= control target key start
LH: loop header
LB: loop body
LE: loop exit
PB: predicated region body
PF: predicated region fallthrough
CT: control target
= control target key end

     0   :  { %s806_s12 = smov 0   ;;  %s887_s0 = inlined_call_operand.vmem [shape: f32[512,128], index: 0, kind: input, shape index: {}]   ;;  %s888_s1 = inlined_call_operand.vmem [shape: bf16[128,128], index: 1, kind: input, shape index: {}]   ;;  %s889_s2 = inlined_call_operand.vmem [shape: bf16[512,128], index: 2, kind: output, shape index: {0}]   ;;  %s890_s3 = inlined_call_operand.vmem [shape: f32[4,2,128], index: 3, kind: output, shape index: {1}]  }
   0x1 LB: > { %s812_s13 = sadd.s32 4294967295, %s784_s12   ;;  %p603_p0 = scmp.ge.s32.totalorder %s784_s12, 1  ;;  %s784_s12 = sphi %s806_s12, %s14_s12  }
   0x2   : > { %p141_p1 = scmp.lt.s32.totalorder %s784_s12, 5 }
   0x4   : > { %p142_p2 = pnand %p603_p0, %p141_p1 }
   0x5   : > { %v770_v0 = vld [vmem:[%s888_s1] sm:$0xff] (!%p142_p2)   ;;  %s604_s16 = sshll.u32 (!%p142_p2), %s812_s13, 4  ;;  %v771_v1 = vld [vmem:[%s888_s1 + $0x8] sm:$0xff] (!%p142_p2)   ;;  %v772_v2 = vld [vmem:[%s888_s1 + $0x10] sm:$0xff] (!%p142_p2)   ;;  %p181_p4 = scmp.lt.s32.totalorder (!%p142_p2), %s812_s13, 3  ;;  %vm509_vm0 = vcmask (!%p142_p2), 1040384  }
   0x6   : > { %145 = sbr.rel (%p142_p2) target bundleno = 300 (0x12c), region = 28  ;;  %p170_p3 = scmp.lt.s32.totalorder (!%p142_p2), %s604_s16, 63  ;;  %714 = vmatprep.subr.bf16.mxu0 (!%p142_p2), %v770_v0  ;;  %746 = vmatprep.subr.bf16.mxu1 (!%p142_p2), %v770_v0  ;;  %v773_v3 = vld [vmem:[%s888_s1 + $0x18] sm:$0xff] (!%p142_p2)   ;;  %v774_v9 = vld [vmem:[%s888_s1 + $0x20] sm:$0xff] (!%p142_p2)   ;;  %v775_v11 = vld [vmem:[%s888_s1 + $0x28] sm:$0xff] (!%p142_p2)  }
   0x7   : > { %715 = vmatpush3.bf16.msra.mxu0 (!%p142_p2), %v770_v0  ;;  %754 = vmatpush3.bf16.msra.mxu1 (!%p142_p2), %v770_v0  ;;  %v776_v12 = vld [vmem:[%s888_s1 + $0x30] sm:$0xff] (!%p142_p2)   ;;  %v777_v13 = vld [vmem:[%s888_s1 + $0x38] sm:$0xff] (!%p142_p2)  }
   0x8   : > { %716 = vmatprep.subr.bf16.mxu0 (!%p142_p2), %v771_v1  ;;  %747 = vmatprep.subr.bf16.mxu1 (!%p142_p2), %v771_v1 }
   0xb   : > { %717 = vmatpush3.bf16.msra.mxu0 (!%p142_p2), %v771_v1  ;;  %755 = vmatpush3.bf16.msra.mxu1 (!%p142_p2), %v771_v1 }
   0xc   : > { %718 = vmatprep.subr.bf16.mxu0 (!%p142_p2), %v772_v2  ;;  %748 = vmatprep.subr.bf16.mxu1 (!%p142_p2), %v772_v2 }
   0xd   : > { %s892_s16 = smov (!%p170_p3, %s604_s16), 63  ;;  %s894_s13 = smov (!%p181_p4, %s812_s13), 3 }
   0xe   : > { %s605_s21 = sshll.u32 %s892_s16, 3  ;;  %s607_s8 = sshll.u32 %s892_s16, 2 }
   0xf   : > { %s832_s24 = scalar_lea.vmem %s887_s0, %s605_s21  ;;  %719 = vmatpush3.bf16.msra.mxu0 %v772_v2  ;;  %756 = vmatpush3.bf16.msra.mxu1 %v772_v2  ;;  %s869_s11 = scalar_lea.vmem %s889_s2, %s607_s8 }
  0x10   : > { %v186_v4 = vld [vmem:[%s832_s24] sm:$0xff]  ;;  %v187_v5 = vld [vmem:[%s832_s24 + $0x8] sm:$0xff]  ;;  %720 = vmatprep.subr.bf16.mxu0 %v773_v3  ;;  %749 = vmatprep.subr.bf16.mxu1 %v773_v3  ;;  %v188_v14 = vld [vmem:[%s832_s24 + $0x10] sm:$0xff]  ;;  %s608_s14 = sshll.u32 %s894_s13, 1 }
  0x11   : > { %v202_v6 = vpack.c.bf16 %v187_v5, %v186_v4  ;;  %v194_v7 = vld [vmem:[%s832_s24 + $0x40] sm:$0xff]  ;;  %v195_v8 = vld [vmem:[%s832_s24 + $0x48] sm:$0xff]  ;;  %v189_v15 = vld [vmem:[%s832_s24 + $0x18] sm:$0xff]  ;;  %s184_s17 = scalar_lea.vmem %s890_s3, %s608_s14 }
  0x12   : > { %v206_v10 = vpack.c.bf16 %v195_v8, %v194_v7  ;;  %v190_v16 = vld [vmem:[%s832_s24 + $0x20] sm:$0xff]  ;;  %v196_v17 = vld [vmem:[%s832_s24 + $0x50] sm:$0xff]  ;;  %v197_v18 = vld [vmem:[%s832_s24 + $0x58] sm:$0xff]  ;;  %v203_v22 = vpack.c.bf16 %v189_v15, %v188_v14 }
  0x13   : > { %730 = vmatprep.mubr.bf16.mxu0 %v202_v6  ;;  %721 = vmatpush3.bf16.msra.mxu0 %v773_v3  ;;  %v191_v19 = vld [vmem:[%s832_s24 + $0x28] sm:$0xff]  ;;  %v198_v20 = vld [vmem:[%s832_s24 + $0x60] sm:$0xff]  ;;  %v207_v23 = vpack.c.bf16 %v197_v18, %v196_v17  ;;  %v192_v26 = vld [vmem:[%s832_s24 + $0x30] sm:$0xff] }
  0x14   : > { %738 = vmatprep.mubr.bf16.mxu1 %v206_v10  ;;  %757 = vmatpush3.bf16.msra.mxu1 %v773_v3  ;;  %v199_v21 = vld [vmem:[%s832_s24 + $0x68] sm:$0xff]  ;;  %v204_v24 = vpack.c.bf16 %v191_v19, %v190_v16  ;;  %v193_v27 = vld [vmem:[%s832_s24 + $0x38] sm:$0xff]  ;;  %v200_v28 = vld [vmem:[%s832_s24 + $0x70] sm:$0xff] }
  0x15   : > { %722 = vmatprep.subr.bf16.mxu0 %v774_v9  ;;  %750 = vmatprep.subr.bf16.mxu1 %v774_v9  ;;  %v208_v25 = vpack.c.bf16 %v199_v21, %v198_v20  ;;  %v201_v29 = vld [vmem:[%s832_s24 + $0x78] sm:$0xff]  ;;  %v205_v30 = vpack.c.bf16 %v193_v27, %v192_v26 }
  0x16   : > { %v209_v31 = vpack.c.bf16 %v201_v29, %v200_v28 }
  0x17   : > { %723 = vmatpush3.bf16.msra.mxu0 %v774_v9 }
  0x18   : > { %758 = vmatpush3.bf16.msra.mxu1 %v774_v9  ;;  %724 = vmatprep.subr.bf16.mxu0 %v775_v11 }
  0x19   : > { %751 = vmatprep.subr.bf16.mxu1 %v775_v11 }
  0x1b   : > { %725 = vmatpush3.bf16.msra.mxu0 %v775_v11 }
  0x1c   : > { %759 = vmatpush3.bf16.msra.mxu1 %v775_v11  ;;  %726 = vmatprep.subr.bf16.mxu0 %v776_v12 }
  0x1d   : > { %752 = vmatprep.subr.bf16.mxu1 %v776_v12 }
  0x1f   : > { %727 = vmatpush3.bf16.msra.mxu0 %v776_v12 }
  0x20   : > { %760 = vmatpush3.bf16.msra.mxu1 %v776_v12  ;;  %728 = vmatprep.subr.bf16.mxu0 %v777_v13 }
  0x21   : > { %753 = vmatprep.subr.bf16.mxu1 %v777_v13 }
  0x23   : > { %729 = vmatpush3.bf16.msra.mxu0 %v777_v13 }
  0x24   : > { %761 = vmatpush3.bf16.msra.mxu1 %v777_v13 }
  0x26   : > { %731 = vmatmul.mubr.bf16.vlgmr.msra.gmra.mrb[0].mxu0 %v203_v22 }
  0x27   : > { %739 = vmatmul.mubr.bf16.vlgmr.msra.gmra.mrb[0].mxu1 %v207_v23  ;;  %734 = vmatprep.mubr.bf16.mxu0 %v204_v24 }
  0x28   : > { %742 = vmatprep.mubr.bf16.mxu1 %v208_v25 }
  0x2e   : > { %735 = vmatmul.mubr.bf16.gmra.mrb[4].mxu0 %v205_v30 }
  0x2f   : > { %743 = vmatmul.mubr.bf16.gmra.mrb[4].mxu1 %v209_v31 }
  0xf9   : > { %v732_v32 = vpop.f32.mrb[0].mxu0 }
  0xfa   : > { %v740_v33 = vpop.f32.mrb[0].mxu1  ;;  %v308_v34 = vpop.f32.mrb[1].mxu0  ;;  %v474_v47 = vmul.f32 %v732_v32, %v732_v32 }
  0xfb   : > { %v340_v35 = vpop.f32.mrb[1].mxu1  ;;  %v733_v36 = vpop.f32.mrb[2].mxu0  ;;  %v472_v38 = vmul.f32 %v308_v34, %v308_v34  ;;  %v482_v19 = vmul.f32 %v740_v33, %v740_v33 }
  0xfc   : > { %v741_v37 = vpop.f32.mrb[2].mxu1  ;;  %v659_v39 = vpack.c.bf16 %v733_v36, %v732_v32  ;;  %v311_v40 = vpop.f32.mrb[3].mxu0  ;;  %v475_v50 = vmul.f32 %v733_v36, %v733_v36  ;;  %v480_v13 = vmul.f32 %v340_v35, %v340_v35 }
  0xfd   : > { %v679_v41 = vpack.c.bf16 %v741_v37, %v740_v33  ;;  %v343_v42 = vpop.f32.mrb[3].mxu1  ;;  %v654_v43 = vpack.c.bf16 %v311_v40, %v308_v34  ;;  %v451_v44 = vadd.f32 %v311_v40, %v308_v34  ;;  %v473_v45 = vmul.f32 %v311_v40, %v311_v40 }
  0xfe   : > { %v674_v46 = vpack.c.bf16 %v343_v42, %v340_v35  ;;  %691 = vst [vmem:[%s869_s11 + $0x8] sm:$0xff] %v659_v39   ;;  %v481_v18 = vmul.f32 %v343_v42, %v343_v42  ;;  %v483_v22 = vmul.f32 %v741_v37, %v741_v37 }
  0xff   : > { %695 = vst [vmem:[%s869_s11 + $0x28] sm:$0xff] %v679_v41   ;;  %655 = vst [vmem:[%s869_s11] sm:$0xff] %v654_v43   ;;  %v452_v48 = vadd.f32 %v732_v32, %v451_v44  ;;  %v488_v49 = vadd.f32 %v473_v45, %v472_v38 }
 0x100   : > { %694 = vst [vmem:[%s869_s11 + $0x20] sm:$0xff] %v674_v46  }
 0x101   : > { %v489_v51 = vadd.f32 %v488_v49, %v474_v47  ;;  %v736_v52 = vpop.f32.mrb[4].mxu0  ;;  %v453_v53 = vadd.f32 %v733_v36, %v452_v48 }
 0x102   : > { %v744_v54 = vpop.f32.mrb[4].mxu1  ;;  %v324_v55 = vpop.f32.mrb[5].mxu0  ;;  %v478_v7 = vmul.f32 %v736_v52, %v736_v52 }
 0x103   : > { %v356_v56 = vpop.f32.mrb[5].mxu1  ;;  %v454_v57 = vadd.f32 %v453_v53, %v324_v55  ;;  %v476_v58 = vmul.f32 %v324_v55, %v324_v55  ;;  %v490_v59 = vadd.f32 %v489_v51, %v475_v50  ;;  %v737_v60 = vpop.f32.mrb[6].mxu0  ;;  %v486_v31 = vmul.f32 %v744_v54, %v744_v54 }
 0x104   : > { %v745_v61 = vpop.f32.mrb[6].mxu1  ;;  %v669_v62 = vpack.c.bf16 %v737_v60, %v736_v52  ;;  %v327_v63 = vpop.f32.mrb[7].mxu0  ;;  %v479_v10 = vmul.f32 %v737_v60, %v737_v60  ;;  %v484_v25 = vmul.f32 %v356_v56, %v356_v56 }
 0x105   : > { %v689_v0 = vpack.c.bf16 %v745_v61, %v744_v54  ;;  %v359_v1 = vpop.f32.mrb[7].mxu1  ;;  %v491_v2 = vadd.f32 %v490_v59, %v476_v58  ;;  %v664_v3 = vpack.c.bf16 %v327_v63, %v324_v55  ;;  %v455_v4 = vadd.f32 %v454_v57, %v327_v63 }
 0x106   : > { %v477_v5 = vmul.f32 %v327_v63, %v327_v63  ;;  %693 = vst [vmem:[%s869_s11 + $0x18] sm:$0xff] %v669_v62   ;;  %v684_v6 = vpack.c.bf16 %v359_v1, %v356_v56  ;;  %v485_v30 = vmul.f32 %v359_v1, %v359_v1 }
 0x107   : > { %697 = vst [vmem:[%s869_s11 + $0x38] sm:$0xff] %v689_v0   ;;  %692 = vst [vmem:[%s869_s11 + $0x10] sm:$0xff] %v664_v3   ;;  %v456_v8 = vadd.f32 %v736_v52, %v455_v4 }
 0x108   : > { %v492_v9 = vadd.f32 %v491_v2, %v477_v5  ;;  %696 = vst [vmem:[%s869_s11 + $0x30] sm:$0xff] %v684_v6  }
 0x109   : > { %v457_v12 = vadd.f32 %v737_v60, %v456_v8 }
 0x10a   : > { %v493_v11 = vadd.f32 %v492_v9, %v478_v7 }
 0x10b   : > { %v458_v14 = vadd.f32 %v457_v12, %v340_v35  ;;  %v487_v35 = vmul.f32 %v745_v61, %v745_v61 }
 0x10c   : > { %v494_v15 = vadd.f32 %v493_v11, %v479_v10 }
 0x10d   : > { %v459_v17 = vadd.f32 %v458_v14, %v343_v42 }
 0x10e   : > { %v495_v16 = vadd.f32 %v494_v15, %v480_v13 }
 0x10f   : > { %v460_v20 = vadd.f32 %v740_v33, %v459_v17 }
 0x110   : > { %v496_v21 = vadd.f32 %v495_v16, %v481_v18 }
 0x111   : > { %v461_v24 = vadd.f32 %v741_v37, %v460_v20 }
 0x112   : > { %v497_v23 = vadd.f32 %v496_v21, %v482_v19 }
 0x113   : > { %v462_v26 = vadd.f32 %v461_v24, %v356_v56 }
 0x114   : > { %v498_v27 = vadd.f32 %v497_v23, %v483_v22 }
 0x115   : > { %v463_v29 = vadd.f32 %v462_v26, %v359_v1 }
 0x116   : > { %v499_v28 = vadd.f32 %v498_v27, %v484_v25 }
 0x117   : > { %v464_v32 = vadd.f32 %v744_v54, %v463_v29 }
 0x118   : > { %v500_v34 = vadd.f32 %v499_v28, %v485_v30 }
 0x119   : > { %v465_v36 = vadd.f32 %v745_v61, %v464_v32 }
 0x11a   : > { %v501_v38 = vadd.f32 %v500_v34, %v486_v31 }
 0x11b   : > { %v466_v39 = vrot.slane %v465_v36, 4 }
 0x11c   : > { %v502_v33 = vadd.f32 %v501_v38, %v487_v35 }
 0x11d   : > { %v467_v40 = vadd.f32 %v466_v39, %v465_v36 }
 0x11e   : > { %v503_v41 = vrot.slane %v502_v33, 4 }
 0x11f   : > { %v468_v42 = vrot.slane %v467_v40, 2 }
 0x120   : > { %v504_v37 = vadd.f32 %v503_v41, %v502_v33 }
 0x121   : > { %v469_v43 = vadd.f32 %v468_v42, %v467_v40 }
 0x122   : > { %v505_v44 = vrot.slane %v504_v37, 2 }
 0x123   : > { %v470_v45 = vrot.slane %v469_v43, 1 }
 0x124   : > { %v506_v46 = vadd.f32 %v505_v44, %v504_v37 }
 0x125   : > { %v471_v48 = vadd.f32 %v470_v45, %v469_v43 }
 0x126   : > { %v507_v47 = vrot.slane %v506_v46, 1 }
 0x128   : > { %v508_v49 = vadd.f32 %v507_v47, %v506_v46 }
 0x12a   : > { %v510_v50 = vsel %vm509_vm0, %v471_v48, %v508_v49 }
 0x12b   : > { %511 = vst [vmem:[%s184_s17] sm:$0x3] %v510_v50 }
 0x12c PF: > { %s14_s12 = sadd.s32 1, %s784_s12  }
 0x12d   : > { %p11_p5 = scmp.ge.s32.totalorder %s14_s12, 6  }
 0x12f   :  { %13 = sbr.rel (!%p11_p5) target bundleno = 1 (0x1), region = 70 }

// kernel: _lambda_.6
= control target key start
LH: loop header
LB: loop body
LE: loop exit
PB: predicated region body
PF: predicated region fallthrough
CT: control target
= control target key end

     0   :  { %s846_s18 = smov 0   ;;  %s969_s0 = inlined_call_operand.vmem [shape: bf16[512,128], index: 0, kind: input, shape index: {}]   ;;  %s970_s1 = inlined_call_operand.vmem [shape: f32[1,128], index: 1, kind: input, shape index: {}]   ;;  %s971_s2 = inlined_call_operand.vmem [shape: f32[1,128], index: 2, kind: input, shape index: {}]   ;;  %s972_s3 = inlined_call_operand.vmem [shape: bf16[128,128], index: 3, kind: input, shape index: {}]   ;;  %s973_s4 = inlined_call_operand.vmem [shape: f32[512,128], index: 4, kind: output, shape index: {0}]   ;;  %s974_s5 = inlined_call_operand.vmem [shape: f32[4,2,128], index: 5, kind: output, shape index: {1}]  }
   0x1 LB: > { %s852_s19 = sadd.s32 4294967295, %s814_s18   ;;  %p671_p0 = scmp.ge.s32.totalorder %s814_s18, 1  ;;  %s814_s18 = sphi %s846_s18, %s16_s18  }
   0x2   : > { %p191_p1 = scmp.lt.s32.totalorder %s814_s18, 5 }
   0x4   : > { %p192_p2 = pnand %p671_p0, %p191_p1 }
   0x5   : > { %v800_v0 = vld [vmem:[%s972_s3] sm:$0xff] (!%p192_p2)   ;;  %s672_s22 = sshll.u32 (!%p192_p2), %s852_s19, 4  ;;  %v801_v1 = vld [vmem:[%s972_s3 + $0x8] sm:$0xff] (!%p192_p2)   ;;  %v802_v2 = vld [vmem:[%s972_s3 + $0x10] sm:$0xff] (!%p192_p2)   ;;  %p235_p4 = scmp.lt.s32.totalorder (!%p192_p2), %s852_s19, 3  ;;  %vm577_vm0 = vcmask (!%p192_p2), 1040384  }
   0x6   : > { %195 = sbr.rel (%p192_p2) target bundleno = 299 (0x12b), region = 36  ;;  %p224_p3 = scmp.lt.s32.totalorder (!%p192_p2), %s672_s22, 63  ;;  %744 = vmatprep.subr.bf16.mxu0 (!%p192_p2), %v800_v0  ;;  %776 = vmatprep.subr.bf16.mxu1 (!%p192_p2), %v800_v0  ;;  %v803_v3 = vld [vmem:[%s972_s3 + $0x18] sm:$0xff] (!%p192_p2)   ;;  %v881_v5 = vld [vmem:[%s970_s1] ss:$0 sm:$0xff] (!%p192_p2)  ;;  %v805_v28 = vld [vmem:[%s972_s3 + $0x28] sm:$0xff] (!%p192_p2)  }
   0x7   : > { %745 = vmatpush3.bf16.msra.mxu0 (!%p192_p2), %v800_v0  ;;  %784 = vmatpush3.bf16.msra.mxu1 (!%p192_p2), %v800_v0  ;;  %v888_v10 = vld [vmem:[%s971_s2] ss:$0 sm:$0xff] (!%p192_p2)  ;;  %v806_v44 = vld [vmem:[%s972_s3 + $0x30] sm:$0xff] (!%p192_p2)   ;;  %v807_v61 = vld [vmem:[%s972_s3 + $0x38] sm:$0xff] (!%p192_p2)  }
   0x8   : > { %746 = vmatprep.subr.bf16.mxu0 (!%p192_p2), %v801_v1  ;;  %777 = vmatprep.subr.bf16.mxu1 (!%p192_p2), %v801_v1  ;;  %v804_v16 = vld [vmem:[%s972_s3 + $0x20] sm:$0xff] (!%p192_p2)  }
   0xb   : > { %747 = vmatpush3.bf16.msra.mxu0 (!%p192_p2), %v801_v1  ;;  %785 = vmatpush3.bf16.msra.mxu1 (!%p192_p2), %v801_v1 }
   0xc   : > { %748 = vmatprep.subr.bf16.mxu0 (!%p192_p2), %v802_v2  ;;  %778 = vmatprep.subr.bf16.mxu1 (!%p192_p2), %v802_v2 }
   0xd   : > { %s976_s22 = smov (!%p224_p3, %s672_s22), 63  ;;  %s978_s19 = smov (!%p235_p4, %s852_s19), 3 }
   0xe   : > { %s673_s27 = sshll.u32 %s976_s22, 2  ;;  %s675_s23 = sshll.u32 %s976_s22, 3 }
   0xf   : > { %s872_s30 = scalar_lea.vmem %s969_s0, %s673_s27  ;;  %749 = vmatpush3.bf16.msra.mxu0 %v802_v2  ;;  %786 = vmatpush3.bf16.msra.mxu1 %v802_v2  ;;  %s943_s26 = scalar_lea.vmem %s973_s4, %s675_s23 }
  0x10   : > { %v690_v4 = vld [vmem:[%s872_s30] sm:$0xff]   ;;  %v721_v8 = vld [vmem:[%s872_s30 + $0x8] sm:$0xff]   ;;  %v722_v9 = vld [vmem:[%s872_s30 + $0x10] sm:$0xff]   ;;  %750 = vmatprep.subr.bf16.mxu0 %v803_v3  ;;  %779 = vmatprep.subr.bf16.mxu1 %v803_v3  ;;  %s676_s22 = sshll.u32 %s978_s19, 1 }
  0x11   : > { %v691_v6 = vunpack.c.l.bf16 %v690_v4  ;;  %v692_v7 = vunpack.c.h.bf16 %v690_v4  ;;  %v695_v11 = vunpack.c.l.bf16 %v721_v8  ;;  %v696_v14 = vunpack.c.h.bf16 %v721_v8  ;;  %v724_v15 = vld [vmem:[%s872_s30 + $0x20] sm:$0xff]   ;;  %v723_v22 = vld [vmem:[%s872_s30 + $0x18] sm:$0xff]   ;;  %v725_v27 = vld [vmem:[%s872_s30 + $0x28] sm:$0xff]   ;;  %s238_s29 = scalar_lea.vmem %s974_s5, %s676_s22 }
  0x12   : > { %v699_v17 = vunpack.c.l.bf16 %v722_v9  ;;  %v700_v21 = vunpack.c.h.bf16 %v722_v9  ;;  %v707_v23 = vunpack.c.l.bf16 %v724_v15  ;;  %v726_v30 = vld [vmem:[%s872_s30 + $0x30] sm:$0xff]   ;;  %v703_v32 = vunpack.c.l.bf16 %v723_v22  ;;  %v727_v39 = vld [vmem:[%s872_s30 + $0x38] sm:$0xff]  }
  0x13   : > { %v279_v12 = vmul.f32 %v691_v6, %v881_v5  ;;  %v280_v13 = vmul.f32 %v692_v7, %v881_v5  ;;  %v281_v20 = vmul.f32 %v695_v11, %v881_v5  ;;  %751 = vmatpush3.bf16.msra.mxu0 %v803_v3  ;;  %787 = vmatpush3.bf16.msra.mxu1 %v803_v3  ;;  %v704_v33 = vunpack.c.h.bf16 %v723_v22 }
  0x14   : > { %v282_v26 = vmul.f32 %v696_v14, %v881_v5  ;;  %752 = vmatprep.subr.bf16.mxu0 %v804_v16  ;;  %780 = vmatprep.subr.bf16.mxu1 %v804_v16  ;;  %v283_v29 = vmul.f32 %v699_v17, %v881_v5  ;;  %v708_v34 = vunpack.c.h.bf16 %v724_v15  ;;  %v284_v36 = vmul.f32 %v700_v21, %v881_v5 }
  0x15   : > { %v302_v18 = vadd.f32 %v888_v10, %v279_v12  ;;  %v303_v19 = vadd.f32 %v888_v10, %v280_v13  ;;  %v304_v35 = vadd.f32 %v888_v10, %v281_v20  ;;  %v287_v37 = vmul.f32 %v707_v23, %v881_v5 }
  0x16   : > { %v711_v38 = vunpack.c.l.bf16 %v725_v27  ;;  %v305_v40 = vadd.f32 %v888_v10, %v282_v26  ;;  %v288_v41 = vmul.f32 %v708_v34, %v881_v5  ;;  %v712_v42 = vunpack.c.h.bf16 %v725_v27 }
  0x17   : > { %v318_v24 = vmax.f32 %v302_v18, 0.0  ;;  %v319_v25 = vmax.f32 %v303_v19, 0.0  ;;  %753 = vmatpush3.bf16.msra.mxu0 %v804_v16  ;;  %788 = vmatpush3.bf16.msra.mxu1 %v804_v16  ;;  %v715_v43 = vunpack.c.l.bf16 %v726_v30  ;;  %v306_v45 = vadd.f32 %v888_v10, %v283_v29 }
  0x18   : > { %754 = vmatprep.subr.bf16.mxu0 %v805_v28  ;;  %v310_v46 = vadd.f32 %v888_v10, %v287_v37  ;;  %v289_v47 = vmul.f32 %v711_v38, %v881_v5  ;;  %v716_v48 = vunpack.c.h.bf16 %v726_v30  ;;  %781 = vmatprep.subr.bf16.mxu1 %v805_v28  ;;  %v311_v49 = vadd.f32 %v888_v10, %v288_v41 }
  0x19   : > { %v334_v31 = vpack.c.bf16 %v319_v25, %v318_v24  ;;  %v290_v50 = vmul.f32 %v712_v42, %v881_v5  ;;  %v291_v51 = vmul.f32 %v715_v43, %v881_v5  ;;  %v719_v52 = vunpack.c.l.bf16 %v727_v39 }
  0x1a   : > { %v326_v53 = vmax.f32 %v310_v46, 0.0  ;;  %v312_v54 = vadd.f32 %v888_v10, %v289_v47  ;;  %v292_v55 = vmul.f32 %v716_v48, %v881_v5  ;;  %v720_v56 = vunpack.c.h.bf16 %v727_v39 }
  0x1b   : > { %760 = vmatprep.mubr.bf16.mxu0 %v334_v31  ;;  %755 = vmatpush3.bf16.msra.mxu0 %v805_v28  ;;  %v307_v57 = vadd.f32 %v888_v10, %v284_v36  ;;  %v327_v58 = vmax.f32 %v311_v49, 0.0  ;;  %v313_v59 = vadd.f32 %v888_v10, %v290_v50  ;;  %v314_v60 = vadd.f32 %v888_v10, %v291_v51 }
  0x1c   : > { %789 = vmatpush3.bf16.msra.mxu1 %v805_v28  ;;  %756 = vmatprep.subr.bf16.mxu0 %v806_v44  ;;  %v285_v62 = vmul.f32 %v703_v32, %v881_v5  ;;  %v315_v63 = vadd.f32 %v888_v10, %v292_v55  ;;  %v320_v0 = vmax.f32 %v304_v35, 0.0  ;;  %v321_v1 = vmax.f32 %v305_v40, 0.0 }
  0x1d   : > { %782 = vmatprep.subr.bf16.mxu1 %v806_v44  ;;  %v286_v2 = vmul.f32 %v704_v33, %v881_v5  ;;  %v338_v3 = vpack.c.bf16 %v327_v58, %v326_v53  ;;  %v328_v4 = vmax.f32 %v312_v54, 0.0  ;;  %v329_v6 = vmax.f32 %v313_v59, 0.0 }
  0x1e   : > { %v293_v7 = vmul.f32 %v719_v52, %v881_v5  ;;  %v294_v8 = vmul.f32 %v720_v56, %v881_v5  ;;  %v322_v9 = vmax.f32 %v306_v45, 0.0  ;;  %v323_v11 = vmax.f32 %v307_v57, 0.0 }
  0x1f   : > { %757 = vmatpush3.bf16.msra.mxu0 %v806_v44  ;;  %v330_v12 = vmax.f32 %v314_v60, 0.0  ;;  %v331_v13 = vmax.f32 %v315_v63, 0.0  ;;  %v308_v14 = vadd.f32 %v888_v10, %v285_v62  ;;  %v309_v15 = vadd.f32 %v888_v10, %v286_v2  ;;  %768 = vmatprep.mubr.bf16.mxu1 %v338_v3 }
  0x20   : > { %790 = vmatpush3.bf16.msra.mxu1 %v806_v44  ;;  %758 = vmatprep.subr.bf16.mxu0 %v807_v61  ;;  %v335_v16 = vpack.c.bf16 %v321_v1, %v320_v0  ;;  %v339_v17 = vpack.c.bf16 %v329_v6, %v328_v4  ;;  %v316_v18 = vadd.f32 %v888_v10, %v293_v7 }
  0x21   : > { %783 = vmatprep.subr.bf16.mxu1 %v807_v61  ;;  %v317_v19 = vadd.f32 %v888_v10, %v294_v8  ;;  %v336_v5 = vpack.c.bf16 %v323_v11, %v322_v9  ;;  %v340_v20 = vpack.c.bf16 %v331_v13, %v330_v12  ;;  %v324_v21 = vmax.f32 %v308_v14, 0.0 }
  0x22   : > { %v325_v22 = vmax.f32 %v309_v15, 0.0  ;;  %v332_v23 = vmax.f32 %v316_v18, 0.0 }
  0x23   : > { %759 = vmatpush3.bf16.msra.mxu0 %v807_v61  ;;  %v333_v24 = vmax.f32 %v317_v19, 0.0 }
  0x24   : > { %791 = vmatpush3.bf16.msra.mxu1 %v807_v61  ;;  %v337_v25 = vpack.c.bf16 %v325_v22, %v324_v21 }
  0x25   : > { %v341_v26 = vpack.c.bf16 %v333_v24, %v332_v23 }
  0x26   : > { %761 = vmatmul.mubr.bf16.vlgmr.msra.gmra.mrb[0].mxu0 %v335_v16 }
  0x27   : > { %769 = vmatmul.mubr.bf16.vlgmr.msra.gmra.mrb[0].mxu1 %v339_v17  ;;  %764 = vmatprep.mubr.bf16.mxu0 %v336_v5 }
  0x28   : > { %772 = vmatprep.mubr.bf16.mxu1 %v340_v20 }
  0x2e   : > { %765 = vmatmul.mubr.bf16.gmra.mrb[4].mxu0 %v337_v25 }
  0x2f   : > { %773 = vmatmul.mubr.bf16.gmra.mrb[4].mxu1 %v341_v26 }
  0xf9   : > { %v762_v10 = vpop.f32.mrb[0].mxu0 }
  0xfa   : > { %v770_v27 = vpop.f32.mrb[0].mxu1  ;;  %505 = vst [vmem:[%s943_s26 + $0x10] sm:$0xff] %v762_v10  ;;  %v440_v28 = vpop.f32.mrb[1].mxu0  ;;  %v542_v37 = vmul.f32 %v762_v10, %v762_v10 }
  0xfb   : > { %513 = vst [vmem:[%s943_s26 + $0x50] sm:$0xff] %v770_v27  ;;  %v472_v29 = vpop.f32.mrb[1].mxu1  ;;  %503 = vst [vmem:[%s943_s26] sm:$0xff] %v440_v28  ;;  %v763_v30 = vpop.f32.mrb[2].mxu0  ;;  %v540_v34 = vmul.f32 %v440_v28, %v440_v28  ;;  %v550_v6 = vmul.f32 %v770_v27, %v770_v27 }
  0xfc   : > { %511 = vst [vmem:[%s943_s26 + $0x40] sm:$0xff] %v472_v29  ;;  %v771_v31 = vpop.f32.mrb[2].mxu1  ;;  %506 = vst [vmem:[%s943_s26 + $0x18] sm:$0xff] %v763_v30  ;;  %v443_v32 = vpop.f32.mrb[3].mxu0  ;;  %v543_v40 = vmul.f32 %v763_v30, %v763_v30  ;;  %v548_v63 = vmul.f32 %v472_v29, %v472_v29 }
  0xfd   : > { %514 = vst [vmem:[%s943_s26 + $0x58] sm:$0xff] %v771_v31  ;;  %v475_v33 = vpop.f32.mrb[3].mxu1  ;;  %504 = vst [vmem:[%s943_s26 + $0x8] sm:$0xff] %v443_v32  ;;  %v519_v35 = vadd.f32 %v443_v32, %v440_v28  ;;  %v541_v36 = vmul.f32 %v443_v32, %v443_v32  ;;  %v551_v9 = vmul.f32 %v771_v31, %v771_v31 }
  0xfe   : > { %512 = vst [vmem:[%s943_s26 + $0x48] sm:$0xff] %v475_v33  ;;  %v549_v4 = vmul.f32 %v475_v33, %v475_v33 }
  0xff   : > { %v520_v38 = vadd.f32 %v762_v10, %v519_v35  ;;  %v556_v39 = vadd.f32 %v541_v36, %v540_v34 }
 0x101   : > { %v557_v41 = vadd.f32 %v556_v39, %v542_v37  ;;  %v766_v42 = vpop.f32.mrb[4].mxu0  ;;  %v521_v43 = vadd.f32 %v763_v30, %v520_v38 }
 0x102   : > { %v774_v44 = vpop.f32.mrb[4].mxu1  ;;  %509 = vst [vmem:[%s943_s26 + $0x30] sm:$0xff] %v766_v42  ;;  %v456_v45 = vpop.f32.mrb[5].mxu0  ;;  %v546_v57 = vmul.f32 %v766_v42, %v766_v42 }
 0x103   : > { %517 = vst [vmem:[%s943_s26 + $0x70] sm:$0xff] %v774_v44  ;;  %v488_v46 = vpop.f32.mrb[5].mxu1  ;;  %507 = vst [vmem:[%s943_s26 + $0x20] sm:$0xff] %v456_v45  ;;  %v522_v47 = vadd.f32 %v521_v43, %v456_v45  ;;  %v544_v48 = vmul.f32 %v456_v45, %v456_v45  ;;  %v558_v49 = vadd.f32 %v557_v41, %v543_v40  ;;  %v767_v50 = vpop.f32.mrb[6].mxu0 }
 0x104   : > { %515 = vst [vmem:[%s943_s26 + $0x60] sm:$0xff] %v488_v46  ;;  %v775_v51 = vpop.f32.mrb[6].mxu1  ;;  %510 = vst [vmem:[%s943_s26 + $0x38] sm:$0xff] %v767_v50  ;;  %v459_v52 = vpop.f32.mrb[7].mxu0  ;;  %v547_v60 = vmul.f32 %v767_v50, %v767_v50  ;;  %v552_v13 = vmul.f32 %v488_v46, %v488_v46  ;;  %v554_v19 = vmul.f32 %v774_v44, %v774_v44 }
 0x105   : > { %518 = vst [vmem:[%s943_s26 + $0x78] sm:$0xff] %v775_v51  ;;  %v491_v53 = vpop.f32.mrb[7].mxu1  ;;  %v559_v54 = vadd.f32 %v558_v49, %v544_v48  ;;  %508 = vst [vmem:[%s943_s26 + $0x28] sm:$0xff] %v459_v52  ;;  %v523_v55 = vadd.f32 %v522_v47, %v459_v52  ;;  %v545_v56 = vmul.f32 %v459_v52, %v459_v52 }
 0x106   : > { %516 = vst [vmem:[%s943_s26 + $0x68] sm:$0xff] %v491_v53  ;;  %v553_v18 = vmul.f32 %v491_v53, %v491_v53  ;;  %v555_v21 = vmul.f32 %v775_v51, %v775_v51 }
 0x107   : > { %v524_v58 = vadd.f32 %v766_v42, %v523_v55  ;;  %v560_v59 = vadd.f32 %v559_v54, %v545_v56 }
 0x109   : > { %v561_v61 = vadd.f32 %v560_v59, %v546_v57  ;;  %v525_v62 = vadd.f32 %v767_v50, %v524_v58 }
 0x10b   : > { %v526_v0 = vadd.f32 %v525_v62, %v472_v29  ;;  %v562_v1 = vadd.f32 %v561_v61, %v547_v60 }
 0x10d   : > { %v563_v2 = vadd.f32 %v562_v1, %v548_v63  ;;  %v527_v3 = vadd.f32 %v526_v0, %v475_v33 }
 0x10f   : > { %v528_v7 = vadd.f32 %v770_v27, %v527_v3  ;;  %v564_v8 = vadd.f32 %v563_v2, %v549_v4 }
 0x111   : > { %v565_v11 = vadd.f32 %v564_v8, %v550_v6  ;;  %v529_v12 = vadd.f32 %v771_v31, %v528_v7 }
 0x113   : > { %v530_v14 = vadd.f32 %v529_v12, %v488_v46  ;;  %v566_v15 = vadd.f32 %v565_v11, %v551_v9 }
 0x115   : > { %v567_v16 = vadd.f32 %v566_v15, %v552_v13  ;;  %v531_v17 = vadd.f32 %v530_v14, %v491_v53 }
 0x117   : > { %v532_v5 = vadd.f32 %v774_v44, %v531_v17  ;;  %v568_v20 = vadd.f32 %v567_v16, %v553_v18 }
 0x119   : > { %v533_v22 = vadd.f32 %v775_v51, %v532_v5  ;;  %v569_v23 = vadd.f32 %v568_v20, %v554_v19 }
 0x11b   : > { %v534_v24 = vrot.slane %v533_v22, 4  ;;  %v570_v25 = vadd.f32 %v569_v23, %v555_v21 }
 0x11d   : > { %v535_v26 = vadd.f32 %v534_v24, %v533_v22  ;;  %v571_v10 = vrot.slane %v570_v25, 4 }
 0x11f   : > { %v536_v27 = vrot.slane %v535_v26, 2  ;;  %v572_v28 = vadd.f32 %v571_v10, %v570_v25 }
 0x121   : > { %v537_v29 = vadd.f32 %v536_v27, %v535_v26  ;;  %v573_v30 = vrot.slane %v572_v28, 2 }
 0x123   : > { %v538_v31 = vrot.slane %v537_v29, 1  ;;  %v574_v32 = vadd.f32 %v573_v30, %v572_v28 }
 0x125   : > { %v575_v33 = vrot.slane %v574_v32, 1  ;;  %v539_v34 = vadd.f32 %v538_v31, %v537_v29 }
 0x127   : > { %v576_v35 = vadd.f32 %v575_v33, %v574_v32 }
 0x129   : > { %v578_v36 = vsel %vm577_vm0, %v539_v34, %v576_v35 }
 0x12a   : > { %579 = vst [vmem:[%s238_s29] sm:$0x3] %v578_v36 }
 0x12b PF: > { %s16_s18 = sadd.s32 1, %s814_s18  }
 0x12c   : > { %p13_p5 = scmp.ge.s32.totalorder %s16_s18, 6  }
 0x12e   :  { %15 = sbr.rel (!%p13_p5) target bundleno = 1 (0x1), region = 78 }

// kernel: _lambda_.7
= control target key start
LH: loop header
LB: loop body
LE: loop exit
PB: predicated region body
PF: predicated region fallthrough
CT: control target
= control target key end

     0   :  { %s473_s15 = smov 0   ;;  %s558_s0 = inlined_call_operand.vmem [shape: f32[512,128], index: 0, kind: input, shape index: {}, may-alias: {0,4}]   ;;  %s559_s1 = inlined_call_operand.vmem [shape: f32[512,128], index: 1, kind: input, shape index: {}]   ;;  %s560_s2 = inlined_call_operand.vmem [shape: f32[1,128], index: 2, kind: input, shape index: {}]   ;;  %s561_s3 = inlined_call_operand.vmem [shape: f32[1,128], index: 3, kind: input, shape index: {}]   ;;  %s562_s4 = inlined_call_operand.vmem [shape: f32[512,128], index: 4, kind: output, shape index: {}, may-alias: {0,4}]  }
   0x1 LB: > { %s417_s16 = sadd.s32 4294967295, %s446_s15   ;;  %p421_p0 = scmp.ge.s32.totalorder %s446_s15, 1  ;;  %s446_s15 = sphi %s473_s15, %s14_s15  }
   0x2   : > { %p174_p1 = scmp.lt.s32.totalorder %s446_s15, 5 }
   0x4   : > { %p175_p2 = pnand %p421_p0, %p174_p1 }
   0x5   : > { %s422_s17 = sshll.u32 (!%p175_p2), %s417_s16, 4  ;;  %v428_v0 = vld [vmem:[%s560_s2] ss:$0 sm:$0xff] (!%p175_p2) }
   0x6   : > { %178 = sbr.rel (%p175_p2) target bundleno = 39 (0x27), region = 36  ;;  %p206_p3 = scmp.lt.s32.totalorder (!%p175_p2), %s422_s17, 63  ;;  %v429_v1 = vld [vmem:[%s561_s3] ss:$0 sm:$0xff] (!%p175_p2) }
   0xd   : > { %s564_s17 = smov (!%p206_p3, %s422_s17), 63 }
   0xe   : > { %s481_s18 = sshll.u32 %s564_s17, 3 }
   0xf   : > { %s490_s23 = scalar_lea.vmem %s558_s0, %s481_s18  ;;  %s505_s28 = scalar_lea.vmem %s559_s1, %s481_s18 }
  0x10   : > { %v223_v2 = vld [vmem:[%s490_s23] sm:$0xff]  ;;  %v224_v3 = vld [vmem:[%s490_s23 + $0x8] sm:$0xff]  ;;  %v225_v4 = vld [vmem:[%s490_s23 + $0x10] sm:$0xff]  ;;  %s537_s5 = scalar_lea.vmem %s562_s4, %s481_s18 }
  0x11   : > { %v226_v5 = vld [vmem:[%s490_s23 + $0x18] sm:$0xff]  ;;  %v227_v6 = vld [vmem:[%s490_s23 + $0x20] sm:$0xff]  ;;  %v228_v7 = vld [vmem:[%s490_s23 + $0x28] sm:$0xff]  ;;  %v246_v8 = vmul.f32 %v428_v0, %v223_v2  ;;  %v247_v9 = vmul.f32 %v428_v0, %v224_v3  ;;  %v248_v10 = vmul.f32 %v428_v0, %v225_v4 }
  0x12   : > { %v229_v11 = vld [vmem:[%s490_s23 + $0x30] sm:$0xff]  ;;  %v230_v12 = vld [vmem:[%s490_s23 + $0x38] sm:$0xff]  ;;  %v231_v13 = vld [vmem:[%s490_s23 + $0x40] sm:$0xff]  ;;  %v249_v14 = vmul.f32 %v428_v0, %v226_v5  ;;  %v250_v15 = vmul.f32 %v428_v0, %v227_v6  ;;  %v251_v16 = vmul.f32 %v428_v0, %v228_v7 }
  0x13   : > { %v232_v17 = vld [vmem:[%s490_s23 + $0x48] sm:$0xff]  ;;  %v233_v18 = vld [vmem:[%s490_s23 + $0x50] sm:$0xff]  ;;  %v234_v19 = vld [vmem:[%s490_s23 + $0x58] sm:$0xff]  ;;  %v252_v20 = vmul.f32 %v428_v0, %v229_v11  ;;  %v253_v21 = vmul.f32 %v428_v0, %v230_v12  ;;  %v254_v22 = vmul.f32 %v428_v0, %v231_v13  ;;  %v269_v23 = vadd.f32 %v429_v1, %v246_v8 }
  0x14   : > { %v235_v24 = vld [vmem:[%s490_s23 + $0x60] sm:$0xff]  ;;  %v236_v25 = vld [vmem:[%s490_s23 + $0x68] sm:$0xff]  ;;  %v237_v26 = vld [vmem:[%s490_s23 + $0x70] sm:$0xff]  ;;  %v255_v27 = vmul.f32 %v428_v0, %v232_v17  ;;  %v256_v28 = vmul.f32 %v428_v0, %v233_v18  ;;  %v257_v29 = vmul.f32 %v428_v0, %v234_v19  ;;  %v270_v30 = vadd.f32 %v429_v1, %v247_v9 }
  0x15   : > { %v238_v31 = vld [vmem:[%s490_s23 + $0x78] sm:$0xff]  ;;  %v258_v32 = vmul.f32 %v428_v0, %v235_v24  ;;  %v259_v33 = vmul.f32 %v428_v0, %v236_v25  ;;  %v260_v34 = vmul.f32 %v428_v0, %v237_v26  ;;  %v271_v35 = vadd.f32 %v429_v1, %v248_v10  ;;  %v285_v36 = vld [vmem:[%s505_s28] sm:$0xff]  ;;  %v286_v37 = vld [vmem:[%s505_s28 + $0x8] sm:$0xff] }
  0x16   : > { %v261_v38 = vmul.f32 %v428_v0, %v238_v31  ;;  %v272_v39 = vadd.f32 %v429_v1, %v249_v14  ;;  %v273_v40 = vadd.f32 %v429_v1, %v250_v15  ;;  %v274_v41 = vadd.f32 %v429_v1, %v251_v16  ;;  %v287_v42 = vld [vmem:[%s505_s28 + $0x10] sm:$0xff]  ;;  %v288_v43 = vld [vmem:[%s505_s28 + $0x18] sm:$0xff]  ;;  %v289_v44 = vld [vmem:[%s505_s28 + $0x20] sm:$0xff] }
  0x17   : > { %v275_v45 = vadd.f32 %v429_v1, %v252_v20  ;;  %v276_v46 = vadd.f32 %v429_v1, %v253_v21  ;;  %v277_v47 = vadd.f32 %v429_v1, %v254_v22  ;;  %v278_v48 = vadd.f32 %v429_v1, %v255_v27  ;;  %v290_v49 = vld [vmem:[%s505_s28 + $0x28] sm:$0xff]  ;;  %v291_v50 = vld [vmem:[%s505_s28 + $0x30] sm:$0xff]  ;;  %v292_v51 = vld [vmem:[%s505_s28 + $0x38] sm:$0xff] }
  0x18   : > { %v279_v52 = vadd.f32 %v429_v1, %v256_v28  ;;  %v280_v53 = vadd.f32 %v429_v1, %v257_v29  ;;  %v281_v54 = vadd.f32 %v429_v1, %v258_v32  ;;  %v282_v55 = vadd.f32 %v429_v1, %v259_v33  ;;  %v293_v56 = vld [vmem:[%s505_s28 + $0x40] sm:$0xff]  ;;  %v294_v57 = vld [vmem:[%s505_s28 + $0x48] sm:$0xff]  ;;  %v295_v58 = vld [vmem:[%s505_s28 + $0x50] sm:$0xff] }
  0x19   : > { %v283_v59 = vadd.f32 %v429_v1, %v260_v34  ;;  %v284_v60 = vadd.f32 %v429_v1, %v261_v38  ;;  %v296_v61 = vld [vmem:[%s505_s28 + $0x58] sm:$0xff]  ;;  %v297_v62 = vld [vmem:[%s505_s28 + $0x60] sm:$0xff]  ;;  %v298_v63 = vld [vmem:[%s505_s28 + $0x68] sm:$0xff]  ;;  %v301_v0 = vadd.f32 %v285_v36, %v269_v23  ;;  %v302_v2 = vadd.f32 %v286_v37, %v270_v30 }
  0x1a   : > { %v299_v3 = vld [vmem:[%s505_s28 + $0x70] sm:$0xff]  ;;  %v300_v4 = vld [vmem:[%s505_s28 + $0x78] sm:$0xff]  ;;  %v303_v5 = vadd.f32 %v287_v42, %v271_v35  ;;  %v304_v6 = vadd.f32 %v288_v43, %v272_v39  ;;  %v305_v7 = vadd.f32 %v289_v44, %v273_v40  ;;  %v306_v8 = vadd.f32 %v290_v49, %v274_v41 }
  0x1b   : > { %v307_v9 = vadd.f32 %v291_v50, %v275_v45  ;;  %v308_v10 = vadd.f32 %v292_v51, %v276_v46  ;;  %v309_v11 = vadd.f32 %v293_v56, %v277_v47  ;;  %v310_v12 = vadd.f32 %v294_v57, %v278_v48 }
  0x1c   : > { %v311_v1 = vadd.f32 %v295_v58, %v279_v52  ;;  %v312_v13 = vadd.f32 %v296_v61, %v280_v53  ;;  %v313_v14 = vadd.f32 %v297_v62, %v281_v54  ;;  %v314_v15 = vadd.f32 %v298_v63, %v282_v55 }
  0x1d   : > { %v315_v16 = vadd.f32 %v299_v3, %v283_v59  ;;  %v316_v17 = vadd.f32 %v300_v4, %v284_v60  ;;  %v317_v18 = vmax.f32 %v301_v0, 0.0  ;;  %v318_v19 = vmax.f32 %v302_v2, 0.0 }
  0x1e   : > { %v319_v20 = vmax.f32 %v303_v5, 0.0  ;;  %v320_v21 = vmax.f32 %v304_v6, 0.0  ;;  %v321_v22 = vmax.f32 %v305_v7, 0.0  ;;  %v322_v23 = vmax.f32 %v306_v8, 0.0 }
  0x1f   : > { %v323_v24 = vmax.f32 %v307_v9, 0.0  ;;  %v324_v25 = vmax.f32 %v308_v10, 0.0  ;;  %v325_v26 = vmax.f32 %v309_v11, 0.0  ;;  %v326_v27 = vmax.f32 %v310_v12, 0.0  ;;  %333 = vst [vmem:[%s537_s5] sm:$0xff] %v317_v18  ;;  %334 = vst [vmem:[%s537_s5 + $0x8] sm:$0xff] %v318_v19 }
  0x20   : > { %v327_v28 = vmax.f32 %v311_v1, 0.0  ;;  %v328_v29 = vmax.f32 %v312_v13, 0.0  ;;  %v329_v30 = vmax.f32 %v313_v14, 0.0  ;;  %v330_v31 = vmax.f32 %v314_v15, 0.0  ;;  %335 = vst [vmem:[%s537_s5 + $0x10] sm:$0xff] %v319_v20  ;;  %336 = vst [vmem:[%s537_s5 + $0x18] sm:$0xff] %v320_v21 }
  0x21   : > { %337 = vst [vmem:[%s537_s5 + $0x20] sm:$0xff] %v321_v22  ;;  %338 = vst [vmem:[%s537_s5 + $0x28] sm:$0xff] %v322_v23  ;;  %v331_v32 = vmax.f32 %v315_v16, 0.0  ;;  %v332_v33 = vmax.f32 %v316_v17, 0.0 }
  0x22   : > { %339 = vst [vmem:[%s537_s5 + $0x30] sm:$0xff] %v323_v24  ;;  %340 = vst [vmem:[%s537_s5 + $0x38] sm:$0xff] %v324_v25 }
  0x23   : > { %341 = vst [vmem:[%s537_s5 + $0x40] sm:$0xff] %v325_v26  ;;  %342 = vst [vmem:[%s537_s5 + $0x48] sm:$0xff] %v326_v27 }
  0x24   : > { %343 = vst [vmem:[%s537_s5 + $0x50] sm:$0xff] %v327_v28  ;;  %344 = vst [vmem:[%s537_s5 + $0x58] sm:$0xff] %v328_v29 }
  0x25   : > { %345 = vst [vmem:[%s537_s5 + $0x60] sm:$0xff] %v329_v30  ;;  %346 = vst [vmem:[%s537_s5 + $0x68] sm:$0xff] %v330_v31 }
  0x26   : > { %347 = vst [vmem:[%s537_s5 + $0x70] sm:$0xff] %v331_v32  ;;  %348 = vst [vmem:[%s537_s5 + $0x78] sm:$0xff] %v332_v33 }
  0x27 PF: > { %s14_s15 = sadd.s32 1, %s446_s15  }
  0x28   : > { %p11_p4 = scmp.ge.s32.totalorder %s14_s15, 6  }
  0x2a   :  { %13 = sbr.rel (!%p11_p4) target bundleno = 1 (0x1), region = 69 }

// kernel: _lambda_.5
= control target key start
LH: loop header
LB: loop body
LE: loop exit
PB: predicated region body
PF: predicated region fallthrough
CT: control target
= control target key end

     0   :  { %s6748_s21 = smov 0   ;;  %s9414_s0 = inlined_call_operand.vmem [shape: bf16[512,128], index: 0, kind: input, shape index: {}]   ;;  %s9415_s1 = inlined_call_operand.vmem [shape: f32[1,128], index: 1, kind: input, shape index: {}]   ;;  %s9416_s2 = inlined_call_operand.vmem [shape: f32[1,128], index: 2, kind: input, shape index: {}]   ;;  %s9417_s3 = inlined_call_operand.vmem [shape: bf16[9,128,128], index: 3, kind: input, shape index: {}]   ;;  %s9418_s4 = inlined_call_operand.vmem [shape: f32[256,4], index: 4, kind: input, shape index: {}]   ;;  %s9419_s5 = inlined_call_operand.vmem [shape: bf16[512,128], index: 5, kind: output, shape index: {0}]   ;;  %s9420_s6 = inlined_call_operand.vmem [shape: f32[2,2,128], index: 6, kind: output, shape index: {1}]  }
   0x1 LB: > { %s6754_s22 = sadd.s32 4294967295, %s6704_s21   ;;  %p5158_p0 = scmp.ge.s32.totalorder %s6704_s21, 1  ;;  %s6704_s21 = sphi %s6748_s21, %s17_s21  }
   0x2   : > { %p216_p1 = scmp.lt.s32.totalorder %s6704_s21, 3 }
   0x4   : > { %p217_p2 = pnand %p5158_p0, %p216_p1 }
   0x6   : > { %220 = sbr.rel (%p217_p2) target bundleno = 1346 (0x542), region = 40 }
   0xd   : > { %v6761_v0 = vld [vmem:[%s9418_s4] sm:$0xff]  ;;  %v6766_v1 = vld [vmem:[%s9418_s4 + $0x10] sm:$0xff]  ;;  %s6706_s27 = smov 126   ;;  %v6775_v2 = vld [vmem:[%s9418_s4 + $0x8] sm:$0xff]  ;;  %v9421_v3 = vmov 0   ;;  %v6708_v7 = vmov 2  }
   0xe   : > { %572 = vrot.lane.b32.xlu0 %v6761_v0, %s6706_s27  ;;  %576 = vrot.lane.b32.xlu1 %v6766_v1, %s6706_s27  ;;  %v6783_v4 = vld [vmem:[%s9418_s4 + $0x18] sm:$0xff]  ;;  %v6788_v5 = vld [vmem:[%s9418_s4 + $0x20] sm:$0xff]  ;;  %s5159_s24 = sshll.u32 %s6754_s22, 5  ;;  %s6711_s10 = smov 125   ;;  %vm5064_vm2 = vcmask 1040384  }
   0xf   : > { %6541 = vset.pattern.permute.xlu1 %v9421_v3  ;;  %v6795_v6 = vld [vmem:[%s9418_s4 + $0x28] sm:$0xff]  ;;  %6543 = vset.pattern.permute.xlu0 %v6708_v7  ;;  %v6803_v8 = vld [vmem:[%s9418_s4 + $0x30] sm:$0xff]  ;;  %v6810_v9 = vld [vmem:[%s9418_s4 + $0x38] sm:$0xff]  ;;  %p251_p3 = scmp.lt.s32.totalorder %s5159_s24, 63  ;;  %p262_p4 = scmp.lt.s32.totalorder %s6754_s22, 1 }
  0x10   : > { %v6815_v10 = vld [vmem:[%s9418_s4 + $0x40] sm:$0xff]  ;;  %v6822_v11 = vld [vmem:[%s9418_s4 + $0x48] sm:$0xff]  ;;  %v6829_v12 = vld [vmem:[%s9418_s4 + $0x50] sm:$0xff] }
  0x11   : > { %v6836_v13 = vld [vmem:[%s9418_s4 + $0x58] sm:$0xff]  ;;  %v6843_v14 = vld [vmem:[%s9418_s4 + $0x60] sm:$0xff]  ;;  %v6850_v15 = vld [vmem:[%s9418_s4 + $0x68] sm:$0xff]  ;;  %s10077_s24 = smov (!%p251_p3, %s5159_s24), 63  ;;  %s10079_s22 = smov (!%p262_p4, %s6754_s22), 1 }
  0x12   : > { %574 = vrot.lane.b32.xlu0 %v6775_v2, %s6706_s27  ;;  %578 = vrot.lane.b32.xlu1 %v6783_v4, %s6706_s27  ;;  %v6857_v16 = vld [vmem:[%s9418_s4 + $0x70] sm:$0xff]  ;;  %v6864_v17 = vld [vmem:[%s9418_s4 + $0x78] sm:$0xff]  ;;  %s5160_s28 = sshll.u32 %s10077_s24, 2  ;;  %s5163_s24 = sshll.u32 %s10079_s22, 1 }
  0x13   : > { %v6871_v18 = vld [vmem:[%s9418_s4 + $0x80] sm:$0xff]  ;;  %v6878_v19 = vld [vmem:[%s9418_s4 + $0x88] sm:$0xff]  ;;  %v6885_v20 = vld [vmem:[%s9418_s4 + $0x90] sm:$0xff]  ;;  %s7084_s7 = scalar_lea.vmem %s9414_s0, %s5160_s28  ;;  %s9359_s26 = scalar_lea.vmem %s9419_s5, %s5160_s28 }
  0x14   : > { %v6892_v21 = vld [vmem:[%s9418_s4 + $0x98] sm:$0xff]  ;;  %v6899_v22 = vld [vmem:[%s9418_s4 + $0xa0] sm:$0xff]  ;;  %v6906_v23 = vld [vmem:[%s9418_s4 + $0xa8] sm:$0xff]  ;;  %s265_s30 = scalar_lea.vmem %s9420_s6, %s5163_s24 }
  0x15   : > { %v6913_v24 = vld [vmem:[%s9418_s4 + $0xb0] sm:$0xff]  ;;  %v6920_v25 = vld [vmem:[%s9418_s4 + $0xb8] sm:$0xff]  ;;  %v6927_v26 = vld [vmem:[%s9418_s4 + $0xc0] sm:$0xff] }
  0x16   : > { %580 = vrot.lane.b32.xlu0 %v6788_v5, %s6706_s27  ;;  %582 = vrot.lane.b32.xlu1 %v6795_v6, %s6706_s27  ;;  %v6934_v27 = vld [vmem:[%s9418_s4 + $0xc8] sm:$0xff]  ;;  %v6941_v28 = vld [vmem:[%s9418_s4 + $0xd0] sm:$0xff] }
  0x17   : > { %v6948_v29 = vld [vmem:[%s9418_s4 + $0xd8] sm:$0xff]  ;;  %v6955_v30 = vld [vmem:[%s9418_s4 + $0xe0] sm:$0xff]  ;;  %v6962_v31 = vld [vmem:[%s9418_s4 + $0xe8] sm:$0xff] }
  0x18   : > { %v6969_v32 = vld [vmem:[%s9418_s4 + $0xf0] sm:$0xff]  ;;  %v6978_v33 = vld [vmem:[%s9418_s4 + $0xf8] sm:$0xff]  ;;  %v6554_v61 = vld [vmem:[%s9417_s3 + $0x40] sm:$0xff]  }
  0x19   : > { %5822 = vmatprep.subr.bf16.mxu1 %v6554_v61 }
  0x1a   : > { %584 = vrot.lane.b32.xlu0 %v6803_v8, %s6706_s27  ;;  %586 = vrot.lane.b32.xlu1 %v6810_v9, %s6706_s27 }
  0x1b   : > { %5823 = vmatpush3.bf16.msra.mxu1 %v6554_v61 }
  0x1e   : > { %588 = vrot.lane.b32.xlu0 %v6815_v10, %s6706_s27  ;;  %590 = vrot.lane.b32.xlu1 %v6822_v11, %s6706_s27 }
  0x22   : > { %592 = vrot.lane.b32.xlu0 %v6829_v12, %s6706_s27  ;;  %594 = vrot.lane.b32.xlu1 %v6836_v13, %s6706_s27 }
  0x26   : > { %596 = vrot.lane.b32.xlu0 %v6843_v14, %s6706_s27  ;;  %598 = vrot.lane.b32.xlu1 %v6850_v15, %s6706_s27 }
  0x2a   : > { %600 = vrot.lane.b32.xlu0 %v6857_v16, %s6706_s27  ;;  %602 = vrot.lane.b32.xlu1 %v6864_v17, %s6706_s27 }
  0x2e   : > { %604 = vrot.lane.b32.xlu0 %v6871_v18, %s6706_s27  ;;  %606 = vrot.lane.b32.xlu1 %v6878_v19, %s6706_s27 }
  0x32   : > { %608 = vrot.lane.b32.xlu0 %v6885_v20, %s6706_s27  ;;  %610 = vrot.lane.b32.xlu1 %v6892_v21, %s6706_s27 }
  0x36   : > { %612 = vrot.lane.b32.xlu0 %v6899_v22, %s6706_s27  ;;  %614 = vrot.lane.b32.xlu1 %v6906_v23, %s6706_s27 }
  0x3a   : > { %616 = vrot.lane.b32.xlu0 %v6913_v24, %s6706_s27  ;;  %618 = vrot.lane.b32.xlu1 %v6920_v25, %s6706_s27 }
  0x3e   : > { %620 = vrot.lane.b32.xlu0 %v6927_v26, %s6706_s27  ;;  %622 = vrot.lane.b32.xlu1 %v6934_v27, %s6706_s27 }
  0x42   : > { %624 = vrot.lane.b32.xlu0 %v6941_v28, %s6706_s27  ;;  %626 = vrot.lane.b32.xlu1 %v6948_v29, %s6706_s27 }
  0x46   : > { %628 = vrot.lane.b32.xlu0 %v6955_v30, %s6706_s27  ;;  %630 = vrot.lane.b32.xlu1 %v6962_v31, %s6706_s27 }
  0x4a   : > { %632 = vrot.lane.b32.xlu0 %v6969_v32, %s6706_s27  ;;  %634 = vrot.lane.b32.xlu1 %v6978_v33, %s6706_s27  ;;  %s6709_s27 = smov 127  }
  0x4e   : > { %929 = vperm.xlu0 %6543, %v6775_v2  }
  0x52   : > { %941 = vperm.xlu0 %6543, %v6788_v5  }
  0x56   : > { %949 = vperm.xlu0 %6543, %v6803_v8  }
  0x5a   : > { %957 = vperm.xlu0 %6543, %v6815_v10  }
  0x5e   : > { %965 = vperm.xlu0 %6543, %v6829_v12  }
  0x62   : > { %973 = vperm.xlu0 %6543, %v6843_v14  }
  0x66   : > { %981 = vperm.xlu0 %6543, %v6857_v16  }
  0x6a   : > { %989 = vperm.xlu0 %6543, %v6871_v18  }
  0x6e   : > { %997 = vperm.xlu0 %6543, %v6885_v20  }
  0x72   : > { %1005 = vperm.xlu0 %6543, %v6899_v22  }
  0x76   : > { %1013 = vperm.xlu0 %6543, %v6913_v24  }
  0x7a   : > { %1021 = vperm.xlu0 %6543, %v6927_v26  }
  0x7e   : > { %1029 = vperm.xlu0 %6543, %v6941_v28  }
  0x80   : > { %v6997_v34 = vpop.permute.xlu0 %572  ;;  %v577_v36 = vpop.permute.xlu1 %576 }
  0x81   : > { %v7006_v38 = vmul.f32 %v577_v36, %v6766_v1  ;;  %v7104_v36 = vld [vmem:[%s9415_s1] ss:$0 sm:$0xff] }
  0x82   : > { %1037 = vperm.xlu0 %6543, %v6955_v30  }
  0x83   : > { %9625 = vst [vmem:[#allocation3_spill] sm:$0xff] %v7006_v38 }
  0x84   : > { %v575_v35 = vpop.permute.xlu0 %574  ;;  %v7057_v58 = vpop.permute.xlu1 %578 }
  0x85   : > { %v7001_v37 = vmul.f32 %v575_v35, %v6775_v2 }
  0x86   : > { %1045 = vperm.xlu0 %6543, %v6969_v32  }
  0x87   : > { %9624 = vst [vmem:[#allocation2_spill] sm:$0xff] %v7001_v37  ;;  %707 = vperm.xlu1 %6541, %v7001_v37  }
  0x88   : > { %v581_v39 = vpop.permute.xlu0 %580 }
  0x89   : > { %v7010_v40 = vmul.f32 %v581_v39, %v6788_v5  ;;  %v6556_v39 = vld [vmem:[%s9417_s3 + $0x50] sm:$0xff]  }
  0x8a   : > { %1600 = vrot.lane.b32.xlu0 %v6761_v0, %s6709_s27 }
  0x8b   : > { %712 = vperm.xlu1 %6541, %v7006_v38   ;;  %9626 = vst [vmem:[#allocation4_spill] sm:$0xff] %v7010_v40 }
  0x8c   : > { %v585_v41 = vpop.permute.xlu0 %584 }
  0x8d   : > { %v7014_v42 = vmul.f32 %v585_v41, %v6803_v8 }
  0x8e   : > { %1604 = vrot.lane.b32.xlu0 %v6766_v1, %s6709_s27 }
  0x8f   : > { %722 = vperm.xlu1 %6541, %v7010_v40   ;;  %9627 = vst [vmem:[#allocation5_spill] sm:$0xff] %v7014_v42 }
  0x90   : > { %v589_v43 = vpop.permute.xlu0 %588 }
  0x91   : > { %v7018_v44 = vmul.f32 %v589_v43, %v6815_v10 }
  0x92   : > { %1608 = vrot.lane.b32.xlu0 %v6788_v5, %s6709_s27  ;;  %v7075_v5 = vpop.permute.xlu1 %582 }
  0x93   : > { %732 = vperm.xlu1 %6541, %v7014_v42   ;;  %9628 = vst [vmem:[#allocation6_spill] sm:$0xff] %v7018_v44 }
  0x94   : > { %v593_v45 = vpop.permute.xlu0 %592 }
  0x95   : > { %v7022_v46 = vmul.f32 %v593_v45, %v6829_v12  ;;  %v7117_v45 = vld [vmem:[%s9416_s2] ss:$0 sm:$0xff] }
  0x96   : > { %1612 = vrot.lane.b32.xlu0 %v6803_v8, %s6709_s27  ;;  %v6555_v8 = vld [vmem:[%s9417_s3 + $0x48] sm:$0xff]   ;;  %v7099_v35 = vpop.permute.xlu1 %586 }
  0x97   : > { %742 = vperm.xlu1 %6541, %v7018_v44   ;;  %9629 = vst [vmem:[#allocation7_spill] sm:$0xff] %v7022_v46  ;;  %5824 = vmatprep.subr.bf16.mxu1 %v6555_v8 }
  0x98   : > { %v597_v47 = vpop.permute.xlu0 %596  ;;  %5825 = vmatpush3.bf16.msra.mxu1 %v6555_v8 }
  0x99   : > { %v7028_v48 = vmul.f32 %v597_v47, %v6843_v14  ;;  %5826 = vmatprep.subr.bf16.mxu1 %v6556_v39 }
  0x9a   : > { %1616 = vrot.lane.b32.xlu0 %v6815_v10, %s6709_s27 }
  0x9b   : > { %752 = vperm.xlu1 %6541, %v7022_v46   ;;  %9630 = vst [vmem:[#allocation8_spill] sm:$0xff] %v7028_v48 }
  0x9c   : > { %v601_v49 = vpop.permute.xlu0 %600  ;;  %5827 = vmatpush3.bf16.msra.mxu1 %v6556_v39 }
  0x9d   : > { %v7034_v50 = vmul.f32 %v601_v49, %v6857_v16  ;;  %v6557_v49 = vld [vmem:[%s9417_s3 + $0x58] sm:$0xff]  }
  0x9e   : > { %1620 = vrot.lane.b32.xlu0 %v6829_v12, %s6709_s27  ;;  %v7094_v12 = vld [vmem:[%s7084_s7 + $0x70] sm:$0xff]   ;;  %5828 = vmatprep.subr.bf16.mxu1 %v6557_v49 }
  0x9f   : > { %762 = vperm.xlu1 %6541, %v7028_v48   ;;  %9631 = vst [vmem:[#allocation9_spill] sm:$0xff] %v7034_v50 }
  0xa0   : > { %v605_v51 = vpop.permute.xlu0 %604  ;;  %5829 = vmatpush3.bf16.msra.mxu1 %v6557_v49 }
  0xa1   : > { %v7040_v52 = vmul.f32 %v605_v51, %v6871_v18 }
  0xa2   : > { %1624 = vrot.lane.b32.xlu0 %v6843_v14, %s6709_s27 }
  0xa3   : > { %772 = vperm.xlu1 %6541, %v7034_v50   ;;  %9632 = vst [vmem:[#allocation10_spill] sm:$0xff] %v7040_v52 }
  0xa4   : > { %v609_v53 = vpop.permute.xlu0 %608 }
  0xa5   : > { %v7046_v54 = vmul.f32 %v609_v53, %v6885_v20  ;;  %v7131_v53 = vpop.permute.xlu1 %590 }
  0xa6   : > { %1628 = vrot.lane.b32.xlu0 %v6857_v16, %s6709_s27  ;;  %v5490_v16 = vunpack.c.l.bf16 %v7094_v12 }
  0xa7   : > { %782 = vperm.xlu1 %6541, %v7040_v52   ;;  %9633 = vst [vmem:[#allocation11_spill] sm:$0xff] %v7046_v54 }
  0xa8   : > { %v613_v55 = vpop.permute.xlu0 %612 }
  0xa9   : > { %v7053_v56 = vmul.f32 %v613_v55, %v6899_v22  ;;  %v7141_v55 = vpop.permute.xlu1 %594 }
  0xaa   : > { %1632 = vrot.lane.b32.xlu0 %v6871_v18, %s6709_s27  ;;  %v366_v18 = vmul.f32 %v5490_v16, %v7104_v36 }
  0xab   : > { %792 = vperm.xlu1 %6541, %v7046_v54   ;;  %9634 = vst [vmem:[#allocation12_spill] sm:$0xff] %v7053_v56 }
  0xac   : > { %v617_v57 = vpop.permute.xlu0 %616  ;;  %v7122_v47 = vadd.f32 %v7117_v45, %v366_v18 }
  0xad   : > { %v7061_v59 = vmul.f32 %v617_v57, %v6913_v24  ;;  %v6559_v57 = vld [vmem:[%s9417_s3 + $0x68] sm:$0xff]  }
  0xae   : > { %1636 = vrot.lane.b32.xlu0 %v6885_v20, %s6709_s27  ;;  %v6558_v20 = vld [vmem:[%s9417_s3 + $0x60] sm:$0xff]  }
  0xaf   : > { %802 = vperm.xlu1 %6541, %v7053_v56   ;;  %9635 = vst [vmem:[#allocation13_spill] sm:$0xff] %v7061_v59  ;;  %5830 = vmatprep.subr.bf16.mxu1 %v6558_v20 }
  0xb0   : > { %v621_v60 = vpop.permute.xlu0 %620  ;;  %5831 = vmatpush3.bf16.msra.mxu1 %v6558_v20 }
  0xb1   : > { %v7072_v62 = vmul.f32 %v621_v60, %v6927_v26  ;;  %5832 = vmatprep.subr.bf16.mxu1 %v6559_v57 }
  0xb2   : > { %1640 = vrot.lane.b32.xlu0 %v6899_v22, %s6709_s27  ;;  %v6560_v22 = vld [vmem:[%s9417_s3 + $0x70] sm:$0xff]  }
  0xb3   : > { %812 = vperm.xlu1 %6541, %v7061_v59   ;;  %9636 = vst [vmem:[#allocation14_spill] sm:$0xff] %v7072_v62 }
  0xb4   : > { %v625_v63 = vpop.permute.xlu0 %624  ;;  %5833 = vmatpush3.bf16.msra.mxu1 %v6559_v57 }
  0xb5   : > { %v7091_v10 = vmul.f32 %v625_v63, %v6941_v28  ;;  %5834 = vmatprep.subr.bf16.mxu1 %v6560_v22 }
  0xb6   : > { %1644 = vrot.lane.b32.xlu0 %v6913_v24, %s6709_s27  ;;  %v7154_v24 = vpop.permute.xlu1 %598 }
  0xb7   : > { %822 = vperm.xlu1 %6541, %v7072_v62   ;;  %9637 = vst [vmem:[#allocation15_spill] sm:$0xff] %v7091_v10 }
  0xb8   : > { %v629_v14 = vpop.permute.xlu0 %628  ;;  %5835 = vmatpush3.bf16.msra.mxu1 %v6560_v22 }
  0xb9   : > { %v7111_v41 = vmul.f32 %v629_v14, %v6955_v30 }
  0xba   : > { %1648 = vrot.lane.b32.xlu0 %v6927_v26, %s6709_s27 }
  0xbb   : > { %832 = vperm.xlu1 %6541, %v7091_v10   ;;  %9638 = vst [vmem:[#allocation16_spill] sm:$0xff] %v7111_v41 }
  0xbc   : > { %v633_v43 = vpop.permute.xlu0 %632 }
  0xbd   : > { %v7129_v51 = vmul.f32 %v633_v43, %v6969_v32 }
  0xbe   : > { %1652 = vrot.lane.b32.xlu0 %v6941_v28, %s6709_s27 }
  0xbf   : > { %842 = vperm.xlu1 %6541, %v7111_v41   ;;  %9639 = vst [vmem:[#allocation17_spill] sm:$0xff] %v7129_v51 }
  0xc2   : > { %1656 = vrot.lane.b32.xlu0 %v6955_v30, %s6709_s27 }
  0xc3   : > { %852 = vperm.xlu1 %6541, %v7129_v51   ;;  %v5491_v51 = vunpack.c.h.bf16 %v7094_v12 }
  0xc5   : > { %v367_v62 = vmul.f32 %v5491_v51, %v7104_v36  ;;  %v9435_v51 = vmov 1  }
  0xc6   : > { %1660 = vrot.lane.b32.xlu0 %v6969_v32, %s6709_s27 }
  0xc7   : > { %6542 = vset.pattern.permute.xlu1 %v6708_v7  ;;  %v6561_v7 = vld [vmem:[%s9417_s3 + $0x78] sm:$0xff]   ;;  %v7228_v59 = vadd.f32 %v7117_v45, %v367_v62  ;;  %6544 = vset.pattern.permute.xlu0 %v9435_v51 }
  0xc8   : > { %925 = vperm.xlu1 %6542, %v6761_v0   ;;  %5836 = vmatprep.subr.bf16.mxu1 %v6561_v7 }
  0xc9   : > { %5837 = vmatpush3.bf16.msra.mxu1 %v6561_v7 }
  0xcc   : > { %933 = vperm.xlu1 %6542, %v6766_v1   ;;  %v7168_v1 = vpop.permute.xlu1 %602 }
  0xcd   : > { %v7156_v60 = vpop.permute.xlu0 %929 }
  0xd0   : > { %937 = vperm.xlu1 %6542, %v6783_v4   ;;  %v7176_v28 = vpop.permute.xlu1 %606 }
  0xd1   : > { %v7164_v26 = vpop.permute.xlu0 %941 }
  0xd4   : > { %945 = vperm.xlu1 %6542, %v6795_v6   ;;  %v7183_v30 = vpop.permute.xlu1 %610 }
  0xd5   : > { %v7171_v61 = vpop.permute.xlu0 %949 }
  0xd8   : > { %953 = vperm.xlu1 %6542, %v6810_v9   ;;  %v7188_v16 = vpop.permute.xlu1 %614 }
  0xd9   : > { %v7178_v63 = vpop.permute.xlu0 %957 }
  0xdc   : > { %961 = vperm.xlu1 %6542, %v6822_v11   ;;  %v7196_v18 = vpop.permute.xlu1 %618 }
  0xdd   : > { %v7181_v8 = vpop.permute.xlu0 %965  ;;  %9640 = vst [vmem:[#allocation18_spill] sm:$0xff] %v7196_v18 }
  0xe0   : > { %969 = vperm.xlu1 %6542, %v6836_v13   ;;  %v7201_v49 = vpop.permute.xlu1 %622 }
  0xe1   : > { %v7186_v14 = vpop.permute.xlu0 %973  ;;  %9641 = vst [vmem:[#allocation19_spill] sm:$0xff] %v7201_v49 }
  0xe4   : > { %977 = vperm.xlu1 %6542, %v6850_v15   ;;  %v7209_v22 = vpop.permute.xlu1 %626 }
  0xe5   : > { %v7191_v32 = vpop.permute.xlu0 %981  ;;  %9642 = vst [vmem:[#allocation20_spill] sm:$0xff] %v7209_v22 }
  0xe8   : > { %985 = vperm.xlu1 %6542, %v6864_v17   ;;  %v7214_v3 = vpop.permute.xlu1 %630 }
  0xe9   : > { %v7194_v39 = vpop.permute.xlu0 %989  ;;  %9643 = vst [vmem:[#allocation21_spill] sm:$0xff] %v7214_v3 }
  0xec   : > { %993 = vperm.xlu1 %6542, %v6878_v19   ;;  %v7223_v10 = vpop.permute.xlu1 %634 }
  0xed   : > { %v7199_v43 = vpop.permute.xlu0 %997  ;;  %9644 = vst [vmem:[#allocation22_spill] sm:$0xff] %v7223_v10 }
  0xf0   : > { %1001 = vperm.xlu1 %6542, %v6892_v21  }
  0xf1   : > { %v7204_v20 = vpop.permute.xlu0 %1005 }
  0xf4   : > { %1009 = vperm.xlu1 %6542, %v6906_v23  }
  0xf5   : > { %v7207_v57 = vpop.permute.xlu0 %1013 }
  0xf8   : > { %1017 = vperm.xlu1 %6542, %v6920_v25  }
  0xf9   : > { %v7212_v7 = vpop.permute.xlu0 %1021 }
  0xfc   : > { %1025 = vperm.xlu1 %6542, %v6934_v27  }
  0xfd   : > { %v7217_v38 = vpop.permute.xlu0 %1029 }
 0x100   : > { %1033 = vperm.xlu1 %6542, %v6948_v29  }
 0x101   : > { %v7221_v41 = vpop.permute.xlu0 %1037 }
 0x104   : > { %1041 = vperm.xlu1 %6542, %v6962_v31  }
 0x105   : > { %v7232_v54 = vpop.permute.xlu0 %1045 }
 0x106   : > { %v7230_v56 = vpop.permute.xlu1 %707 }
 0x107   : > { %9645 = vst [vmem:[#allocation23_spill] sm:$0xff] %v7230_v56 }
 0x108   : > { %1049 = vperm.xlu1 %6542, %v6978_v33  }
 0x109   : > { %v1601_v12 = vpop.permute.xlu0 %1600 }
 0x10a   : > { %v7235_v52 = vpop.permute.xlu1 %712  ;;  %v1696_v50 = vmul.f32 %v1601_v12, %v6761_v0 }
 0x10b   : > { %9646 = vst [vmem:[#allocation24_spill] sm:$0xff] %v7235_v52 }
 0x10c   : > { %1602 = vrot.lane.b32.xlu1 %v6775_v2, %s6709_s27  ;;  %1730 = vperm.xlu0 %6544, %v1696_v50  }
 0x10d   : > { %6545 = vset.pattern.permute.xlu1 %v9435_v51 }
 0x10e   : > { %v7242_v62 = vpop.permute.xlu1 %722 }
 0x10f   : > { %9647 = vst [vmem:[#allocation25_spill] sm:$0xff] %v7242_v62 }
 0x110   : > { %1606 = vrot.lane.b32.xlu1 %v6783_v4, %s6709_s27 }
 0x112   : > { %v7246_v48 = vpop.permute.xlu1 %732 }
 0x113   : > { %9648 = vst [vmem:[#allocation26_spill] sm:$0xff] %v7246_v48 }
 0x114   : > { %1610 = vrot.lane.b32.xlu1 %v6795_v6, %s6709_s27 }
 0x116   : > { %v7250_v46 = vpop.permute.xlu1 %742 }
 0x117   : > { %9649 = vst [vmem:[#allocation27_spill] sm:$0xff] %v7250_v46 }
 0x118   : > { %1614 = vrot.lane.b32.xlu1 %v6810_v9, %s6709_s27 }
 0x11a   : > { %v7254_v0 = vpop.permute.xlu1 %752 }
 0x11b   : > { %9650 = vst [vmem:[#allocation28_spill] sm:$0xff] %v7254_v0  ;;  %v5580_v0 = vld [vmem:[%s7084_s7 + $0x28] sm:$0xff]  }
 0x11c   : > { %1618 = vrot.lane.b32.xlu1 %v6822_v11, %s6709_s27 }
 0x11e   : > { %v7258_v2 = vpop.permute.xlu1 %762 }
 0x11f   : > { %9651 = vst [vmem:[#allocation29_spill] sm:$0xff] %v7258_v2 }
 0x120   : > { %1622 = vrot.lane.b32.xlu1 %v6836_v13, %s6709_s27 }
 0x122   : > { %v7262_v4 = vpop.permute.xlu1 %772 }
 0x123   : > { %9652 = vst [vmem:[#allocation30_spill] sm:$0xff] %v7262_v4 }
 0x124   : > { %1626 = vrot.lane.b32.xlu1 %v6850_v15, %s6709_s27  ;;  %v5590_v15 = vld [vmem:[%s7084_s7 + $0x78] sm:$0xff]  }
 0x125   : > { %v5494_v12 = vunpack.c.l.bf16 %v5590_v15 }
 0x126   : > { %v7266_v6 = vpop.permute.xlu1 %782 }
 0x127   : > { %9653 = vst [vmem:[#allocation31_spill] sm:$0xff] %v7266_v6 }
 0x128   : > { %1630 = vrot.lane.b32.xlu1 %v6864_v17, %s6709_s27  ;;  %v5495_v17 = vunpack.c.h.bf16 %v5590_v15 }
 0x12a   : > { %v7270_v9 = vpop.permute.xlu1 %792  ;;  %v369_v51 = vmul.f32 %v5495_v17, %v7104_v36  ;;  %v5576_v17 = vld [vmem:[%s7084_s7 + $0x8] sm:$0xff]  }
 0x12b   : > { %9654 = vst [vmem:[#allocation32_spill] sm:$0xff] %v7270_v9 }
 0x12c   : > { %1634 = vrot.lane.b32.xlu1 %v6878_v19, %s6709_s27  ;;  %v408_v42 = vadd.f32 %v7117_v45, %v369_v51 }
 0x12e   : > { %v7274_v11 = vpop.permute.xlu1 %802 }
 0x12f   : > { %9655 = vst [vmem:[#allocation33_spill] sm:$0xff] %v7274_v11 }
 0x130   : > { %1638 = vrot.lane.b32.xlu1 %v6892_v21, %s6709_s27  ;;  %v368_v21 = vmul.f32 %v5494_v12, %v7104_v36  ;;  %v5577_v12 = vld [vmem:[%s7084_s7 + $0x10] sm:$0xff]  }
 0x132   : > { %v7278_v13 = vpop.permute.xlu1 %812 }
 0x133   : > { %9656 = vst [vmem:[#allocation34_spill] sm:$0xff] %v7278_v13 }
 0x134   : > { %1642 = vrot.lane.b32.xlu1 %v6906_v23, %s6709_s27  ;;  %v5433_v23 = vld [vmem:[%s7084_s7] sm:$0xff]  }
 0x135   : > { %v5434_v15 = vunpack.c.l.bf16 %v5433_v23  ;;  %v5435_v40 = vunpack.c.h.bf16 %v5433_v23 }
 0x136   : > { %v7283_v50 = vpop.permute.xlu1 %822 }
 0x137   : > { %9657 = vst [vmem:[#allocation35_spill] sm:$0xff] %v7283_v50  ;;  %v338_v51 = vmul.f32 %v5434_v15, %v7104_v36  ;;  %v5442_v50 = vunpack.c.l.bf16 %v5577_v12 }
 0x138   : > { %1646 = vrot.lane.b32.xlu1 %v6920_v25, %s6709_s27  ;;  %v407_v25 = vadd.f32 %v7117_v45, %v368_v21  ;;  %v5439_v21 = vunpack.c.h.bf16 %v5576_v17 }
 0x139   : > { %v342_v9 = vmul.f32 %v5442_v50, %v7104_v36 }
 0x13a   : > { %v7287_v19 = vpop.permute.xlu1 %832 }
 0x13b   : > { %9658 = vst [vmem:[#allocation36_spill] sm:$0xff] %v7287_v19  ;;  %v7303_v19 = vmax.f32 %v408_v42, 0.0 }
 0x13c   : > { %1650 = vrot.lane.b32.xlu1 %v6934_v27, %s6709_s27  ;;  %v7307_v27 = vmax.f32 %v407_v25, 0.0  ;;  %v5443_v25 = vunpack.c.h.bf16 %v5577_v12 }
 0x13d   : > { %9661 = vst [vmem:[#allocation39_spill] sm:$0xff] %v7303_v19  ;;  %v1053_v23 = vmul.f32 %v7156_v60, %v7303_v19 }
 0x13e   : > { %v7294_v44 = vpop.permute.xlu1 %842  ;;  %9662 = vst [vmem:[#allocation40_spill] sm:$0xff] %v7307_v27  ;;  %v343_v6 = vmul.f32 %v5443_v25, %v7104_v36 }
 0x13f   : > { %9659 = vst [vmem:[#allocation37_spill] sm:$0xff] %v7294_v44  ;;  %v5438_v44 = vunpack.c.l.bf16 %v5576_v17  ;;  %v5578_v17 = vld [vmem:[%s7084_s7 + $0x18] sm:$0xff]  }
 0x140   : > { %1654 = vrot.lane.b32.xlu1 %v6948_v29, %s6709_s27  ;;  %v339_v29 = vmul.f32 %v5435_v40, %v7104_v36  ;;  %v341_v40 = vmul.f32 %v5439_v21, %v7104_v36 }
 0x141   : > { %v340_v15 = vmul.f32 %v5438_v44, %v7104_v36 }
 0x142   : > { %v7300_v37 = vpop.permute.xlu1 %852  ;;  %v378_v13 = vadd.f32 %v7117_v45, %v339_v29  ;;  %v380_v12 = vadd.f32 %v7117_v45, %v341_v40  ;;  %v5579_v29 = vld [vmem:[%s7084_s7 + $0x20] sm:$0xff]  }
 0x143   : > { %9660 = vst [vmem:[#allocation38_spill] sm:$0xff] %v7300_v37  ;;  %v5450_v25 = vunpack.c.l.bf16 %v5579_v29  ;;  %v5451_v40 = vunpack.c.h.bf16 %v5579_v29  ;;  %v5454_v29 = vunpack.c.l.bf16 %v5580_v0 }
 0x144   : > { %1658 = vrot.lane.b32.xlu1 %v6962_v31, %s6709_s27  ;;  %v377_v31 = vadd.f32 %v7117_v45, %v338_v51  ;;  %v379_v51 = vadd.f32 %v7117_v45, %v340_v15  ;;  %v7327_v44 = vmax.f32 %v378_v13, 0.0 }
 0x145   : > { %v348_v62 = vmul.f32 %v5454_v29, %v7104_v36 }
 0x146   : > { %v7324_v4 = vmax.f32 %v377_v31, 0.0  ;;  %9664 = vst [vmem:[#allocation42_spill] sm:$0xff] %v7327_v44  ;;  %v382_v31 = vadd.f32 %v7117_v45, %v343_v6  ;;  %v7337_v13 = vmax.f32 %v379_v51, 0.0 }
 0x147   : > { %v926_v37 = vpop.permute.xlu1 %925 }
 0x148   : > { %v1052_v42 = vmul.f32 %v926_v37, %v7307_v27  ;;  %1662 = vrot.lane.b32.xlu1 %v6978_v33, %s6709_s27  ;;  %v5446_v37 = vunpack.c.l.bf16 %v5578_v17  ;;  %v5447_v33 = vunpack.c.h.bf16 %v5578_v17  ;;  %9663 = vst [vmem:[#allocation41_spill] sm:$0xff] %v7324_v4  ;;  %9665 = vst [vmem:[#allocation43_spill] sm:$0xff] %v7337_v13  ;;  %v7339_v17 = vmax.f32 %v380_v12, 0.0  ;;  %v5581_v12 = vld [vmem:[%s7084_s7 + $0x30] sm:$0xff]  }
 0x14a   : > { %v1084_v11 = vpack.c.bf16 %v1053_v23, %v1052_v42  ;;  %v381_v23 = vadd.f32 %v7117_v45, %v342_v9  ;;  %v344_v42 = vmul.f32 %v5446_v37, %v7104_v36  ;;  %v345_v15 = vmul.f32 %v5447_v33, %v7104_v36  ;;  %9666 = vst [vmem:[#allocation44_spill] sm:$0xff] %v7339_v17 }
 0x14b   : > { %v934_v60 = vpop.permute.xlu1 %933  ;;  %v346_v33 = vmul.f32 %v5450_v25, %v7104_v36 }
 0x14c   : > { %5838 = vmatprep.mubr.bf16.mxu1 %v1084_v11  ;;  %v1054_v50 = vmul.f32 %v934_v60, %v7324_v4  ;;  %v7342_v46 = vmax.f32 %v381_v23, 0.0  ;;  %v1056_v60 = vmul.f32 %v7164_v26, %v7337_v13  ;;  %v383_v6 = vadd.f32 %v7117_v45, %v344_v42 }
 0x14d   : > { %v384_v51 = vadd.f32 %v7117_v45, %v345_v15  ;;  %v347_v23 = vmul.f32 %v5451_v40, %v7104_v36  ;;  %v385_v25 = vadd.f32 %v7117_v45, %v346_v33 }
 0x14e   : > { %9667 = vst [vmem:[#allocation45_spill] sm:$0xff] %v7342_v46  ;;  %v1058_v26 = vmul.f32 %v7171_v61, %v7342_v46 }
 0x14f   : > { %v938_v21 = vpop.permute.xlu1 %937  ;;  %v7360_v15 = vmax.f32 %v384_v51, 0.0  ;;  %v7370_v51 = vmax.f32 %v385_v25, 0.0 }
 0x150   : > { %v1055_v11 = vmul.f32 %v938_v21, %v7327_v44  ;;  %v7348_v21 = vmax.f32 %v382_v31, 0.0  ;;  %v7357_v31 = vmax.f32 %v383_v6, 0.0 }
 0x151   : > { %9670 = vst [vmem:[#allocation48_spill] sm:$0xff] %v7360_v15  ;;  %9671 = vst [vmem:[#allocation49_spill] sm:$0xff] %v7370_v51  ;;  %v1062_v25 = vmul.f32 %v7181_v8, %v7370_v51 }
 0x152   : > { %v1085_v2 = vpack.c.bf16 %v1055_v11, %v1054_v50  ;;  %9668 = vst [vmem:[#allocation46_spill] sm:$0xff] %v7348_v21  ;;  %v5455_v50 = vunpack.c.h.bf16 %v5580_v0  ;;  %9669 = vst [vmem:[#allocation47_spill] sm:$0xff] %v7357_v31  ;;  %v386_v0 = vadd.f32 %v7117_v45, %v347_v23  ;;  %v1060_v6 = vmul.f32 %v7178_v63, %v7357_v31 }
 0x153   : > { %v946_v9 = vpop.permute.xlu1 %945 }
 0x154   : > { %v1057_v37 = vmul.f32 %v946_v9, %v7339_v17  ;;  %5839 = vmatmul.mubr.bf16.vlgmr.msra.gmra.mrb[0].mxu1 %v1085_v2  ;;  %v5458_v2 = vunpack.c.l.bf16 %v5581_v12  ;;  %v5459_v9 = vunpack.c.h.bf16 %v5581_v12  ;;  %v349_v40 = vmul.f32 %v5455_v50, %v7104_v36 }
 0x155   : > { %v7374_v50 = vmax.f32 %v386_v0, 0.0 }
 0x156   : > { %v1086_v11 = vpack.c.bf16 %v1057_v37, %v1056_v60  ;;  %v5582_v60 = vld [vmem:[%s7084_s7 + $0x38] sm:$0xff]   ;;  %v351_v29 = vmul.f32 %v5459_v9, %v7104_v36 }
 0x157   : > { %v954_v48 = vpop.permute.xlu1 %953  ;;  %v5462_v12 = vunpack.c.l.bf16 %v5582_v60  ;;  %v5463_v23 = vunpack.c.h.bf16 %v5582_v60  ;;  %9672 = vst [vmem:[#allocation50_spill] sm:$0xff] %v7374_v50 }
 0x158   : > { %v1059_v42 = vmul.f32 %v954_v48, %v7348_v21  ;;  %5842 = vmatprep.mubr.bf16.mxu1 %v1086_v11  ;;  %v350_v48 = vmul.f32 %v5458_v2, %v7104_v36  ;;  %v387_v11 = vadd.f32 %v7117_v45, %v348_v62  ;;  %v5583_v2 = vld [vmem:[%s7084_s7 + $0x40] sm:$0xff]   ;;  %v390_v62 = vadd.f32 %v7117_v45, %v351_v29 }
 0x159   : > { %v352_v9 = vmul.f32 %v5462_v12, %v7104_v36  ;;  %v5466_v0 = vunpack.c.l.bf16 %v5583_v2 }
 0x15a   : > { %v1087_v61 = vpack.c.bf16 %v1059_v42, %v1058_v26  ;;  %v388_v26 = vadd.f32 %v7117_v45, %v349_v40  ;;  %v389_v63 = vadd.f32 %v7117_v45, %v350_v48  ;;  %v353_v40 = vmul.f32 %v5463_v23, %v7104_v36 }
 0x15b   : > { %v962_v37 = vpop.permute.xlu1 %961  ;;  %v7385_v60 = vmax.f32 %v387_v11, 0.0  ;;  %v391_v29 = vadd.f32 %v7117_v45, %v352_v9  ;;  %v354_v23 = vmul.f32 %v5466_v0, %v7104_v36 }
 0x15c   : > { %v1061_v33 = vmul.f32 %v962_v37, %v7360_v15  ;;  %5843 = vmatmul.mubr.bf16.gmra.mrb[4].mxu1 %v1087_v61  ;;  %v7387_v37 = vmax.f32 %v388_v26, 0.0  ;;  %v7390_v8 = vmax.f32 %v389_v63, 0.0  ;;  %v392_v11 = vadd.f32 %v7117_v45, %v353_v40  ;;  %v5585_v26 = vld [vmem:[%s7084_s7 + $0x50] sm:$0xff]  }
 0x15d   : > { %9673 = vst [vmem:[#allocation51_spill] sm:$0xff] %v7385_v60  ;;  %v393_v0 = vadd.f32 %v7117_v45, %v354_v23 }
 0x15e   : > { %v1088_v42 = vpack.c.bf16 %v1061_v33, %v1060_v6  ;;  %9674 = vst [vmem:[#allocation52_spill] sm:$0xff] %v7387_v37  ;;  %v5467_v6 = vunpack.c.h.bf16 %v5583_v2  ;;  %v5584_v33 = vld [vmem:[%s7084_s7 + $0x48] sm:$0xff]   ;;  %9675 = vst [vmem:[#allocation53_spill] sm:$0xff] %v7390_v8  ;;  %v7408_v40 = vmax.f32 %v392_v11, 0.0 }
 0x15f   : > { %v970_v52 = vpop.permute.xlu1 %969  ;;  %v5470_v2 = vunpack.c.l.bf16 %v5584_v33  ;;  %v7418_v11 = vmax.f32 %v393_v0, 0.0 }
 0x160   : > { %v1063_v61 = vmul.f32 %v970_v52, %v7374_v50  ;;  %5846 = vmatprep.mubr.bf16.mxu1 %v1088_v42  ;;  %v1064_v52 = vmul.f32 %v7186_v14, %v7385_v60  ;;  %v7396_v42 = vmax.f32 %v390_v62, 0.0  ;;  %v355_v63 = vmul.f32 %v5467_v6, %v7104_v36  ;;  %9678 = vst [vmem:[#allocation56_spill] sm:$0xff] %v7408_v40 }
 0x161   : > { %v5474_v14 = vunpack.c.l.bf16 %v5585_v26  ;;  %v7405_v62 = vmax.f32 %v391_v29, 0.0  ;;  %v356_v10 = vmul.f32 %v5470_v2, %v7104_v36  ;;  %9679 = vst [vmem:[#allocation57_spill] sm:$0xff] %v7418_v11  ;;  %v1070_v0 = vmul.f32 %v7199_v43, %v7418_v11 }
 0x162   : > { %v1089_v48 = vpack.c.bf16 %v1063_v61, %v1062_v25  ;;  %9676 = vst [vmem:[#allocation54_spill] sm:$0xff] %v7396_v42  ;;  %v5471_v25 = vunpack.c.h.bf16 %v5584_v33  ;;  %v394_v6 = vadd.f32 %v7117_v45, %v355_v63 }
 0x163   : > { %v978_v56 = vpop.permute.xlu1 %977  ;;  %9677 = vst [vmem:[#allocation55_spill] sm:$0xff] %v7405_v62  ;;  %v1068_v29 = vmul.f32 %v7194_v39, %v7405_v62  ;;  %v7426_v39 = vpop.permute.xlu0 %1604 }
 0x164   : > { %v1065_v12 = vmul.f32 %v978_v56, %v7387_v37  ;;  %5847 = vmatmul.mubr.bf16.gmra.mrb[8].mxu1 %v1089_v48  ;;  %v1066_v56 = vmul.f32 %v7191_v32, %v7390_v8  ;;  %v5475_v48 = vunpack.c.h.bf16 %v5585_v26  ;;  %v357_v33 = vmul.f32 %v5471_v25, %v7104_v36 }
 0x165   : > { %v7422_v25 = vmax.f32 %v394_v6, 0.0 }
 0x166   : > { %v1090_v61 = vpack.c.bf16 %v1065_v12, %v1064_v52  ;;  %v5586_v52 = vld [vmem:[%s7084_s7 + $0x58] sm:$0xff]   ;;  %v359_v2 = vmul.f32 %v5475_v48, %v7104_v36 }
 0x167   : > { %v986_v27 = vpop.permute.xlu1 %985  ;;  %v5478_v26 = vunpack.c.l.bf16 %v5586_v52  ;;  %v5479_v63 = vunpack.c.h.bf16 %v5586_v52  ;;  %9680 = vst [vmem:[#allocation58_spill] sm:$0xff] %v7422_v25 }
 0x168   : > { %v1067_v9 = vmul.f32 %v986_v27, %v7396_v42  ;;  %5850 = vmatprep.mubr.bf16.mxu1 %v1090_v61  ;;  %v358_v27 = vmul.f32 %v5474_v14, %v7104_v36  ;;  %v395_v61 = vadd.f32 %v7117_v45, %v356_v10  ;;  %v398_v6 = vadd.f32 %v7117_v45, %v359_v2 }
 0x169   : > { %v360_v10 = vmul.f32 %v5478_v26, %v7104_v36 }
 0x16a   : > { %v1091_v32 = vpack.c.bf16 %v1067_v9, %v1066_v56  ;;  %v396_v56 = vadd.f32 %v7117_v45, %v357_v33  ;;  %v5587_v9 = vld [vmem:[%s7084_s7 + $0x60] sm:$0xff]   ;;  %v361_v33 = vmul.f32 %v5479_v63, %v7104_v36  ;;  %v7446_v2 = vmax.f32 %v398_v6, 0.0 }
 0x16b   : > { %v994_v12 = vpop.permute.xlu1 %993  ;;  %v5482_v52 = vunpack.c.l.bf16 %v5587_v9  ;;  %v399_v26 = vadd.f32 %v7117_v45, %v360_v10 }
 0x16c   : > { %v1069_v23 = vmul.f32 %v994_v12, %v7408_v40  ;;  %5851 = vmatmul.mubr.bf16.gmra.mrb[12].mxu1 %v1091_v32  ;;  %v397_v32 = vadd.f32 %v7117_v45, %v358_v27  ;;  %v7435_v12 = vmax.f32 %v395_v61, 0.0  ;;  %v5588_v27 = vld [vmem:[%s7084_s7 + $0x68] sm:$0xff]   ;;  %9684 = vst [vmem:[#allocation62_spill] sm:$0xff] %v7446_v2  ;;  %v400_v61 = vadd.f32 %v7117_v45, %v361_v33 }
 0x16d   : > { %v362_v63 = vmul.f32 %v5482_v52, %v7104_v36 }
 0x16e   : > { %v1092_v14 = vpack.c.bf16 %v1069_v23, %v1068_v29  ;;  %9681 = vst [vmem:[#allocation59_spill] sm:$0xff] %v7435_v12  ;;  %v7437_v29 = vmax.f32 %v396_v56, 0.0  ;;  %v5483_v23 = vunpack.c.h.bf16 %v5587_v9  ;;  %v7440_v18 = vmax.f32 %v397_v32, 0.0  ;;  %v7450_v56 = vpop.permute.xlu0 %1608 }
 0x16f   : > { %v1002_v3 = vpop.permute.xlu1 %1001  ;;  %v5486_v9 = vunpack.c.l.bf16 %v5588_v27  ;;  %v5487_v32 = vunpack.c.h.bf16 %v5588_v27  ;;  %v401_v10 = vadd.f32 %v7117_v45, %v362_v63  ;;  %v7459_v6 = vmax.f32 %v400_v61, 0.0 }
 0x170   : > { %v1071_v48 = vmul.f32 %v1002_v3, %v7422_v25  ;;  %5854 = vmatprep.mubr.bf16.mxu1 %v1092_v14  ;;  %9682 = vst [vmem:[#allocation60_spill] sm:$0xff] %v7437_v29  ;;  %9683 = vst [vmem:[#allocation61_spill] sm:$0xff] %v7440_v18  ;;  %v1072_v3 = vmul.f32 %v7204_v20, %v7435_v12  ;;  %v363_v14 = vmul.f32 %v5483_v23, %v7104_v36 }
 0x171   : > { %9686 = vst [vmem:[#allocation64_spill] sm:$0xff] %v7459_v6  ;;  %v364_v52 = vmul.f32 %v5486_v9, %v7104_v36  ;;  %v365_v23 = vmul.f32 %v5487_v32, %v7104_v36 }
 0x172   : > { %v1093_v22 = vpack.c.bf16 %v1071_v48, %v1070_v0  ;;  %v402_v33 = vadd.f32 %v7117_v45, %v363_v14 }
 0x173   : > { %v1010_v49 = vpop.permute.xlu1 %1009  ;;  %v403_v63 = vadd.f32 %v7117_v45, %v364_v52  ;;  %v404_v9 = vadd.f32 %v7117_v45, %v365_v23  ;;  %v7487_v23 = vmax.f32 %v7122_v47, 0.0  ;;  %v9443_v47 = vrot.slane %v7303_v19, 1 }
 0x174   : > { %v1073_v43 = vmul.f32 %v1010_v49, %v7437_v29  ;;  %5855 = vmatmul.mubr.bf16.gmra.mrb[16].mxu1 %v1093_v22  ;;  %v1074_v49 = vmul.f32 %v7207_v57, %v7440_v18  ;;  %v7456_v22 = vmax.f32 %v399_v26, 0.0  ;;  %v7467_v26 = vmax.f32 %v401_v10, 0.0 }
 0x175   : > { %v7470_v61 = vmax.f32 %v402_v33, 0.0  ;;  %v7484_v33 = vmax.f32 %v7228_v59, 0.0  ;;  %9692 = vst [vmem:[#allocation70_spill] sm:$0xff] %v7487_v23  ;;  %v9444_v59 = vrot.slane %v7324_v4, 1 }
 0x176   : > { %v1094_v0 = vpack.c.bf16 %v1073_v43, %v1072_v3  ;;  %9685 = vst [vmem:[#allocation63_spill] sm:$0xff] %v7456_v22  ;;  %v1613_v43 = vpop.permute.xlu0 %1612  ;;  %v1076_v57 = vmul.f32 %v7212_v7, %v7456_v22  ;;  %9687 = vst [vmem:[#allocation65_spill] sm:$0xff] %v7467_v26  ;;  %v1078_v36 = vmul.f32 %v7217_v38, %v7467_v26  ;;  %v505_v38 = vlaneseq }
 0x177   : > { %v1018_v48 = vpop.permute.xlu1 %1017  ;;  %9688 = vst [vmem:[#allocation66_spill] sm:$0xff] %v7470_v61  ;;  %9691 = vst [vmem:[#allocation69_spill] sm:$0xff] %v7484_v33 }
 0x178   : > { %v1075_v20 = vmul.f32 %v1018_v48, %v7446_v2  ;;  %5858 = vmatprep.mubr.bf16.mxu1 %v1094_v0 }
 0x17a   : > { %v1095_v27 = vpack.c.bf16 %v1075_v20, %v1074_v49  ;;  %v1617_v7 = vpop.permute.xlu0 %1616  ;;  %v7476_v49 = vmax.f32 %v403_v63, 0.0  ;;  %v7478_v20 = vmax.f32 %v404_v9, 0.0  ;;  %v1082_v63 = vmul.f32 %v7232_v54, %v7487_v23 }
 0x17b   : > { %v1026_v3 = vpop.permute.xlu1 %1025 }
 0x17c   : > { %v1077_v0 = vmul.f32 %v1026_v3, %v7459_v6  ;;  %5859 = vmatmul.mubr.bf16.gmra.mrb[20].mxu1 %v1095_v27  ;;  %9689 = vst [vmem:[#allocation67_spill] sm:$0xff] %v7476_v49  ;;  %9690 = vst [vmem:[#allocation68_spill] sm:$0xff] %v7478_v20  ;;  %v1080_v52 = vmul.f32 %v7221_v41, %v7476_v49  ;;  %v7492_v41 = vshrl.u32 %v505_v38, 7  ;;  %v7521_v38 = vld [vmem:[%s9418_s4 + $0x18] sm:$0xff] }
 0x17e   : > { %v1096_v14 = vpack.c.bf16 %v1077_v0, %v1076_v57  ;;  %v1621_v0 = vpop.permute.xlu0 %1620  ;;  %9693 = vst [vmem:[#allocation71_spill] sm:$0xff] %v7492_v41  ;;  %vm1567_vm0 = vcmp.lt.s32.totalorder %v7492_v41, 7 }
 0x17f   : > { %v1034_v48 = vpop.permute.xlu1 %1033 }
 0x180   : > { %v1079_v32 = vmul.f32 %v1034_v48, %v7470_v61  ;;  %5862 = vmatprep.mubr.bf16.mxu1 %v1096_v14 }
 0x182   : > { %v1097_v10 = vpack.c.bf16 %v1079_v32, %v1078_v36  ;;  %v7500_v36 = vld [vmem:[%s9418_s4 + $0x8] sm:$0xff]  ;;  %v1625_v32 = vpop.permute.xlu0 %1624 }
 0x183   : > { %v1042_v27 = vpop.permute.xlu1 %1041 }
 0x184   : > { %v1081_v45 = vmul.f32 %v1042_v27, %v7478_v20  ;;  %5863 = vmatmul.mubr.bf16.gmra.mrb[24].mxu1 %v1097_v10  ;;  %v7509_v10 = vsel %vm1567_vm0, %v9443_v47, %v9444_v59  ;;  %v7514_v27 = vld [vmem:[%s9418_s4 + $0x10] sm:$0xff] }
 0x185   : > { %9694 = vst [vmem:[#allocation72_spill] sm:$0xff] %v7509_v10 }
 0x186   : > { %v1098_v3 = vpack.c.bf16 %v1081_v45, %v1080_v52  ;;  %v1698_v52 = vmul.f32 %v7514_v27, %v7426_v39  ;;  %v1629_v39 = vpop.permute.xlu0 %1628 }
 0x187   : > { %v1050_v57 = vpop.permute.xlu1 %1049 }
 0x188   : > { %v1083_v9 = vmul.f32 %v1050_v57, %v7484_v33  ;;  %5866 = vmatprep.mubr.bf16.mxu1 %v1098_v3  ;;  %v7527_v57 = vld [vmem:[%s9418_s4 + $0x20] sm:$0xff] }
 0x18a   : > { %v1099_v14 = vpack.c.bf16 %v1083_v9, %v1082_v63  ;;  %v1700_v63 = vmul.f32 %v7527_v57, %v7450_v56  ;;  %v7546_v56 = vld [vmem:[%s9418_s4 + $0x38] sm:$0xff]  ;;  %v1633_v47 = vpop.permute.xlu0 %1632 }
 0x18b   : > { %v1603_v48 = vpop.permute.xlu1 %1602 }
 0x18c   : > { %v1697_v54 = vmul.f32 %v7500_v36, %v1603_v48  ;;  %5867 = vmatmul.mubr.bf16.gmra.mrb[28].mxu1 %v1099_v14  ;;  %v7534_v14 = vld [vmem:[%s9418_s4 + $0x28] sm:$0xff] }
 0x18e   : > { %1735 = vperm.xlu1 %6545, %v1697_v54   ;;  %v7540_v54 = vld [vmem:[%s9418_s4 + $0x30] sm:$0xff]  ;;  %v1637_v10 = vpop.permute.xlu0 %1636 }
 0x18f   : > { %v1607_v45 = vpop.permute.xlu1 %1606 }
 0x190   : > { %v1699_v3 = vmul.f32 %v7521_v38, %v1607_v45 }
 0x192   : > { %1745 = vperm.xlu0 %6544, %v1699_v3   ;;  %1740 = vperm.xlu1 %6545, %v1698_v52   ;;  %v1702_v52 = vmul.f32 %v7540_v54, %v1613_v43  ;;  %v7558_v43 = vld [vmem:[%s9418_s4 + $0x48] sm:$0xff]  ;;  %v1641_v49 = vpop.permute.xlu0 %1640 }
 0x193   : > { %v1611_v9 = vpop.permute.xlu1 %1610 }
 0x194   : > { %v1701_v48 = vmul.f32 %v7534_v14, %v1611_v9 }
 0x196   : > { %1755 = vperm.xlu0 %6544, %v1701_v48   ;;  %1750 = vperm.xlu1 %6545, %v1700_v63   ;;  %v7552_v63 = vld [vmem:[%s9418_s4 + $0x40] sm:$0xff]  ;;  %v1645_v26 = vpop.permute.xlu0 %1644 }
 0x197   : > { %v1615_v45 = vpop.permute.xlu1 %1614  ;;  %v1704_v9 = vmul.f32 %v7552_v63, %v1617_v7  ;;  %v7570_v7 = vld [vmem:[%s9418_s4 + $0x58] sm:$0xff] }
 0x198   : > { %v1703_v3 = vmul.f32 %v7546_v56, %v1615_v45 }
 0x19a   : > { %1765 = vperm.xlu0 %6544, %v1703_v3   ;;  %1760 = vperm.xlu1 %6545, %v1702_v52   ;;  %v7564_v52 = vld [vmem:[%s9418_s4 + $0x50] sm:$0xff]  ;;  %v1649_v2 = vpop.permute.xlu0 %1648 }
 0x19b   : > { %v1619_v48 = vpop.permute.xlu1 %1618  ;;  %v1706_v45 = vmul.f32 %v7564_v52, %v1621_v0  ;;  %v7582_v0 = vld [vmem:[%s9418_s4 + $0x68] sm:$0xff] }
 0x19c   : > { %v1705_v59 = vmul.f32 %v7558_v43, %v1619_v48 }
 0x19e   : > { %1775 = vperm.xlu0 %6544, %v1705_v59   ;;  %1770 = vperm.xlu1 %6545, %v1704_v9   ;;  %v7576_v59 = vld [vmem:[%s9418_s4 + $0x60] sm:$0xff]  ;;  %v1653_v29 = vpop.permute.xlu0 %1652 }
 0x19f   : > { %v1623_v3 = vpop.permute.xlu1 %1622  ;;  %v1708_v9 = vmul.f32 %v7576_v59, %v1625_v32  ;;  %v7594_v32 = vld [vmem:[%s9418_s4 + $0x78] sm:$0xff] }
 0x1a0   : > { %v1707_v23 = vmul.f32 %v7570_v7, %v1623_v3 }
 0x1a2   : > { %1785 = vperm.xlu0 %6544, %v1707_v23   ;;  %1780 = vperm.xlu1 %6545, %v1706_v45   ;;  %v7588_v23 = vld [vmem:[%s9418_s4 + $0x70] sm:$0xff]  ;;  %v1657_v11 = vpop.permute.xlu0 %1656 }
 0x1a3   : > { %v1627_v48 = vpop.permute.xlu1 %1626  ;;  %v1710_v45 = vmul.f32 %v7588_v23, %v1629_v39  ;;  %v7606_v39 = vld [vmem:[%s9418_s4 + $0x88] sm:$0xff] }
 0x1a4   : > { %v1709_v20 = vmul.f32 %v7582_v0, %v1627_v48 }
 0x1a6   : > { %1795 = vperm.xlu0 %6544, %v1709_v20   ;;  %1790 = vperm.xlu1 %6545, %v1708_v9   ;;  %v7600_v20 = vld [vmem:[%s9418_s4 + $0x80] sm:$0xff]  ;;  %v1661_v19 = vpop.permute.xlu0 %1660 }
 0x1a7   : > { %v1631_v3 = vpop.permute.xlu1 %1630  ;;  %v1712_v9 = vmul.f32 %v7600_v20, %v1633_v47  ;;  %v7618_v47 = vld [vmem:[%s9418_s4 + $0x98] sm:$0xff] }
 0x1a8   : > { %v1711_v61 = vmul.f32 %v7594_v32, %v1631_v3  ;;  %9695 = vst [vmem:[#allocation73_spill] sm:$0xff] %v7618_v47 }
 0x1aa   : > { %1805 = vperm.xlu0 %6544, %v1711_v61   ;;  %1800 = vperm.xlu1 %6545, %v1710_v45   ;;  %v7612_v61 = vld [vmem:[%s9418_s4 + $0x90] sm:$0xff] }
 0x1ab   : > { %v1635_v48 = vpop.permute.xlu1 %1634  ;;  %v1714_v45 = vmul.f32 %v7612_v61, %v1637_v10  ;;  %v7630_v10 = vld [vmem:[%s9418_s4 + $0xa8] sm:$0xff] }
 0x1ac   : > { %v1713_v6 = vmul.f32 %v7606_v39, %v1635_v48  ;;  %9696 = vst [vmem:[#allocation74_spill] sm:$0xff] %v7630_v10 }
 0x1ae   : > { %1815 = vperm.xlu0 %6544, %v1713_v6   ;;  %1810 = vperm.xlu1 %6545, %v1712_v9   ;;  %v7624_v6 = vld [vmem:[%s9418_s4 + $0xa0] sm:$0xff] }
 0x1af   : > { %v1639_v3 = vpop.permute.xlu1 %1638  ;;  %v1716_v9 = vmul.f32 %v7624_v6, %v1641_v49  ;;  %v7642_v49 = vld [vmem:[%s9418_s4 + $0xb8] sm:$0xff] }
 0x1b0   : > { %v1715_v22 = vmul.f32 %v7618_v47, %v1639_v3  ;;  %9697 = vst [vmem:[#allocation75_spill] sm:$0xff] %v7642_v49 }
 0x1b2   : > { %1825 = vperm.xlu0 %6544, %v1715_v22   ;;  %1820 = vperm.xlu1 %6545, %v1714_v45   ;;  %v7636_v22 = vld [vmem:[%s9418_s4 + $0xb0] sm:$0xff] }
 0x1b3   : > { %v1643_v48 = vpop.permute.xlu1 %1642  ;;  %v1718_v45 = vmul.f32 %v7636_v22, %v1645_v26  ;;  %v7654_v26 = vld [vmem:[%s9418_s4 + $0xc8] sm:$0xff] }
 0x1b4   : > { %v1717_v18 = vmul.f32 %v7630_v10, %v1643_v48  ;;  %9698 = vst [vmem:[#allocation76_spill] sm:$0xff] %v7654_v26 }
 0x1b6   : > { %1835 = vperm.xlu0 %6544, %v1717_v18   ;;  %1830 = vperm.xlu1 %6545, %v1716_v9   ;;  %v7648_v18 = vld [vmem:[%s9418_s4 + $0xc0] sm:$0xff] }
 0x1b7   : > { %v1647_v3 = vpop.permute.xlu1 %1646  ;;  %v1720_v9 = vmul.f32 %v7648_v18, %v1649_v2  ;;  %v7666_v2 = vld [vmem:[%s9418_s4 + $0xd8] sm:$0xff] }
 0x1b8   : > { %v1719_v12 = vmul.f32 %v7642_v49, %v1647_v3 }
 0x1ba   : > { %1845 = vperm.xlu0 %6544, %v1719_v12   ;;  %1840 = vperm.xlu1 %6545, %v1718_v45   ;;  %v7660_v12 = vld [vmem:[%s9418_s4 + $0xd0] sm:$0xff] }
 0x1bb   : > { %v1651_v48 = vpop.permute.xlu1 %1650  ;;  %v1722_v45 = vmul.f32 %v7660_v12, %v1653_v29  ;;  %v7678_v29 = vld [vmem:[%s9418_s4 + $0xe8] sm:$0xff] }
 0x1bc   : > { %v1721_v25 = vmul.f32 %v7654_v26, %v1651_v48 }
 0x1be   : > { %1855 = vperm.xlu0 %6544, %v1721_v25   ;;  %1850 = vperm.xlu1 %6545, %v1720_v9   ;;  %v7672_v25 = vld [vmem:[%s9418_s4 + $0xe0] sm:$0xff] }
 0x1bf   : > { %v1655_v3 = vpop.permute.xlu1 %1654  ;;  %9699 = vst [vmem:[#allocation77_spill] sm:$0xff] %v7672_v25  ;;  %v1724_v9 = vmul.f32 %v7672_v25, %v1657_v11  ;;  %v7690_v11 = vld [vmem:[%s9418_s4 + $0xf8] sm:$0xff] }
 0x1c0   : > { %v1723_v33 = vmul.f32 %v7666_v2, %v1655_v3 }
 0x1c2   : > { %1865 = vperm.xlu0 %6544, %v1723_v33   ;;  %1860 = vperm.xlu1 %6545, %v1722_v45   ;;  %v7684_v33 = vld [vmem:[%s9418_s4 + $0xf0] sm:$0xff] }
 0x1c3   : > { %v1659_v48 = vpop.permute.xlu1 %1658  ;;  %v1726_v45 = vmul.f32 %v7684_v33, %v1661_v19  ;;  %v6562_v19 = vld [vmem:[%s9417_s3 + $0x100] sm:$0xff]  }
 0x1c4   : > { %v1725_v41 = vmul.f32 %v7678_v29, %v1659_v48  ;;  %6014 = vmatprep.subr.bf16.mxu0 %v6562_v19  ;;  %v6564_v48 = vld [vmem:[%s9417_s3 + $0x110] sm:$0xff]  }
 0x1c5   : > { %6015 = vmatpush3.bf16.msra.mxu0 %v6562_v19  ;;  %v6567_v19 = vld [vmem:[%s9417_s3 + $0x128] sm:$0xff]  }
 0x1c6   : > { %1875 = vperm.xlu0 %6544, %v1725_v41   ;;  %1870 = vperm.xlu1 %6545, %v1724_v9   ;;  %v7696_v41 = vld [vmem:[%s9418_s4] sm:$0xff]  ;;  %v9700_v9 = vmov 0  }
 0x1c7   : > { %v1663_v3 = vpop.permute.xlu1 %1662 }
 0x1c8   : > { %v1727_v25 = vmul.f32 %v7690_v11, %v1663_v3  ;;  %v6566_v3 = vld [vmem:[%s9417_s3 + $0x120] sm:$0xff]  }
 0x1ca   : > { %1885 = vperm.xlu0 %6544, %v1727_v25   ;;  %1880 = vperm.xlu1 %6545, %v1726_v45   ;;  %v6563_v25 = vld [vmem:[%s9417_s3 + $0x108] sm:$0xff]   ;;  %v6565_v45 = vld [vmem:[%s9417_s3 + $0x118] sm:$0xff]  }
 0x1cb   : > { %6016 = vmatprep.subr.bf16.mxu0 %v6563_v25 }
 0x1cc   : > { %6017 = vmatpush3.bf16.msra.mxu0 %v6563_v25  ;;  %v6568_v25 = vld [vmem:[%s9417_s3 + $0x130] sm:$0xff]  }
 0x1cd   : > { %6018 = vmatprep.subr.bf16.mxu0 %v6564_v48 }
 0x1ce   : > { %2903 = vperm.xlu0 %6544, %v7696_v41   ;;  %6546 = vset.pattern.permute.xlu1 %v9700_v9 }
 0x1cf   : > { %2195 = vperm.xlu1 %6546, %v7696_v41  }
 0x1d0   : > { %6019 = vmatpush3.bf16.msra.mxu0 %v6564_v48  ;;  %v6569_v48 = vld [vmem:[%s9417_s3 + $0x138] sm:$0xff]  }
 0x1d1   : > { %6020 = vmatprep.subr.bf16.mxu0 %v6565_v45 }
 0x1d2   : > { %2915 = vperm.xlu0 %6544, %v7521_v38  }
 0x1d3   : > { %2203 = vperm.xlu1 %6546, %v7514_v27  }
 0x1d4   : > { %6021 = vmatpush3.bf16.msra.mxu0 %v6565_v45  ;;  %v2628_v45 = vpack.c.bf16 %v7327_v44, %v7324_v4 }
 0x1d5   : > { %6022 = vmatprep.subr.bf16.mxu0 %v6566_v3 }
 0x1d6   : > { %2923 = vperm.xlu0 %6544, %v7534_v14   ;;  %6030 = vmatprep.mubr.bf16.mxu0 %v2628_v45  ;;  %v2631_v45 = vpack.c.bf16 %v7360_v15, %v7357_v31 }
 0x1d7   : > { %2207 = vperm.xlu1 %6546, %v7521_v38  }
 0x1d8   : > { %6023 = vmatpush3.bf16.msra.mxu0 %v6566_v3  ;;  %v6570_v3 = vld [vmem:[%s9417_s3 + $0x140] sm:$0xff]  }
 0x1d9   : > { %6024 = vmatprep.subr.bf16.mxu0 %v6567_v19 }
 0x1da   : > { %3338 = vrot.lane.b32.xlu0 %v7500_v36, %s6711_s10 }
 0x1db   : > { %2215 = vperm.xlu1 %6546, %v7534_v14  }
 0x1dc   : > { %6025 = vmatpush3.bf16.msra.mxu0 %v6567_v19  ;;  %v2629_v19 = vpack.c.bf16 %v7339_v17, %v7337_v13 }
 0x1dd   : > { %6026 = vmatprep.subr.bf16.mxu0 %v6568_v25 }
 0x1de   : > { %3342 = vrot.lane.b32.xlu0 %v7521_v38, %s6711_s10 }
 0x1df   : > { %2223 = vperm.xlu1 %6546, %v7546_v56  }
 0x1e0   : > { %6027 = vmatpush3.bf16.msra.mxu0 %v6568_v25  ;;  %v6571_v25 = vld [vmem:[%s9417_s3 + $0x148] sm:$0xff]  }
 0x1e1   : > { %6028 = vmatprep.subr.bf16.mxu0 %v6569_v48 }
 0x1e2   : > { %2931 = vperm.xlu0 %6544, %v7546_v56  }
 0x1e3   : > { %2231 = vperm.xlu1 %6546, %v7558_v43  }
 0x1e4   : > { %6029 = vmatpush3.bf16.msra.mxu0 %v6569_v48  ;;  %v2630_v48 = vpack.c.bf16 %v7348_v21, %v7342_v46 }
 0x1e5   : > { %6062 = vmatprep.subr.bf16.mxu0 %v6570_v3 }
 0x1e6   : > { %3346 = vrot.lane.b32.xlu0 %v7534_v14, %s6711_s10 }
 0x1e7   : > { %2239 = vperm.xlu1 %6546, %v7570_v7   ;;  %6031 = vmatmul.mubr.bf16.vlgmr.msra.gmra.mrb[0].mxu0 %v2629_v19  ;;  %v6573_v19 = vld [vmem:[%s9417_s3 + $0x158] sm:$0xff]  }
 0x1e8   : > { %6063 = vmatpush3.bf16.msra.mxu0 %v6570_v3  ;;  %v6572_v3 = vld [vmem:[%s9417_s3 + $0x150] sm:$0xff]   ;;  %6034 = vmatprep.mubr.bf16.mxu0 %v2630_v48  ;;  %v2633_v48 = vpack.c.bf16 %v7387_v37, %v7385_v60  ;;  %v6575_v37 = vld [vmem:[%s9417_s3 + $0x168] sm:$0xff]  }
 0x1e9   : > { %6064 = vmatprep.subr.bf16.mxu0 %v6571_v25 }
 0x1ea   : > { %3350 = vrot.lane.b32.xlu0 %v7546_v56, %s6711_s10 }
 0x1eb   : > { %2247 = vperm.xlu1 %6546, %v7582_v0  }
 0x1ec   : > { %6065 = vmatpush3.bf16.msra.mxu0 %v6571_v25  ;;  %v2632_v25 = vpack.c.bf16 %v7374_v50, %v7370_v51 }
 0x1ed   : > { %6066 = vmatprep.subr.bf16.mxu0 %v6572_v3 }
 0x1ee   : > { %2939 = vperm.xlu0 %6544, %v7558_v43  }
 0x1ef   : > { %2255 = vperm.xlu1 %6546, %v7594_v32   ;;  %6035 = vmatmul.mubr.bf16.gmra.mrb[4].mxu0 %v2631_v45  ;;  %v6574_v45 = vld [vmem:[%s9417_s3 + $0x160] sm:$0xff]  }
 0x1f0   : > { %6067 = vmatpush3.bf16.msra.mxu0 %v6572_v3  ;;  %v7790_v3 = vpop.permute.xlu0 %1730  ;;  %6038 = vmatprep.mubr.bf16.mxu0 %v2632_v25  ;;  %v2634_v25 = vpack.c.bf16 %v7396_v42, %v7390_v8 }
 0x1f1   : > { %6068 = vmatprep.subr.bf16.mxu0 %v6573_v19  ;;  %9701 = vst [vmem:[#allocation78_spill] sm:$0xff] %v7790_v3  ;;  %v9705_v3 = vmov 1  }
 0x1f2   : > { %2947 = vperm.xlu0 %6544, %v7570_v7  }
 0x1f3   : > { %2263 = vperm.xlu1 %6546, %v7606_v39  }
 0x1f4   : > { %6069 = vmatpush3.bf16.msra.mxu0 %v6573_v19 }
 0x1f5   : > { %6070 = vmatprep.subr.bf16.mxu0 %v6574_v45 }
 0x1f6   : > { %3354 = vrot.lane.b32.xlu0 %v7558_v43, %s6711_s10 }
 0x1f7   : > { %2271 = vperm.xlu1 %6546, %v7618_v47   ;;  %6039 = vmatmul.mubr.bf16.gmra.mrb[8].mxu0 %v2633_v48  ;;  %v2635_v48 = vpack.c.bf16 %v7408_v40, %v7405_v62 }
 0x1f8   : > { %6071 = vmatpush3.bf16.msra.mxu0 %v6574_v45  ;;  %v6576_v45 = vld [vmem:[%s9417_s3 + $0x170] sm:$0xff]   ;;  %6042 = vmatprep.mubr.bf16.mxu0 %v2634_v25 }
 0x1f9   : > { %6072 = vmatprep.subr.bf16.mxu0 %v6575_v37 }
 0x1fa   : > { %3358 = vrot.lane.b32.xlu0 %v7570_v7, %s6711_s10 }
 0x1fb   : > { %2279 = vperm.xlu1 %6546, %v7630_v10  }
 0x1fc   : > { %6073 = vmatpush3.bf16.msra.mxu0 %v6575_v37 }
 0x1fd   : > { %6074 = vmatprep.subr.bf16.mxu0 %v6576_v45 }
 0x1fe   : > { %2955 = vperm.xlu0 %6544, %v7582_v0  }
 0x1ff   : > { %2287 = vperm.xlu1 %6546, %v7642_v49   ;;  %6043 = vmatmul.mubr.bf16.gmra.mrb[12].mxu0 %v2635_v48 }
 0x200   : > { %6075 = vmatpush3.bf16.msra.mxu0 %v6576_v45 }
 0x202   : > { %2963 = vperm.xlu0 %6544, %v7594_v32  }
 0x203   : > { %2295 = vperm.xlu1 %6546, %v7654_v26  }
 0x206   : > { %3362 = vrot.lane.b32.xlu0 %v7582_v0, %s6711_s10 }
 0x207   : > { %2303 = vperm.xlu1 %6546, %v7666_v2  }
 0x20a   : > { %3366 = vrot.lane.b32.xlu0 %v7594_v32, %s6711_s10 }
 0x20b   : > { %2311 = vperm.xlu1 %6546, %v7678_v29  }
 0x20d   : > { %v7792_v19 = vpop.permute.xlu1 %1735 }
 0x20e   : > { %9702 = vst [vmem:[#allocation79_spill] sm:$0xff] %v7792_v19  ;;  %2971 = vperm.xlu0 %6544, %v7606_v39  }
 0x20f   : > { %2319 = vperm.xlu1 %6546, %v7690_v11  }
 0x211   : > { %v7799_v60 = vpop.permute.xlu1 %1740  ;;  %v7801_v50 = vpop.permute.xlu0 %1745 }
 0x212   : > { %9703 = vst [vmem:[#allocation80_spill] sm:$0xff] %v7799_v60  ;;  %9704 = vst [vmem:[#allocation81_spill] sm:$0xff] %v7801_v50  ;;  %2979 = vperm.xlu0 %6544, %v7618_v47   ;;  %v6577_v60 = vld [vmem:[%s9417_s3 + $0x178] sm:$0xff]  }
 0x213   : > { %6547 = vset.pattern.permute.xlu1 %v9705_v3  ;;  %6076 = vmatprep.subr.bf16.mxu0 %v6577_v60 }
 0x214   : > { %2907 = vperm.xlu1 %6547, %v7500_v36   ;;  %6077 = vmatpush3.bf16.msra.mxu0 %v6577_v60 }
 0x215   : > { %v7813_v50 = vpop.permute.xlu1 %1750  ;;  %v7815_v37 = vpop.permute.xlu0 %1755 }
 0x216   : > { %9706 = vst [vmem:[#allocation82_spill] sm:$0xff] %v7813_v50  ;;  %9707 = vst [vmem:[#allocation83_spill] sm:$0xff] %v7815_v37  ;;  %3370 = vrot.lane.b32.xlu0 %v7606_v39, %s6711_s10 }
 0x218   : > { %2911 = vperm.xlu1 %6547, %v7514_v27  }
 0x219   : > { %v7823_v25 = vpop.permute.xlu1 %1760  ;;  %v7825_v3 = vpop.permute.xlu0 %1765 }
 0x21a   : > { %9708 = vst [vmem:[#allocation84_spill] sm:$0xff] %v7823_v25  ;;  %9709 = vst [vmem:[#allocation85_spill] sm:$0xff] %v7825_v3  ;;  %3374 = vrot.lane.b32.xlu0 %v7618_v47, %s6711_s10 }
 0x21c   : > { %2919 = vperm.xlu1 %6547, %v7527_v57  }
 0x21d   : > { %v7830_v48 = vpop.permute.xlu1 %1770  ;;  %v7832_v45 = vpop.permute.xlu0 %1775 }
 0x21e   : > { %9710 = vst [vmem:[#allocation86_spill] sm:$0xff] %v7830_v48  ;;  %9711 = vst [vmem:[#allocation87_spill] sm:$0xff] %v7832_v45  ;;  %2987 = vperm.xlu0 %6544, %v7630_v10  }
 0x220   : > { %3336 = vrot.lane.b32.xlu1 %v7696_v41, %s6711_s10 }
 0x221   : > { %v7837_v37 = vpop.permute.xlu1 %1780  ;;  %v7839_v25 = vpop.permute.xlu0 %1785 }
 0x222   : > { %9712 = vst [vmem:[#allocation88_spill] sm:$0xff] %v7837_v37  ;;  %9713 = vst [vmem:[#allocation89_spill] sm:$0xff] %v7839_v25  ;;  %2995 = vperm.xlu0 %6544, %v7642_v49  }
 0x224   : > { %3340 = vrot.lane.b32.xlu1 %v7514_v27, %s6711_s10 }
 0x225   : > { %v7844_v60 = vpop.permute.xlu1 %1790  ;;  %v7846_v3 = vpop.permute.xlu0 %1795 }
 0x226   : > { %9714 = vst [vmem:[#allocation90_spill] sm:$0xff] %v7844_v60  ;;  %9715 = vst [vmem:[#allocation91_spill] sm:$0xff] %v7846_v3  ;;  %3378 = vrot.lane.b32.xlu0 %v7630_v10, %s6711_s10  ;;  %v6578_v3 = vld [vmem:[%s9417_s3] sm:$0xff]  }
 0x227   : > { %5870 = vmatprep.subr.bf16.mxu1 %v6578_v3 }
 0x228   : > { %2927 = vperm.xlu1 %6547, %v7540_v54   ;;  %5871 = vmatpush3.bf16.msra.mxu1 %v6578_v3  ;;  %v6580_v3 = vld [vmem:[%s9417_s3 + $0x10] sm:$0xff]  }
 0x229   : > { %v7851_v45 = vpop.permute.xlu1 %1800  ;;  %v7853_v48 = vpop.permute.xlu0 %1805 }
 0x22a   : > { %9716 = vst [vmem:[#allocation92_spill] sm:$0xff] %v7851_v45  ;;  %9717 = vst [vmem:[#allocation93_spill] sm:$0xff] %v7853_v48  ;;  %3382 = vrot.lane.b32.xlu0 %v7642_v49, %s6711_s10 }
 0x22c   : > { %3344 = vrot.lane.b32.xlu1 %v7527_v57, %s6711_s10 }
 0x22d   : > { %v7859_v25 = vpop.permute.xlu1 %1810  ;;  %v7861_v60 = vpop.permute.xlu0 %1815 }
 0x22e   : > { %9718 = vst [vmem:[#allocation94_spill] sm:$0xff] %v7859_v25  ;;  %9719 = vst [vmem:[#allocation95_spill] sm:$0xff] %v7861_v60  ;;  %3003 = vperm.xlu0 %6544, %v7654_v26   ;;  %v6579_v25 = vld [vmem:[%s9417_s3 + $0x8] sm:$0xff]  }
 0x22f   : > { %5872 = vmatprep.subr.bf16.mxu1 %v6579_v25 }
 0x230   : > { %3348 = vrot.lane.b32.xlu1 %v7540_v54, %s6711_s10  ;;  %5873 = vmatpush3.bf16.msra.mxu1 %v6579_v25  ;;  %v6581_v25 = vld [vmem:[%s9417_s3 + $0x18] sm:$0xff]  }
 0x231   : > { %v7869_v48 = vpop.permute.xlu1 %1820  ;;  %v7871_v45 = vpop.permute.xlu0 %1825  ;;  %5874 = vmatprep.subr.bf16.mxu1 %v6580_v3 }
 0x232   : > { %9720 = vst [vmem:[#allocation96_spill] sm:$0xff] %v7869_v48  ;;  %9721 = vst [vmem:[#allocation97_spill] sm:$0xff] %v7871_v45  ;;  %3011 = vperm.xlu0 %6544, %v7666_v2  }
 0x234   : > { %2935 = vperm.xlu1 %6547, %v7552_v63   ;;  %5875 = vmatpush3.bf16.msra.mxu1 %v6580_v3  ;;  %v6582_v3 = vld [vmem:[%s9417_s3 + $0x20] sm:$0xff]  }
 0x235   : > { %v7878_v60 = vpop.permute.xlu1 %1830  ;;  %v7880_v37 = vpop.permute.xlu0 %1835  ;;  %5876 = vmatprep.subr.bf16.mxu1 %v6581_v25 }
 0x236   : > { %9722 = vst [vmem:[#allocation98_spill] sm:$0xff] %v7878_v60  ;;  %9723 = vst [vmem:[#allocation99_spill] sm:$0xff] %v7880_v37  ;;  %3386 = vrot.lane.b32.xlu0 %v7654_v26, %s6711_s10 }
 0x238   : > { %2943 = vperm.xlu1 %6547, %v7564_v52   ;;  %5877 = vmatpush3.bf16.msra.mxu1 %v6581_v25  ;;  %v6583_v25 = vld [vmem:[%s9417_s3 + $0x28] sm:$0xff]  }
 0x239   : > { %v7888_v45 = vpop.permute.xlu1 %1840  ;;  %v7890_v48 = vpop.permute.xlu0 %1845  ;;  %5878 = vmatprep.subr.bf16.mxu1 %v6582_v3 }
 0x23a   : > { %9724 = vst [vmem:[#allocation100_spill] sm:$0xff] %v7888_v45  ;;  %9725 = vst [vmem:[#allocation101_spill] sm:$0xff] %v7890_v48  ;;  %3390 = vrot.lane.b32.xlu0 %v7666_v2, %s6711_s10 }
 0x23c   : > { %3352 = vrot.lane.b32.xlu1 %v7552_v63, %s6711_s10  ;;  %5879 = vmatpush3.bf16.msra.mxu1 %v6582_v3 }
 0x23d   : > { %v7899_v37 = vpop.permute.xlu1 %1850  ;;  %v7901_v60 = vpop.permute.xlu0 %1855  ;;  %5880 = vmatprep.subr.bf16.mxu1 %v6583_v25 }
 0x23e   : > { %9726 = vst [vmem:[#allocation102_spill] sm:$0xff] %v7899_v37  ;;  %9727 = vst [vmem:[#allocation103_spill] sm:$0xff] %v7901_v60  ;;  %3019 = vperm.xlu0 %6544, %v7678_v29   ;;  %v7920_v60 = vmul.f32 %v7696_v41, %v6997_v34  ;;  %v7934_v34 = vmul.f32 %v7521_v38, %v7057_v58 }
 0x240   : > { %3356 = vrot.lane.b32.xlu1 %v7564_v52, %s6711_s10  ;;  %5881 = vmatpush3.bf16.msra.mxu1 %v6583_v25  ;;  %9730 = vst [vmem:[#allocation106_spill] sm:$0xff] %v7920_v60  ;;  %9733 = vst [vmem:[#allocation109_spill] sm:$0xff] %v7934_v34 }
 0x241   : > { %v7909_v48 = vpop.permute.xlu1 %1860  ;;  %v7911_v45 = vpop.permute.xlu0 %1865 }
 0x242   : > { %9728 = vst [vmem:[#allocation104_spill] sm:$0xff] %v7909_v48  ;;  %9729 = vst [vmem:[#allocation105_spill] sm:$0xff] %v7911_v45  ;;  %3027 = vperm.xlu0 %6544, %v7690_v11   ;;  %v6584_v45 = vld [vmem:[%s9417_s3 + $0x30] sm:$0xff]  }
 0x243   : > { %5882 = vmatprep.subr.bf16.mxu1 %v6584_v45 }
 0x244   : > { %2951 = vperm.xlu1 %6547, %v7576_v59   ;;  %5883 = vmatpush3.bf16.msra.mxu1 %v6584_v45  ;;  %v7948_v45 = vmul.f32 %v7534_v14, %v7075_v5  ;;  %v7969_v5 = vmul.f32 %v7558_v43, %v7131_v53  ;;  %v7990_v53 = vmul.f32 %v7582_v0, %v7154_v24 }
 0x245   : > { %v7922_v37 = vpop.permute.xlu1 %1870  ;;  %v7924_v3 = vpop.permute.xlu0 %1875  ;;  %v8011_v24 = vmul.f32 %v7606_v39, %v7176_v28  ;;  %v8032_v28 = vmul.f32 %v7630_v10, %v7188_v16  ;;  %v1539_v10 = vrot.slane %v7342_v46, 1  ;;  %v1540_v46 = vrot.slane %v7348_v21, 1 }
 0x246   : > { %9731 = vst [vmem:[#allocation107_spill] sm:$0xff] %v7922_v37  ;;  %9732 = vst [vmem:[#allocation108_spill] sm:$0xff] %v7924_v3  ;;  %6548 = vset.pattern.permute.xlu0 %v9700_v9  ;;  %v6585_v3 = vld [vmem:[%s9417_s3 + $0x38] sm:$0xff]  }
 0x247   : > { %702 = vperm.xlu0 %6548, %v7920_v60   ;;  %5884 = vmatprep.subr.bf16.mxu1 %v6585_v3  ;;  %9736 = vst [vmem:[#allocation112_spill] sm:$0xff] %v7948_v45  ;;  %9740 = vst [vmem:[#allocation116_spill] sm:$0xff] %v7969_v5 }
 0x248   : > { %2959 = vperm.xlu1 %6547, %v7588_v23   ;;  %5885 = vmatpush3.bf16.msra.mxu1 %v6585_v3  ;;  %9745 = vst [vmem:[#allocation121_spill] sm:$0xff] %v7990_v53  ;;  %9749 = vst [vmem:[#allocation125_spill] sm:$0xff] %v8011_v24 }
 0x249   : > { %v7936_v25 = vpop.permute.xlu1 %1880  ;;  %v7938_v37 = vpop.permute.xlu0 %1885  ;;  %9753 = vst [vmem:[#allocation129_spill] sm:$0xff] %v8032_v28 }
 0x24a   : > { %9734 = vst [vmem:[#allocation110_spill] sm:$0xff] %v7936_v25  ;;  %9735 = vst [vmem:[#allocation111_spill] sm:$0xff] %v7938_v37 }
 0x24b   : > { %717 = vperm.xlu0 %6548, %v7934_v34   ;;  %v7959_v34 = vmul.f32 %v7546_v56, %v7099_v35  ;;  %v7979_v35 = vmul.f32 %v7570_v7, %v7141_v55  ;;  %v8001_v55 = vmul.f32 %v7594_v32, %v7168_v1  ;;  %v8021_v1 = vmul.f32 %v7618_v47, %v7183_v30  ;;  %v8039_v30 = vld [vmem:[%s9417_s3 + $0x80] sm:$0xff]  }
 0x24c   : > { %3360 = vrot.lane.b32.xlu1 %v7576_v59, %s6711_s10  ;;  %9754 = vst [vmem:[#allocation130_spill] sm:$0xff] %v8039_v30  ;;  %5918 = vmatprep.subr.bf16.mxu1 %v8039_v30 }
 0x24d   : > { %v7950_v58 = vpop.permute.xlu0 %2903  ;;  %9738 = vst [vmem:[#allocation114_spill] sm:$0xff] %v7959_v34  ;;  %9742 = vst [vmem:[#allocation118_spill] sm:$0xff] %v7979_v35 }
 0x24e   : > { %v7952_v60 = vpop.permute.xlu1 %2195  ;;  %9747 = vst [vmem:[#allocation123_spill] sm:$0xff] %v8001_v55  ;;  %9751 = vst [vmem:[#allocation127_spill] sm:$0xff] %v8021_v1 }
 0x24f   : > { %9737 = vst [vmem:[#allocation113_spill] sm:$0xff] %v7952_v60  ;;  %727 = vperm.xlu0 %6548, %v7948_v45  }
 0x250   : > { %3364 = vrot.lane.b32.xlu1 %v7588_v23, %s6711_s10 }
 0x251   : > { %v7961_v37 = vpop.permute.xlu0 %2915 }
 0x252   : > { %v7963_v3 = vpop.permute.xlu1 %2203 }
 0x253   : > { %9739 = vst [vmem:[#allocation115_spill] sm:$0xff] %v7963_v3  ;;  %737 = vperm.xlu0 %6548, %v7959_v34  }
 0x254   : > { %2967 = vperm.xlu1 %6547, %v7600_v20  }
 0x255   : > { %v7971_v45 = vpop.permute.xlu0 %2923 }
 0x256   : > { %v7973_v60 = vpop.permute.xlu1 %2207 }
 0x257   : > { %9741 = vst [vmem:[#allocation117_spill] sm:$0xff] %v7973_v60  ;;  %747 = vperm.xlu0 %6548, %v7969_v5  }
 0x258   : > { %2975 = vperm.xlu1 %6547, %v7612_v61  }
 0x259   : > { %v7981_v3 = vpop.permute.xlu0 %3338 }
 0x25a   : > { %9743 = vst [vmem:[#allocation119_spill] sm:$0xff] %v7981_v3  ;;  %v7983_v34 = vpop.permute.xlu1 %2215 }
 0x25b   : > { %9744 = vst [vmem:[#allocation120_spill] sm:$0xff] %v7983_v34  ;;  %757 = vperm.xlu0 %6548, %v7979_v35  }
 0x25c   : > { %3368 = vrot.lane.b32.xlu1 %v7600_v20, %s6711_s10 }
 0x25d   : > { %v7992_v5 = vpop.permute.xlu0 %3342 }
 0x25e   : > { %v7994_v60 = vpop.permute.xlu1 %2223 }
 0x25f   : > { %9746 = vst [vmem:[#allocation122_spill] sm:$0xff] %v7994_v60  ;;  %767 = vperm.xlu0 %6548, %v7990_v53  }
 0x260   : > { %3372 = vrot.lane.b32.xlu1 %v7612_v61, %s6711_s10 }
 0x261   : > { %v8003_v35 = vpop.permute.xlu0 %2931 }
 0x262   : > { %v8005_v34 = vpop.permute.xlu1 %2231 }
 0x263   : > { %9748 = vst [vmem:[#allocation124_spill] sm:$0xff] %v8005_v34  ;;  %777 = vperm.xlu0 %6548, %v8001_v55  }
 0x264   : > { %2983 = vperm.xlu1 %6547, %v7624_v6  }
 0x265   : > { %v8013_v53 = vpop.permute.xlu0 %3346 }
 0x266   : > { %v8015_v60 = vpop.permute.xlu1 %2239 }
 0x267   : > { %9750 = vst [vmem:[#allocation126_spill] sm:$0xff] %v8015_v60  ;;  %787 = vperm.xlu0 %6548, %v8011_v24  }
 0x268   : > { %2991 = vperm.xlu1 %6547, %v7636_v22  }
 0x269   : > { %v8023_v34 = vpop.permute.xlu0 %3350 }
 0x26a   : > { %v8025_v55 = vpop.permute.xlu1 %2247 }
 0x26b   : > { %9752 = vst [vmem:[#allocation128_spill] sm:$0xff] %v8025_v55  ;;  %797 = vperm.xlu0 %6548, %v8021_v1   ;;  %v9756_v1 = vld [vmem:[#allocation18_spill] sm:$0xff] }
 0x26c   : > { %3376 = vrot.lane.b32.xlu1 %v7624_v6, %s6711_s10  ;;  %v8049_v16 = vmul.f32 %v7642_v49, %v9756_v1  ;;  %v9762_v1 = vld [vmem:[#allocation20_spill] sm:$0xff]  ;;  %v9779_v49 = vld [vmem:[#allocation71_spill] sm:$0xff] }
 0x26d   : > { %v8034_v24 = vpop.permute.xlu0 %2939  ;;  %v8069_v19 = vmul.f32 %v7666_v2, %v9762_v1  ;;  %v9768_v2 = vld [vmem:[#allocation22_spill] sm:$0xff]  ;;  %vm507_vm1 = vcmp.lt.s32.totalorder %v9779_v49, 1 }
 0x26e   : > { %v8041_v60 = vpop.permute.xlu1 %2255  ;;  %9757 = vst [vmem:[#allocation18_spill] sm:$0xff] %v8049_v16  ;;  %v8091_v1 = vmul.f32 %v7690_v11, %v9768_v2 }
 0x26f   : > { %9755 = vst [vmem:[#allocation131_spill] sm:$0xff] %v8041_v60  ;;  %807 = vperm.xlu0 %6548, %v8032_v28   ;;  %v9759_v60 = vld [vmem:[#allocation19_spill] sm:$0xff]  ;;  %9763 = vst [vmem:[#allocation20_spill] sm:$0xff] %v8069_v19 }
 0x270   : > { %3380 = vrot.lane.b32.xlu1 %v7636_v22, %s6711_s10  ;;  %v8059_v28 = vmul.f32 %v7654_v26, %v9759_v60  ;;  %v9765_v60 = vld [vmem:[#allocation21_spill] sm:$0xff]  ;;  %9769 = vst [vmem:[#allocation22_spill] sm:$0xff] %v8091_v1 }
 0x271   : > { %v8051_v55 = vpop.permute.xlu0 %2947 }
 0x272   : > { %v8053_v25 = vpop.permute.xlu1 %2263  ;;  %9760 = vst [vmem:[#allocation19_spill] sm:$0xff] %v8059_v28 }
 0x273   : > { %9758 = vst [vmem:[#allocation132_spill] sm:$0xff] %v8053_v25  ;;  %817 = vperm.xlu0 %6548, %v8049_v16  }
 0x274   : > { %2999 = vperm.xlu1 %6547, %v7648_v18  }
 0x275   : > { %v8061_v48 = vpop.permute.xlu0 %3354 }
 0x276   : > { %v8063_v50 = vpop.permute.xlu1 %2271 }
 0x277   : > { %9761 = vst [vmem:[#allocation133_spill] sm:$0xff] %v8063_v50  ;;  %827 = vperm.xlu0 %6548, %v8059_v28   ;;  %v8080_v50 = vmul.f32 %v7678_v29, %v9765_v60  ;;  %v9772_v60 = vld [vmem:[#allocation77_spill] sm:$0xff] }
 0x278   : > { %3007 = vperm.xlu1 %6547, %v7660_v12  }
 0x279   : > { %v8071_v25 = vpop.permute.xlu0 %3358  ;;  %9766 = vst [vmem:[#allocation21_spill] sm:$0xff] %v8080_v50 }
 0x27a   : > { %v8073_v16 = vpop.permute.xlu1 %2279 }
 0x27b   : > { %9764 = vst [vmem:[#allocation134_spill] sm:$0xff] %v8073_v16  ;;  %837 = vperm.xlu0 %6548, %v8069_v19  }
 0x27c   : > { %3384 = vrot.lane.b32.xlu1 %v7648_v18, %s6711_s10 }
 0x27d   : > { %v8082_v28 = vpop.permute.xlu0 %2955 }
 0x27e   : > { %v8084_v26 = vpop.permute.xlu1 %2287 }
 0x27f   : > { %9767 = vst [vmem:[#allocation135_spill] sm:$0xff] %v8084_v26  ;;  %847 = vperm.xlu0 %6548, %v8080_v50  }
 0x280   : > { %3388 = vrot.lane.b32.xlu1 %v7660_v12, %s6711_s10 }
 0x281   : > { %v8093_v19 = vpop.permute.xlu0 %2963 }
 0x282   : > { %9770 = vst [vmem:[#allocation136_spill] sm:$0xff] %v8093_v19  ;;  %v8095_v16 = vpop.permute.xlu1 %2295 }
 0x283   : > { %9771 = vst [vmem:[#allocation137_spill] sm:$0xff] %v8095_v16  ;;  %857 = vperm.xlu0 %6548, %v8091_v1  }
 0x284   : > { %3015 = vperm.xlu1 %6547, %v9772_v60  }
 0x285   : > { %v8099_v30 = vpop.permute.xlu0 %3362 }
 0x286   : > { %v8101_v26 = vpop.permute.xlu1 %2303 }
 0x287   : > { %9773 = vst [vmem:[#allocation77_spill] sm:$0xff] %v8101_v26  ;;  %2199 = vperm.xlu0 %6548, %v7500_v36   ;;  %v1536_v26 = vrot.slane %v7327_v44, 1  ;;  %v1537_v36 = vrot.slane %v7337_v13, 1 }
 0x288   : > { %3023 = vperm.xlu1 %6547, %v7684_v33  }
 0x289   : > { %v8105_v50 = vpop.permute.xlu0 %3366 }
 0x28a   : > { %v8107_v2 = vpop.permute.xlu1 %2311 }
 0x28b   : > { %9774 = vst [vmem:[#allocation138_spill] sm:$0xff] %v8107_v2  ;;  %2211 = vperm.xlu0 %6548, %v7527_v57   ;;  %v9778_v57 = vrot.slane %v7324_v4, 1 }
 0x28c   : > { %3392 = vrot.lane.b32.xlu1 %v9772_v60, %s6711_s10 }
 0x28d   : > { %v8112_v1 = vpop.permute.xlu0 %2971  ;;  %6549 = vset.pattern.permute.xlu1 %v9700_v9  ;;  %v8132_v9 = vsel %vm1567_vm0, %v1536_v26, %v1537_v36 }
 0x28e   : > { %9775 = vst [vmem:[#allocation139_spill] sm:$0xff] %v8112_v1  ;;  %v8115_v16 = vpop.permute.xlu1 %2319  ;;  %v8128_v1 = vsel %vm1567_vm0, %v9778_v57, %v1536_v26  ;;  %9781 = vst [vmem:[#allocation142_spill] sm:$0xff] %v8132_v9 }
 0x28f   : > { %9776 = vst [vmem:[#allocation140_spill] sm:$0xff] %v8115_v16  ;;  %2219 = vperm.xlu0 %6548, %v7540_v54   ;;  %9780 = vst [vmem:[#allocation71_spill] sm:$0xff] %v8128_v1  ;;  %v1538_v16 = vrot.slane %v7339_v17, 1 }
 0x290   : > { %3396 = vrot.lane.b32.xlu1 %v7684_v33, %s6711_s10 }
 0x291   : > { %v8122_v2 = vpop.permute.xlu0 %2979  ;;  %v8144_v19 = vsel %vm1567_vm0, %v1537_v36, %v1538_v16  ;;  %v8148_v26 = vsel %vm1567_vm0, %v1538_v16, %v1539_v10  ;;  %v8160_v16 = vsel %vm1567_vm0, %v1539_v10, %v1540_v46 }
 0x292   : > { %9777 = vst [vmem:[#allocation141_spill] sm:$0xff] %v8122_v2  ;;  %v3030_v2 = vmul.f32 %v7950_v58, %v8128_v1  ;;  %9782 = vst [vmem:[#allocation143_spill] sm:$0xff] %v8144_v19  ;;  %v3033_v58 = vmul.f32 %v7961_v37, %v8148_v26 }
 0x293   : > { %v2908_v54 = vpop.permute.xlu1 %2907  ;;  %2227 = vperm.xlu0 %6548, %v7552_v63   ;;  %9783 = vst [vmem:[#allocation144_spill] sm:$0xff] %v8148_v26  ;;  %v1541_v63 = vrot.slane %v7357_v31, 1  ;;  %9784 = vst [vmem:[#allocation145_spill] sm:$0xff] %v8160_v16 }
 0x294   : > { %v3031_v3 = vmul.f32 %v2908_v54, %v8132_v9 }
 0x295   : > { %v8140_v47 = vpop.permute.xlu0 %3370  ;;  %v8164_v54 = vsel %vm1567_vm0, %v1540_v46, %v1541_v63 }
 0x296   : > { %v3062_v57 = vpack.c.bf16 %v3031_v3, %v3030_v2  ;;  %9785 = vst [vmem:[#allocation146_spill] sm:$0xff] %v8164_v54 }
 0x297   : > { %v2912_v17 = vpop.permute.xlu1 %2911  ;;  %2235 = vperm.xlu0 %6548, %v7564_v52   ;;  %v3035_v52 = vmul.f32 %v7971_v45, %v8164_v54 }
 0x298   : > { %v3032_v3 = vmul.f32 %v2912_v17, %v8144_v19  ;;  %6078 = vmatprep.mubr.bf16.mxu0 %v3062_v57 }
 0x299   : > { %v8156_v2 = vpop.permute.xlu0 %3374 }
 0x29a   : > { %v3063_v36 = vpack.c.bf16 %v3033_v58, %v3032_v3  ;;  %v1543_v3 = vrot.slane %v7370_v51, 1 }
 0x29b   : > { %v2920_v9 = vpop.permute.xlu1 %2919  ;;  %2243 = vperm.xlu0 %6548, %v7576_v59   ;;  %v1542_v59 = vrot.slane %v7360_v15, 1 }
 0x29c   : > { %v3034_v17 = vmul.f32 %v2920_v9, %v8160_v16  ;;  %6079 = vmatmul.mubr.bf16.vlgmr.msra.gmra.mrb[0].mxu0 %v3063_v36 }
 0x29d   : > { %v8170_v37 = vpop.permute.xlu0 %2987 }
 0x29e   : > { %v3064_v57 = vpack.c.bf16 %v3035_v52, %v3034_v17  ;;  %v3435_v17 = vmul.f32 %v7521_v38, %v7992_v5  ;;  %v6595_v38 = vld [vmem:[%s9417_s3 + $0x180] sm:$0xff]  }
 0x29f   : > { %v3337_v58 = vpop.permute.xlu1 %3336  ;;  %2251 = vperm.xlu0 %6548, %v7588_v23   ;;  %v8184_v23 = vsel %vm1567_vm0, %v1541_v63, %v1542_v59  ;;  %v9788_v5 = vld [vmem:[#allocation50_spill] sm:$0xff]  ;;  %6110 = vmatprep.subr.bf16.mxu0 %v6595_v38 }
 0x2a0   : > { %v3432_v10 = vmul.f32 %v7696_v41, %v3337_v58  ;;  %6082 = vmatprep.mubr.bf16.mxu0 %v3064_v57  ;;  %9786 = vst [vmem:[#allocation147_spill] sm:$0xff] %v8184_v23  ;;  %v8188_v41 = vsel %vm1567_vm0, %v1542_v59, %v1543_v3  ;;  %v9789_v59 = vld [vmem:[#allocation51_spill] sm:$0xff]  ;;  %6111 = vmatpush3.bf16.msra.mxu0 %v6595_v38 }
 0x2a1   : > { %v8174_v46 = vpop.permute.xlu0 %2995  ;;  %9787 = vst [vmem:[#allocation148_spill] sm:$0xff] %v8188_v41 }
 0x2a2   : > { %3466 = vperm.xlu1 %6549, %v3432_v10   ;;  %v3437_v10 = vmul.f32 %v7534_v14, %v8013_v53  ;;  %v6597_v53 = vld [vmem:[%s9417_s3 + $0x188] sm:$0xff]  }
 0x2a3   : > { %v3341_v45 = vpop.permute.xlu1 %3340  ;;  %2259 = vperm.xlu0 %6548, %v7600_v20   ;;  %6112 = vmatprep.subr.bf16.mxu0 %v6597_v53 }
 0x2a4   : > { %v3434_v9 = vmul.f32 %v7514_v27, %v3341_v45  ;;  %v3037_v27 = vmul.f32 %v8003_v35, %v8188_v41  ;;  %v1544_v35 = vrot.slane %v9788_v5, 1  ;;  %v1545_v45 = vrot.slane %v9789_v59, 1  ;;  %6113 = vmatpush3.bf16.msra.mxu0 %v6597_v53 }
 0x2a5   : > { %v8180_v36 = vpop.permute.xlu0 %3378 }
 0x2a6   : > { %3476 = vperm.xlu1 %6549, %v3434_v9  }
 0x2a7   : > { %v2928_v52 = vpop.permute.xlu1 %2927  ;;  %2267 = vperm.xlu0 %6548, %v7612_v61  }
 0x2a8   : > { %v3036_v20 = vmul.f32 %v2928_v52, %v8184_v23  ;;  %v8222_v52 = vsel %vm1567_vm0, %v1543_v3, %v1544_v35 }
 0x2a9   : > { %v8196_v57 = vpop.permute.xlu0 %3382  ;;  %9790 = vst [vmem:[#allocation149_spill] sm:$0xff] %v8222_v52 }
 0x2aa   : > { %v3065_v58 = vpack.c.bf16 %v3037_v27, %v3036_v20  ;;  %3481 = vperm.xlu1 %6549, %v3435_v17   ;;  %v8226_v17 = vsel %vm1567_vm0, %v1544_v35, %v1545_v45  ;;  %v6599_v35 = vld [vmem:[%s9417_s3 + $0x190] sm:$0xff]  }
 0x2ab   : > { %v8198_v63 = vpop.permute.xlu1 %3344  ;;  %2275 = vperm.xlu0 %6548, %v7624_v6   ;;  %v3439_v6 = vmul.f32 %v7546_v56, %v8023_v34  ;;  %9791 = vst [vmem:[#allocation150_spill] sm:$0xff] %v8226_v17  ;;  %v1547_v56 = vrot.slane %v7390_v8, 1  ;;  %v3039_v20 = vmul.f32 %v8034_v24, %v8226_v17  ;;  %6114 = vmatprep.subr.bf16.mxu0 %v6599_v35 }
 0x2ac   : > { %6083 = vmatmul.mubr.bf16.gmra.mrb[4].mxu0 %v3065_v58  ;;  %v3441_v58 = vmul.f32 %v7558_v43, %v8061_v48 }
 0x2ad   : > { %v8203_v61 = vpop.permute.xlu0 %3003  ;;  %6115 = vmatpush3.bf16.msra.mxu0 %v6599_v35  ;;  %v3447_v35 = vmul.f32 %v7594_v32, %v8105_v50 }
 0x2ae   : > { %3491 = vperm.xlu1 %6549, %v3437_v10  }
 0x2af   : > { %v8210_v9 = vpop.permute.xlu1 %3348  ;;  %2283 = vperm.xlu0 %6548, %v7636_v22   ;;  %v9792_v22 = vld [vmem:[#allocation52_spill] sm:$0xff] }
 0x2b0   : > { %v1546_v27 = vrot.slane %v9792_v22, 1 }
 0x2b1   : > { %v8215_v14 = vpop.permute.xlu0 %3011 }
 0x2b2   : > { %3501 = vperm.xlu1 %6549, %v3439_v6   ;;  %v8247_v24 = vsel %vm1567_vm0, %v1546_v27, %v1547_v56  ;;  %v3443_v6 = vmul.f32 %v7570_v7, %v8071_v25  ;;  %v3445_v7 = vmul.f32 %v7582_v0, %v8099_v30  ;;  %v1549_v0 = vrot.slane %v7405_v62, 1 }
 0x2b3   : > { %v2936_v34 = vpop.permute.xlu1 %2935  ;;  %2291 = vperm.xlu0 %6548, %v7648_v18   ;;  %v8243_v18 = vsel %vm1567_vm0, %v1545_v45, %v1546_v27  ;;  %9794 = vst [vmem:[#allocation152_spill] sm:$0xff] %v8247_v24  ;;  %v3041_v48 = vmul.f32 %v8051_v55, %v8247_v24  ;;  %v6601_v27 = vld [vmem:[%s9417_s3 + $0x198] sm:$0xff]   ;;  %v9795_v55 = vld [vmem:[#allocation40_spill] sm:$0xff] }
 0x2b4   : > { %v3038_v3 = vmul.f32 %v2936_v34, %v8222_v52  ;;  %9793 = vst [vmem:[#allocation151_spill] sm:$0xff] %v8243_v18  ;;  %6116 = vmatprep.subr.bf16.mxu0 %v6601_v27 }
 0x2b5   : > { %v8236_v10 = vpop.permute.xlu0 %3386  ;;  %6117 = vmatpush3.bf16.msra.mxu0 %v6601_v27  ;;  %v1550_v27 = vrot.slane %v7408_v40, 1 }
 0x2b6   : > { %v3066_v38 = vpack.c.bf16 %v3039_v20, %v3038_v3  ;;  %3511 = vperm.xlu1 %6549, %v3441_v58   ;;  %v503_v20 = vrot.slane %v9795_v55, 7  ;;  %v9796_v58 = vld [vmem:[#allocation39_spill] sm:$0xff] }
 0x2b7   : > { %v2944_v43 = vpop.permute.xlu1 %2943  ;;  %2299 = vperm.xlu0 %6548, %v7660_v12   ;;  %v504_v3 = vrot.slane %v9796_v58, 7 }
 0x2b8   : > { %v3040_v53 = vmul.f32 %v2944_v43, %v8243_v18  ;;  %6086 = vmatprep.mubr.bf16.mxu0 %v3066_v38  ;;  %v6603_v38 = vld [vmem:[%s9417_s3 + $0x1a0] sm:$0xff]  }
 0x2b9   : > { %v8255_v34 = vpop.permute.xlu0 %3390  ;;  %6118 = vmatprep.subr.bf16.mxu0 %v6603_v38 }
 0x2ba   : > { %v3067_v45 = vpack.c.bf16 %v3041_v48, %v3040_v53  ;;  %3521 = vperm.xlu1 %6549, %v3443_v6   ;;  %6119 = vmatpush3.bf16.msra.mxu0 %v6603_v38  ;;  %v8284_v48 = vsel %vm507_vm1, %v503_v20, %v504_v3  ;;  %v473_v6 = vrot.slane %v7324_v4, 7  ;;  %v9798_v53 = vld [vmem:[#allocation69_spill] sm:$0xff]  ;;  %v474_v38 = vrot.slane %v7327_v44, 7 }
 0x2bb   : > { %v8260_v12 = vpop.permute.xlu1 %3352  ;;  %2307 = vperm.xlu0 %6548, %v9772_v60   ;;  %v1548_v60 = vrot.slane %v7396_v42, 1  ;;  %9797 = vst [vmem:[#allocation153_spill] sm:$0xff] %v8284_v48  ;;  %v9802_v24 = vrot.slane %v9798_v53, 7  ;;  %v9811_v44 = vld [vmem:[#allocation73_spill] sm:$0xff] }
 0x2bc   : > { %6087 = vmatmul.mubr.bf16.gmra.mrb[8].mxu0 %v3067_v45  ;;  %v3449_v45 = vmul.f32 %v7606_v39, %v8140_v47  ;;  %v6607_v47 = vld [vmem:[%s9417_s3 + $0x1b0] sm:$0xff]  }
 0x2bd   : > { %v8265_v25 = vpop.permute.xlu0 %3019  ;;  %v8293_v50 = vsel %vm1567_vm0, %v1547_v56, %v1548_v60  ;;  %v8297_v32 = vsel %vm1567_vm0, %v1548_v60, %v1549_v0  ;;  %v8312_v60 = vsel %vm507_vm1, %v9802_v24, %v503_v20  ;;  %v8326_v24 = vsel %vm1567_vm0, %v1549_v0, %v1550_v27  ;;  %v9810_v0 = vld [vmem:[#allocation136_spill] sm:$0xff] }
 0x2be   : > { %3531 = vperm.xlu1 %6549, %v3445_v7   ;;  %9799 = vst [vmem:[#allocation154_spill] sm:$0xff] %v8293_v50  ;;  %9800 = vst [vmem:[#allocation155_spill] sm:$0xff] %v8297_v32  ;;  %v9801_v7 = vld [vmem:[#allocation57_spill] sm:$0xff] }
 0x2bf   : > { %v8275_v30 = vpop.permute.xlu1 %3356  ;;  %2315 = vperm.xlu0 %6548, %v7684_v33   ;;  %v6605_v33 = vld [vmem:[%s9417_s3 + $0x1a8] sm:$0xff]   ;;  %9803 = vst [vmem:[#allocation156_spill] sm:$0xff] %v8312_v60  ;;  %9806 = vst [vmem:[#allocation157_spill] sm:$0xff] %v8326_v24  ;;  %v9807_v20 = vrot.slane %v9801_v7, 1 }
 0x2c0   : > { %6120 = vmatprep.subr.bf16.mxu0 %v6605_v33 }
 0x2c1   : > { %v8280_v43 = vpop.permute.xlu0 %3027  ;;  %6121 = vmatpush3.bf16.msra.mxu0 %v6605_v33  ;;  %v8332_v33 = vsel %vm1567_vm0, %v1550_v27, %v9807_v20 }
 0x2c2   : > { %3541 = vperm.xlu1 %6549, %v3447_v35   ;;  %v3043_v35 = vmul.f32 %v8082_v28, %v8297_v32  ;;  %v8319_v28 = vsel %vm507_vm1, %v504_v3, %v473_v6  ;;  %9808 = vst [vmem:[#allocation158_spill] sm:$0xff] %v8332_v33  ;;  %6122 = vmatprep.subr.bf16.mxu0 %v6607_v47 }
 0x2c3   : > { %v2952_v4 = vpop.permute.xlu1 %2951  ;;  %3394 = vrot.lane.b32.xlu0 %v7678_v29, %s6711_s10  ;;  %v9804_v29 = vld [vmem:[#allocation23_spill] sm:$0xff] }
 0x2c4   : > { %v3042_v56 = vmul.f32 %v2952_v4, %v8293_v50  ;;  %v861_v18 = vmul.f32 %v9804_v29, %v8284_v48  ;;  %9805 = vst [vmem:[#allocation23_spill] sm:$0xff] %v8319_v28  ;;  %v3451_v48 = vmul.f32 %v9811_v44, %v8156_v2  ;;  %v6609_v2 = vld [vmem:[%s9417_s3 + $0x1b8] sm:$0xff]  }
 0x2c5   : > { %6123 = vmatpush3.bf16.msra.mxu0 %v6607_v47 }
 0x2c6   : > { %v3068_v39 = vpack.c.bf16 %v3043_v35, %v3042_v56  ;;  %3551 = vperm.xlu1 %6549, %v3449_v45   ;;  %v703_v4 = vpop.permute.xlu0 %702  ;;  %v8339_v45 = vsel %vm507_vm1, %v473_v6, %v474_v38  ;;  %v475_v35 = vrot.slane %v7337_v13, 7  ;;  %v3045_v56 = vmul.f32 %v9810_v0, %v8332_v33  ;;  %v9814_v13 = vld [vmem:[#allocation44_spill] sm:$0xff]  ;;  %v9815_v0 = vld [vmem:[#allocation45_spill] sm:$0xff]  ;;  %6124 = vmatprep.subr.bf16.mxu0 %v6609_v2 }
 0x2c7   : > { %v860_v3 = vmul.f32 %v703_v4, %v8312_v60  ;;  %v2960_v29 = vpop.permute.xlu1 %2959  ;;  %3398 = vrot.lane.b32.xlu0 %v7690_v11, %s6711_s10  ;;  %9809 = vst [vmem:[#allocation159_spill] sm:$0xff] %v8339_v45  ;;  %v8350_v11 = vld [vmem:[%s9418_s4 + $0x8] sm:$0xff]  ;;  %v476_v60 = vrot.slane %v9814_v13, 7  ;;  %v477_v33 = vrot.slane %v9815_v0, 7  ;;  %v479_v0 = vrot.slane %v7357_v31, 7 }
 0x2c8   : > { %v3044_v27 = vmul.f32 %v2960_v29, %v8326_v24  ;;  %6090 = vmatprep.mubr.bf16.mxu0 %v3068_v39  ;;  %9812 = vst [vmem:[#allocation136_spill] sm:$0xff] %v8350_v11  ;;  %v9813_v4 = vld [vmem:[#allocation119_spill] sm:$0xff]  ;;  %v9816_v39 = vld [vmem:[#allocation24_spill] sm:$0xff] }
 0x2c9   : > { %v3433_v6 = vmul.f32 %v8350_v11, %v9813_v4  ;;  %v892_v20 = vpack.c.bf16 %v861_v18, %v860_v3  ;;  %v862_v29 = vmul.f32 %v9816_v39, %v8319_v28  ;;  %v8364_v4 = vld [vmem:[%s9418_s4 + $0x20] sm:$0xff]  ;;  %v478_v39 = vrot.slane %v7348_v21, 7  ;;  %6125 = vmatpush3.bf16.msra.mxu0 %v6609_v2  ;;  %v8397_v2 = vld [vmem:[%s9418_s4 + $0x30] sm:$0xff] }
 0x2ca   : > { %v3069_v32 = vpack.c.bf16 %v3045_v56, %v3044_v27  ;;  %3561 = vperm.xlu1 %6549, %v3451_v48   ;;  %v718_v44 = vpop.permute.xlu0 %717  ;;  %9817 = vst [vmem:[#allocation73_spill] sm:$0xff] %v8364_v4  ;;  %v3436_v18 = vmul.f32 %v8364_v4, %v8198_v63  ;;  %v8373_v48 = vsel %vm507_vm1, %v474_v38, %v475_v35  ;;  %v9819_v56 = vld [vmem:[#allocation74_spill] sm:$0xff]  ;;  %v480_v11 = vrot.slane %v7360_v15, 7  ;;  %v9833_v15 = vld [vmem:[#allocation61_spill] sm:$0xff] }
 0x2cb   : > { %v863_v47 = vmul.f32 %v718_v44, %v8339_v45  ;;  %v8369_v3 = vpop.permute.xlu1 %3360  ;;  %3471 = vperm.xlu0 %6548, %v3433_v6   ;;  %5886 = vmatprep.mubr.bf16.mxu1 %v892_v20  ;;  %9818 = vst [vmem:[#allocation119_spill] sm:$0xff] %v8373_v48  ;;  %v3453_v27 = vmul.f32 %v9819_v56, %v8180_v36  ;;  %v6587_v44 = vld [vmem:[%s9417_s3 + $0x88] sm:$0xff]   ;;  %v9821_v38 = vld [vmem:[#allocation58_spill] sm:$0xff]  ;;  %v9823_v56 = vld [vmem:[#allocation25_spill] sm:$0xff] }
 0x2cc   : > { %6091 = vmatmul.mubr.bf16.gmra.mrb[12].mxu0 %v3069_v32  ;;  %v8384_v6 = vsel %vm507_vm1, %v476_v60, %v477_v33  ;;  %v1552_v20 = vrot.slane %v9821_v38, 1  ;;  %v8389_v36 = vsel %vm507_vm1, %v475_v35, %v476_v60  ;;  %9825 = vst [vmem:[#allocation25_spill] sm:$0xff] %v8397_v2  ;;  %v3438_v21 = vmul.f32 %v8397_v2, %v8210_v9  ;;  %v9826_v60 = vld [vmem:[#allocation75_spill] sm:$0xff] }
 0x2cd   : > { %v893_v63 = vpack.c.bf16 %v863_v47, %v862_v29  ;;  %9820 = vst [vmem:[#allocation24_spill] sm:$0xff] %v8384_v6  ;;  %9822 = vst [vmem:[#allocation74_spill] sm:$0xff] %v8389_v36  ;;  %v864_v29 = vmul.f32 %v9823_v56, %v8373_v48  ;;  %v9824_v47 = vld [vmem:[#allocation59_spill] sm:$0xff]  ;;  %v3455_v35 = vmul.f32 %v9826_v60, %v8196_v57  ;;  %v481_v48 = vrot.slane %v7370_v51, 7 }
 0x2ce   : > { %3571 = vperm.xlu1 %6549, %v3453_v27   ;;  %v728_v32 = vpop.permute.xlu0 %727  ;;  %v1553_v31 = vrot.slane %v9824_v47, 1  ;;  %v9827_v27 = vld [vmem:[#allocation130_spill] sm:$0xff]  ;;  %v8409_v56 = vsel %vm507_vm1, %v478_v39, %v479_v0  ;;  %v9829_v57 = vrot.slane %v9801_v7, 1  ;;  %v8427_v51 = vsel %vm507_vm1, %v477_v33, %v478_v39  ;;  %v9835_v39 = vld [vmem:[#allocation139_spill] sm:$0xff] }
 0x2cf   : > { %v865_v13 = vmul.f32 %v728_v32, %v8389_v36  ;;  %v8402_v4 = vpop.permute.xlu1 %3364  ;;  %3486 = vperm.xlu0 %6548, %v3436_v18   ;;  %5887 = vmatmul.mubr.bf16.vlgmr.msra.gmra.mrb[0].mxu1 %v893_v63  ;;  %v6588_v18 = vld [vmem:[%s9417_s3 + $0x90] sm:$0xff]   ;;  %v9828_v63 = vld [vmem:[#allocation26_spill] sm:$0xff]  ;;  %v8449_v45 = vsel %vm507_vm1, %v480_v11, %v481_v48 }
 0x2d0   : > { %5919 = vmatpush3.bf16.msra.mxu1 %v9827_v27  ;;  %v866_v32 = vmul.f32 %v9828_v63, %v8384_v6  ;;  %v8422_v60 = vsel %vm1567_vm0, %v9829_v57, %v1552_v20  ;;  %v9831_v27 = vld [vmem:[#allocation60_spill] sm:$0xff]  ;;  %v8437_v6 = vld [vmem:[%s9418_s4 + $0x40] sm:$0xff] }
 0x2d1   : > { %v894_v9 = vpack.c.bf16 %v865_v13, %v864_v29  ;;  %5920 = vmatprep.subr.bf16.mxu1 %v6587_v44  ;;  %9830 = vst [vmem:[#allocation75_spill] sm:$0xff] %v8422_v60  ;;  %v1554_v2 = vrot.slane %v9831_v27, 1  ;;  %v8431_v29 = vsel %vm1567_vm0, %v1552_v20, %v1553_v31  ;;  %9834 = vst [vmem:[#allocation26_spill] sm:$0xff] %v8437_v6  ;;  %v9836_v20 = vld [vmem:[#allocation76_spill] sm:$0xff] }
 0x2d2   : > { %3581 = vperm.xlu1 %6549, %v3455_v35   ;;  %v738_v13 = vpop.permute.xlu0 %737  ;;  %9832 = vst [vmem:[#allocation130_spill] sm:$0xff] %v8431_v29  ;;  %v3440_v57 = vmul.f32 %v8437_v6, %v8260_v12  ;;  %v3047_v35 = vmul.f32 %v9835_v39, %v8431_v29  ;;  %v3457_v28 = vmul.f32 %v9836_v20, %v8236_v10  ;;  %v9837_v12 = vld [vmem:[#allocation27_spill] sm:$0xff] }
 0x2d3   : > { %v867_v36 = vmul.f32 %v738_v13, %v8427_v51  ;;  %v2968_v33 = vpop.permute.xlu1 %2967  ;;  %3496 = vperm.xlu0 %6548, %v3438_v21   ;;  %5890 = vmatprep.mubr.bf16.mxu1 %v894_v9  ;;  %v6589_v21 = vld [vmem:[%s9417_s3 + $0x98] sm:$0xff]   ;;  %v868_v9 = vmul.f32 %v9837_v12, %v8409_v56  ;;  %v8458_v13 = vsel %vm1567_vm0, %v1553_v31, %v1554_v2  ;;  %v8474_v31 = vld [vmem:[%s9418_s4 + $0x50] sm:$0xff] }
 0x2d4   : > { %v3046_v63 = vmul.f32 %v2968_v33, %v8422_v60  ;;  %5921 = vmatpush3.bf16.msra.mxu1 %v6587_v44  ;;  %9838 = vst [vmem:[#allocation139_spill] sm:$0xff] %v8458_v13  ;;  %v8462_v10 = vsel %vm507_vm1, %v479_v0, %v480_v11  ;;  %9841 = vst [vmem:[#allocation27_spill] sm:$0xff] %v8474_v31  ;;  %v3442_v11 = vmul.f32 %v8474_v31, %v8275_v30 }
 0x2d5   : > { %v895_v24 = vpack.c.bf16 %v867_v36, %v866_v32  ;;  %5922 = vmatprep.subr.bf16.mxu1 %v6588_v18  ;;  %v482_v36 = vrot.slane %v9788_v5, 7  ;;  %v9839_v32 = vrot.slane %v9833_v15, 1 }
 0x2d6   : > { %v3070_v44 = vpack.c.bf16 %v3047_v35, %v3046_v63  ;;  %3591 = vperm.xlu1 %6549, %v3457_v28   ;;  %v748_v33 = vpop.permute.xlu0 %747  ;;  %v483_v63 = vrot.slane %v9789_v59, 7  ;;  %v9842_v35 = vld [vmem:[#allocation141_spill] sm:$0xff] }
 0x2d7   : > { %v8469_v39 = vsel %vm1567_vm0, %v1554_v2, %v9839_v32  ;;  %v869_v0 = vmul.f32 %v748_v33, %v8462_v10  ;;  %v2976_v28 = vpop.permute.xlu1 %2975  ;;  %3506 = vperm.xlu0 %6548, %v3440_v57   ;;  %5891 = vmatmul.mubr.bf16.gmra.mrb[4].mxu1 %v895_v24  ;;  %v8485_v2 = vld [vmem:[%s9418_s4 + $0xd8] sm:$0xff]  ;;  %v6590_v24 = vld [vmem:[%s9417_s3 + $0xa0] sm:$0xff]   ;;  %v484_v57 = vrot.slane %v9792_v22, 7  ;;  %v485_v32 = vrot.slane %v7390_v8, 7 }
 0x2d8   : > { %9840 = vst [vmem:[#allocation76_spill] sm:$0xff] %v8469_v39  ;;  %v3049_v20 = vmul.f32 %v9842_v35, %v8469_v39  ;;  %v3459_v12 = vmul.f32 %v8485_v2, %v8255_v34  ;;  %v3048_v30 = vmul.f32 %v2976_v28, %v8458_v13  ;;  %6094 = vmatprep.mubr.bf16.mxu0 %v3070_v44  ;;  %v9843_v44 = vld [vmem:[#allocation28_spill] sm:$0xff] }
 0x2d9   : > { %5923 = vmatpush3.bf16.msra.mxu1 %v6588_v18  ;;  %v896_v33 = vpack.c.bf16 %v869_v0, %v868_v9  ;;  %v8497_v35 = vsel %vm507_vm1, %v481_v48, %v482_v36  ;;  %v870_v18 = vmul.f32 %v9843_v44, %v8449_v45  ;;  %v8504_v9 = vld [vmem:[%s9418_s4 + $0x60] sm:$0xff]  ;;  %v8511_v48 = vsel %vm507_vm1, %v482_v36, %v483_v63  ;;  %v9848_v36 = vld [vmem:[#allocation29_spill] sm:$0xff] }
 0x2da   : > { %5924 = vmatprep.subr.bf16.mxu1 %v6589_v21  ;;  %v3071_v59 = vpack.c.bf16 %v3049_v20, %v3048_v30  ;;  %3601 = vperm.xlu1 %6549, %v3459_v12   ;;  %v758_v34 = vpop.permute.xlu0 %757  ;;  %9844 = vst [vmem:[#allocation141_spill] sm:$0xff] %v8504_v9  ;;  %v3444_v0 = vmul.f32 %v8504_v9, %v8369_v3  ;;  %9845 = vst [vmem:[#allocation28_spill] sm:$0xff] %v8511_v48  ;;  %v486_v20 = vrot.slane %v7396_v42, 7  ;;  %v6591_v3 = vld [vmem:[%s9417_s3 + $0xa8] sm:$0xff]  }
 0x2db   : > { %v871_v28 = vmul.f32 %v758_v34, %v8497_v35  ;;  %v3369_v8 = vpop.permute.xlu1 %3368  ;;  %3516 = vperm.xlu0 %6548, %v3442_v11   ;;  %5894 = vmatprep.mubr.bf16.mxu1 %v896_v33  ;;  %v487_v12 = vrot.slane %v7405_v62, 7  ;;  %v8520_v11 = vsel %vm507_vm1, %v484_v57, %v485_v32  ;;  %v9847_v33 = vld [vmem:[#allocation62_spill] sm:$0xff]  ;;  %v872_v44 = vmul.f32 %v9848_v36, %v8511_v48  ;;  %v8533_v62 = vld [vmem:[%s9418_s4 + $0x70] sm:$0xff] }
 0x2dc   : > { %6095 = vmatmul.mubr.bf16.gmra.mrb[16].mxu0 %v3071_v59  ;;  %9846 = vst [vmem:[#allocation160_spill] sm:$0xff] %v8520_v11  ;;  %v1556_v34 = vrot.slane %v9847_v33, 1  ;;  %v8525_v59 = vsel %vm507_vm1, %v483_v63, %v484_v57  ;;  %9850 = vst [vmem:[#allocation29_spill] sm:$0xff] %v8533_v62  ;;  %v3446_v42 = vmul.f32 %v8533_v62, %v8402_v4  ;;  %v488_v57 = vrot.slane %v7408_v40, 7  ;;  %v6592_v4 = vld [vmem:[%s9417_s3 + $0xb0] sm:$0xff]  }
 0x2dd   : > { %5925 = vmatpush3.bf16.msra.mxu1 %v6589_v21  ;;  %v897_v30 = vpack.c.bf16 %v871_v28, %v870_v18  ;;  %v9849_v18 = vld [vmem:[#allocation63_spill] sm:$0xff]  ;;  %v8540_v63 = vsel %vm507_vm1, %v486_v20, %v487_v12  ;;  %v489_v36 = vrot.slane %v9801_v7, 7  ;;  %v8558_v40 = vsel %vm507_vm1, %v485_v32, %v486_v20  ;;  %v9857_v7 = vld [vmem:[#allocation65_spill] sm:$0xff] }
 0x2de   : > { %5926 = vmatprep.subr.bf16.mxu1 %v6590_v24  ;;  %v768_v21 = vpop.permute.xlu0 %767  ;;  %v1557_v28 = vrot.slane %v9849_v18, 1  ;;  %9851 = vst [vmem:[#allocation161_spill] sm:$0xff] %v8540_v63 }
 0x2df   : > { %v873_v22 = vmul.f32 %v768_v21, %v8525_v59  ;;  %v3373_v5 = vpop.permute.xlu1 %3372  ;;  %3526 = vperm.xlu0 %6548, %v3444_v0   ;;  %5895 = vmatmul.mubr.bf16.gmra.mrb[8].mxu1 %v897_v30  ;;  %v9852_v21 = vld [vmem:[#allocation30_spill] sm:$0xff]  ;;  %v9853_v0 = vrot.slane %v9833_v15, 1  ;;  %v9855_v30 = vld [vmem:[#allocation64_spill] sm:$0xff] }
 0x2e0   : > { %v874_v62 = vmul.f32 %v9852_v21, %v8520_v11  ;;  %v1558_v31 = vrot.slane %v9855_v30, 1  ;;  %v8568_v21 = vld [vmem:[%s9418_s4 + $0x80] sm:$0xff] }
 0x2e1   : > { %5927 = vmatpush3.bf16.msra.mxu1 %v6590_v24  ;;  %v898_v9 = vpack.c.bf16 %v873_v22, %v872_v44  ;;  %v8553_v24 = vsel %vm1567_vm0, %v9853_v0, %v1556_v34  ;;  %v8562_v44 = vsel %vm1567_vm0, %v1556_v34, %v1557_v28  ;;  %9858 = vst [vmem:[#allocation163_spill] sm:$0xff] %v8568_v21 }
 0x2e2   : > { %5928 = vmatprep.subr.bf16.mxu1 %v6591_v3  ;;  %9854 = vst [vmem:[#allocation30_spill] sm:$0xff] %v8553_v24  ;;  %v778_v22 = vpop.permute.xlu0 %777  ;;  %9856 = vst [vmem:[#allocation162_spill] sm:$0xff] %v8562_v44  ;;  %v3448_v0 = vmul.f32 %v8568_v21, %v3369_v8  ;;  %v3051_v32 = vmul.f32 %v8170_v37, %v8562_v44  ;;  %v8577_v34 = vsel %vm507_vm1, %v488_v57, %v489_v36  ;;  %v6593_v8 = vld [vmem:[%s9417_s3 + $0xb8] sm:$0xff]  }
 0x2e3   : > { %v875_v11 = vmul.f32 %v778_v22, %v8558_v40  ;;  %v2984_v48 = vpop.permute.xlu1 %2983  ;;  %3536 = vperm.xlu0 %6548, %v3446_v42   ;;  %5898 = vmatprep.mubr.bf16.mxu1 %v898_v9  ;;  %v9859_v22 = vld [vmem:[#allocation31_spill] sm:$0xff]  ;;  %v8586_v9 = vsel %vm1567_vm0, %v1557_v28, %v1558_v31  ;;  %v8590_v37 = vsel %vm507_vm1, %v487_v12, %v488_v57  ;;  %v490_v12 = vrot.slane %v9821_v38, 7 }
 0x2e4   : > { %v3050_v20 = vmul.f32 %v2984_v48, %v8553_v24  ;;  %v876_v42 = vmul.f32 %v9859_v22, %v8540_v63  ;;  %9860 = vst [vmem:[#allocation31_spill] sm:$0xff] %v8586_v9  ;;  %v8601_v22 = vld [vmem:[%s9418_s4 + $0x90] sm:$0xff]  ;;  %v491_v57 = vrot.slane %v9824_v47, 7 }
 0x2e5   : > { %5929 = vmatpush3.bf16.msra.mxu1 %v6591_v3  ;;  %v899_v6 = vpack.c.bf16 %v875_v11, %v874_v62  ;;  %v9861_v62 = vrot.slane %v9857_v7, 1  ;;  %9863 = vst [vmem:[#allocation165_spill] sm:$0xff] %v8601_v22  ;;  %v3450_v28 = vmul.f32 %v8601_v22, %v3373_v5  ;;  %v8613_v5 = vld [vmem:[%s9417_s3 + $0xc0] sm:$0xff]   ;;  %v8653_v47 = vld [vmem:[%s9418_s4 + $0xb0] sm:$0xff] }
 0x2e6   : > { %5930 = vmatprep.subr.bf16.mxu1 %v6592_v4  ;;  %v3072_v48 = vpack.c.bf16 %v3051_v32, %v3050_v20  ;;  %v788_v3 = vpop.permute.xlu0 %787  ;;  %9872 = vst [vmem:[#allocation168_spill] sm:$0xff] %v8653_v47 }
 0x2e7   : > { %v8596_v11 = vsel %vm1567_vm0, %v1558_v31, %v9861_v62  ;;  %v877_v21 = vmul.f32 %v788_v3, %v8590_v37  ;;  %v2992_v63 = vpop.permute.xlu1 %2991  ;;  %3546 = vperm.xlu0 %6548, %v3448_v0   ;;  %5899 = vmatmul.mubr.bf16.gmra.mrb[12].mxu1 %v899_v6  ;;  %v8617_v6 = vsel %vm507_vm1, %v489_v36, %v490_v12  ;;  %v9864_v62 = vld [vmem:[#allocation32_spill] sm:$0xff]  ;;  %v8631_v36 = vld [vmem:[%s9418_s4 + $0xa0] sm:$0xff] }
 0x2e8   : > { %9862 = vst [vmem:[#allocation164_spill] sm:$0xff] %v8596_v11  ;;  %v3053_v31 = vmul.f32 %v8174_v46, %v8596_v11  ;;  %v3052_v32 = vmul.f32 %v2992_v63, %v8586_v9  ;;  %6098 = vmatprep.mubr.bf16.mxu0 %v3072_v48  ;;  %v878_v46 = vmul.f32 %v9864_v62, %v8577_v34  ;;  %v492_v63 = vrot.slane %v9831_v27, 7 }
 0x2e9   : > { %5931 = vmatpush3.bf16.msra.mxu1 %v6592_v4  ;;  %v900_v20 = vpack.c.bf16 %v877_v21, %v876_v42  ;;  %v493_v4 = vrot.slane %v9833_v15, 7  ;;  %v8626_v48 = vsel %vm507_vm1, %v490_v12, %v491_v57  ;;  %9866 = vst [vmem:[#allocation166_spill] sm:$0xff] %v8631_v36 }
 0x2ea   : > { %5932 = vmatprep.subr.bf16.mxu1 %v6593_v8  ;;  %v3073_v0 = vpack.c.bf16 %v3053_v31, %v3052_v32  ;;  %v798_v3 = vpop.permute.xlu0 %797  ;;  %9865 = vst [vmem:[#allocation32_spill] sm:$0xff] %v8626_v48 }
 0x2eb   : > { %v879_v21 = vmul.f32 %v798_v3, %v8617_v6  ;;  %v3377_v42 = vpop.permute.xlu1 %3376  ;;  %3556 = vperm.xlu0 %6548, %v3450_v28   ;;  %5902 = vmatprep.mubr.bf16.mxu1 %v900_v20  ;;  %v9867_v3 = vld [vmem:[#allocation66_spill] sm:$0xff]  ;;  %v8638_v28 = vsel %vm507_vm1, %v491_v57, %v492_v63  ;;  %v9869_v20 = vld [vmem:[#allocation33_spill] sm:$0xff]  ;;  %v8644_v27 = vsel %vm507_vm1, %v492_v63, %v493_v4  ;;  %v495_v57 = vrot.slane %v9849_v18, 7 }
 0x2ec   : > { %v3452_v31 = vmul.f32 %v8631_v36, %v3377_v42  ;;  %6099 = vmatmul.mubr.bf16.gmra.mrb[20].mxu0 %v3073_v0  ;;  %v1560_v62 = vrot.slane %v9867_v3, 1  ;;  %9868 = vst [vmem:[#allocation167_spill] sm:$0xff] %v8638_v28  ;;  %v880_v15 = vmul.f32 %v9869_v20, %v8626_v48  ;;  %9870 = vst [vmem:[#allocation33_spill] sm:$0xff] %v8644_v27  ;;  %v9871_v42 = vld [vmem:[#allocation67_spill] sm:$0xff]  ;;  %v496_v63 = vrot.slane %v9855_v30, 7  ;;  %v9873_v36 = vld [vmem:[#allocation34_spill] sm:$0xff] }
 0x2ed   : > { %5933 = vmatpush3.bf16.msra.mxu1 %v6593_v8  ;;  %v901_v32 = vpack.c.bf16 %v879_v21, %v878_v46  ;;  %v1561_v0 = vrot.slane %v9871_v42, 1  ;;  %v494_v21 = vrot.slane %v9847_v33, 7 }
 0x2ee   : > { %5966 = vmatprep.subr.bf16.mxu1 %v8613_v5  ;;  %v808_v12 = vpop.permute.xlu0 %807 }
 0x2ef   : > { %v881_v8 = vmul.f32 %v808_v12, %v8638_v28  ;;  %v3381_v46 = vpop.permute.xlu1 %3380  ;;  %3566 = vperm.xlu0 %6548, %v3452_v31   ;;  %5903 = vmatmul.mubr.bf16.gmra.mrb[16].mxu1 %v901_v32  ;;  %v882_v12 = vmul.f32 %v9873_v36, %v8644_v27  ;;  %v497_v31 = vrot.slane %v9857_v7, 7  ;;  %v9874_v32 = vrot.slane %v9857_v7, 1  ;;  %v9879_v36 = vld [vmem:[#allocation70_spill] sm:$0xff] }
 0x2f0   : > { %v3454_v20 = vmul.f32 %v8653_v47, %v3381_v46  ;;  %v8668_v33 = vsel %vm507_vm1, %v493_v4, %v494_v21  ;;  %v8672_v46 = vsel %vm1567_vm0, %v1560_v62, %v1561_v0  ;;  %v1563_v30 = vrot.slane %v9879_v36, 1 }
 0x2f1   : > { %v902_v38 = vpack.c.bf16 %v881_v8, %v880_v15  ;;  %v8664_v18 = vsel %vm1567_vm0, %v9874_v32, %v1560_v62  ;;  %9876 = vst [vmem:[#allocation169_spill] sm:$0xff] %v8668_v33  ;;  %9877 = vst [vmem:[#allocation170_spill] sm:$0xff] %v8672_v46  ;;  %v9878_v15 = vld [vmem:[#allocation68_spill] sm:$0xff]  ;;  %v8679_v32 = vsel %vm507_vm1, %v494_v21, %v495_v57 }
 0x2f2   : > { %9875 = vst [vmem:[#allocation34_spill] sm:$0xff] %v8664_v18  ;;  %v818_v22 = vpop.permute.xlu0 %817  ;;  %v1562_v8 = vrot.slane %v9878_v15, 1  ;;  %9880 = vst [vmem:[#allocation171_spill] sm:$0xff] %v8679_v32  ;;  %v3055_v4 = vmul.f32 %v8203_v61, %v8672_v46  ;;  %v8686_v48 = vsel %vm507_vm1, %v496_v63, %v497_v31 }
 0x2f3   : > { %v883_v47 = vmul.f32 %v818_v22, %v8668_v33  ;;  %v3000_v7 = vpop.permute.xlu1 %2999  ;;  %3576 = vperm.xlu0 %6548, %v3454_v20   ;;  %5906 = vmatprep.mubr.bf16.mxu1 %v902_v38  ;;  %v8690_v22 = vsel %vm507_vm1, %v495_v57, %v496_v63  ;;  %v9881_v33 = vld [vmem:[#allocation35_spill] sm:$0xff]  ;;  %v498_v57 = vrot.slane %v9867_v3, 7  ;;  %v1565_v3 = vrot.slane %v9795_v55, 1 }
 0x2f4   : > { %v3054_v27 = vmul.f32 %v3000_v7, %v8664_v18  ;;  %v884_v21 = vmul.f32 %v9881_v33, %v8679_v32  ;;  %v8696_v28 = vsel %vm1567_vm0, %v1561_v0, %v1562_v8  ;;  %v8700_v61 = vsel %vm1567_vm0, %v1562_v8, %v1563_v30 }
 0x2f5   : > { %v903_v62 = vpack.c.bf16 %v883_v47, %v882_v12  ;;  %9882 = vst [vmem:[#allocation35_spill] sm:$0xff] %v8696_v28  ;;  %9883 = vst [vmem:[#allocation172_spill] sm:$0xff] %v8700_v61  ;;  %v3057_v63 = vmul.f32 %v8215_v14, %v8700_v61  ;;  %v8710_v12 = vsel %vm507_vm1, %v497_v31, %v498_v57  ;;  %v501_v31 = vrot.slane %v9879_v36, 7  ;;  %v9892_v36 = vld [vmem:[#allocation78_spill] sm:$0xff] }
 0x2f6   : > { %v3074_v20 = vpack.c.bf16 %v3055_v4, %v3054_v27  ;;  %v828_v38 = vpop.permute.xlu0 %827  ;;  %v499_v27 = vrot.slane %v9871_v42, 7  ;;  %v1564_v55 = vrot.slane %v9798_v53, 1 }
 0x2f7   : > { %v885_v7 = vmul.f32 %v828_v38, %v8690_v22  ;;  %v3008_v47 = vpop.permute.xlu1 %3007  ;;  %5907 = vmatmul.mubr.bf16.gmra.mrb[20].mxu1 %v903_v62  ;;  %v9884_v38 = vld [vmem:[#allocation36_spill] sm:$0xff] }
 0x2f8   : > { %v3056_v33 = vmul.f32 %v3008_v47, %v8696_v28  ;;  %6102 = vmatprep.mubr.bf16.mxu0 %v3074_v20  ;;  %v886_v62 = vmul.f32 %v9884_v38, %v8686_v48  ;;  %v8718_v14 = vsel %vm507_vm1, %v498_v57, %v499_v27  ;;  %v500_v20 = vrot.slane %v9878_v15, 7 }
 0x2f9   : > { %v904_v0 = vpack.c.bf16 %v885_v7, %v884_v21  ;;  %v8725_v21 = vld [vmem:[%s9418_s4 + $0xc0] sm:$0xff] }
 0x2fa   : > { %v3075_v8 = vpack.c.bf16 %v3057_v63, %v3056_v33  ;;  %v838_v4 = vpop.permute.xlu0 %837  ;;  %9885 = vst [vmem:[#allocation36_spill] sm:$0xff] %v8725_v21  ;;  %v8730_v63 = vsel %vm507_vm1, %v499_v27, %v500_v20  ;;  %v9887_v33 = vld [vmem:[#allocation37_spill] sm:$0xff]  ;;  %v8744_v27 = vsel %vm507_vm1, %v500_v20, %v501_v31 }
 0x2fb   : > { %v887_v42 = vmul.f32 %v838_v4, %v8710_v12  ;;  %v3385_v32 = vpop.permute.xlu1 %3384  ;;  %5910 = vmatprep.mubr.bf16.mxu1 %v904_v0  ;;  %9886 = vst [vmem:[#allocation173_spill] sm:$0xff] %v8730_v63  ;;  %v888_v0 = vmul.f32 %v9887_v33, %v8718_v14  ;;  %v9888_v4 = vrot.slane %v9796_v58, 1  ;;  %v9890_v33 = vld [vmem:[#allocation72_spill] sm:$0xff] }
 0x2fc   : > { %v3456_v7 = vmul.f32 %v8725_v21, %v3385_v32  ;;  %6103 = vmatmul.mubr.bf16.gmra.mrb[24].mxu0 %v3075_v8  ;;  %v8749_v8 = vld [vmem:[%s9418_s4 + $0xd0] sm:$0xff]  ;;  %v9894_v21 = vld [vmem:[#allocation38_spill] sm:$0xff]  ;;  %v3061_v49 = vmul.f32 %v8280_v43, %v9890_v33 }
 0x2fd   : > { %v905_v47 = vpack.c.bf16 %v887_v42, %v886_v62  ;;  %v8738_v38 = vsel %vm1567_vm0, %v1565_v3, %v9888_v4  ;;  %v9891_v4 = vld [vmem:[#allocation79_spill] sm:$0xff] }
 0x2fe   : > { %3586 = vperm.xlu0 %6548, %v3456_v7   ;;  %v848_v57 = vpop.permute.xlu0 %847  ;;  %9889 = vst [vmem:[#allocation37_spill] sm:$0xff] %v8738_v38  ;;  %v1889_v58 = vmul.f32 %v9891_v4, %v9890_v33  ;;  %v9911_v33 = vld [vmem:[#allocation91_spill] sm:$0xff] }
 0x2ff   : > { %v889_v32 = vmul.f32 %v848_v57, %v8730_v63  ;;  %v3389_v42 = vpop.permute.xlu1 %3388  ;;  %5911 = vmatmul.mubr.bf16.gmra.mrb[24].mxu1 %v905_v47  ;;  %v1888_v57 = vmul.f32 %v9892_v36, %v8738_v38  ;;  %v9893_v47 = vrot.slane %v9798_v53, 7  ;;  %v890_v63 = vmul.f32 %v9894_v21, %v8744_v27 }
 0x300   : > { %v3458_v62 = vmul.f32 %v8749_v8, %v3389_v42 }
 0x301   : > { %v906_v7 = vpack.c.bf16 %v889_v32, %v888_v0  ;;  %v8760_v20 = vsel %vm507_vm1, %v501_v31, %v9893_v47  ;;  %v8766_v0 = vsel %vm1567_vm0, %v1563_v30, %v1564_v55  ;;  %v8770_v32 = vsel %vm1567_vm0, %v1564_v55, %v1565_v3  ;;  %v9897_v3 = vld [vmem:[#allocation80_spill] sm:$0xff] }
 0x302   : > { %3596 = vperm.xlu0 %6548, %v3458_v62   ;;  %v858_v15 = vpop.permute.xlu0 %857  ;;  %9895 = vst [vmem:[#allocation79_spill] sm:$0xff] %v8766_v0  ;;  %9896 = vst [vmem:[#allocation78_spill] sm:$0xff] %v8770_v32  ;;  %v3059_v31 = vmul.f32 %v8265_v25, %v8770_v32  ;;  %v1920_v47 = vpack.c.bf16 %v1889_v58, %v1888_v57  ;;  %v9898_v25 = vld [vmem:[#allocation142_spill] sm:$0xff]  ;;  %v9901_v57 = vld [vmem:[#allocation83_spill] sm:$0xff] }
 0x303   : > { %v891_v36 = vmul.f32 %v858_v15, %v8760_v20  ;;  %v3016_v42 = vpop.permute.xlu1 %3015  ;;  %5914 = vmatprep.mubr.bf16.mxu1 %v906_v7  ;;  %v1890_v15 = vmul.f32 %v9897_v3, %v8128_v1  ;;  %v9899_v7 = vld [vmem:[#allocation81_spill] sm:$0xff]  ;;  %v9900_v58 = vld [vmem:[#allocation82_spill] sm:$0xff]  ;;  %v9910_v1 = vld [vmem:[#allocation152_spill] sm:$0xff] }
 0x304   : > { %v3058_v62 = vmul.f32 %v3016_v42, %v8766_v0  ;;  %v1891_v42 = vmul.f32 %v9899_v7, %v9898_v25 }
 0x305   : > { %v907_v4 = vpack.c.bf16 %v891_v36, %v890_v63  ;;  %v1892_v63 = vmul.f32 %v9900_v58, %v8144_v19  ;;  %v1893_v36 = vmul.f32 %v9901_v57, %v8148_v26 }
 0x306   : > { %v3076_v21 = vpack.c.bf16 %v3059_v31, %v3058_v62  ;;  %v8776_v53 = vpop.permute.xlu0 %2199 }
 0x307   : > { %v3024_v30 = vpop.permute.xlu1 %3023  ;;  %5915 = vmatmul.mubr.bf16.gmra.mrb[28].mxu1 %v907_v4  ;;  %v8794_v4 = vld [vmem:[%s9418_s4 + $0xe0] sm:$0xff]  ;;  %v1922_v3 = vpack.c.bf16 %v1893_v36, %v1892_v63  ;;  %v9903_v63 = vld [vmem:[#allocation85_spill] sm:$0xff]  ;;  %v6598_v36 = vld [vmem:[%s9417_s3 + $0xd0] sm:$0xff]  }
 0x308   : > { %v3060_v55 = vmul.f32 %v3024_v30, %v8738_v38  ;;  %5934 = vmatprep.mubr.bf16.mxu1 %v1920_v47  ;;  %6106 = vmatprep.mubr.bf16.mxu0 %v3076_v21  ;;  %v1921_v21 = vpack.c.bf16 %v1891_v42, %v1890_v15  ;;  %v6596_v30 = vld [vmem:[%s9417_s3 + $0xc8] sm:$0xff]   ;;  %v9902_v15 = vld [vmem:[#allocation84_spill] sm:$0xff]  ;;  %v1895_v57 = vmul.f32 %v9903_v63, %v8164_v54  ;;  %v9597_v63 = vmov 3   ;;  %v9914_v38 = vld [vmem:[#allocation93_spill] sm:$0xff] }
 0x309   : > { %v1894_v42 = vmul.f32 %v9902_v15, %v8160_v16 }
 0x30a   : > { %v3077_v31 = vpack.c.bf16 %v3061_v49, %v3060_v55  ;;  %v8789_v62 = vpop.permute.xlu0 %2211  ;;  %v8805_v55 = vld [vmem:[%s9418_s4 + $0xf0] sm:$0xff] }
 0x30b   : > { %v3393_v43 = vpop.permute.xlu1 %3392 }
 0x30c   : > { %v3460_v47 = vmul.f32 %v8794_v4, %v3393_v43  ;;  %6107 = vmatmul.mubr.bf16.gmra.mrb[28].mxu0 %v3077_v31  ;;  %v9904_v31 = vld [vmem:[#allocation86_spill] sm:$0xff] }
 0x30d   : > { %v1896_v43 = vmul.f32 %v9904_v31, %v8184_v23  ;;  %v6674_v31 = vld [vmem:[%s9418_s4] sm:$0xff] }
 0x30e   : > { %3606 = vperm.xlu0 %6548, %v3460_v47   ;;  %v8800_v7 = vpop.permute.xlu0 %2219  ;;  %v9905_v47 = vld [vmem:[#allocation87_spill] sm:$0xff] }
 0x30f   : > { %v3397_v49 = vpop.permute.xlu1 %3396  ;;  %5935 = vmatmul.mubr.bf16.vlgmr.msra.gmra.mrb[0].mxu1 %v1921_v21  ;;  %v1897_v21 = vmul.f32 %v9905_v47, %v8188_v41  ;;  %v9908_v47 = vld [vmem:[#allocation151_spill] sm:$0xff] }
 0x310   : > { %v3462_v58 = vmul.f32 %v8805_v55, %v3397_v49  ;;  %5938 = vmatprep.mubr.bf16.mxu1 %v1922_v3  ;;  %5967 = vmatpush3.bf16.msra.mxu1 %v8613_v5  ;;  %v1923_v5 = vpack.c.bf16 %v1895_v57, %v1894_v42  ;;  %v6600_v49 = vld [vmem:[%s9417_s3 + $0xd8] sm:$0xff]   ;;  %v9918_v41 = vld [vmem:[#allocation95_spill] sm:$0xff] }
 0x311   : > { %5968 = vmatprep.subr.bf16.mxu1 %v6596_v30  ;;  %v1924_v15 = vpack.c.bf16 %v1897_v21, %v1896_v43  ;;  %v9907_v42 = vld [vmem:[#allocation89_spill] sm:$0xff]  ;;  %v6602_v43 = vld [vmem:[%s9417_s3 + $0xe0] sm:$0xff]  }
 0x312   : > { %3616 = vperm.xlu0 %6548, %v3462_v58   ;;  %v8820_v3 = vpop.permute.xlu0 %2227  ;;  %v1899_v57 = vmul.f32 %v9907_v42, %v8226_v17  ;;  %v9909_v21 = vld [vmem:[#allocation90_spill] sm:$0xff]  ;;  %v6604_v42 = vld [vmem:[%s9417_s3 + $0xe8] sm:$0xff]  }
 0x314   : > { %5969 = vmatpush3.bf16.msra.mxu1 %v6596_v30  ;;  %v9906_v30 = vld [vmem:[#allocation88_spill] sm:$0xff] }
 0x315   : > { %5970 = vmatprep.subr.bf16.mxu1 %v6598_v36  ;;  %v1898_v58 = vmul.f32 %v9906_v30, %v8222_v52  ;;  %v9917_v52 = vld [vmem:[#allocation158_spill] sm:$0xff] }
 0x316   : > { %6550 = vset.pattern.permute.xlu0 %v9597_v63  ;;  %v8826_v25 = vpop.permute.xlu0 %2235  ;;  %v1900_v63 = vmul.f32 %v9909_v21, %v9908_v47  ;;  %v9916_v47 = vld [vmem:[#allocation94_spill] sm:$0xff] }
 0x317   : > { %3931 = vperm.xlu0 %6550, %v6674_v31   ;;  %5939 = vmatmul.mubr.bf16.gmra.mrb[4].mxu1 %v1923_v5  ;;  %v1901_v31 = vmul.f32 %v9911_v33, %v9910_v1  ;;  %v1925_v30 = vpack.c.bf16 %v1899_v57, %v1898_v58  ;;  %v9913_v57 = vld [vmem:[#allocation155_spill] sm:$0xff] }
 0x318   : > { %5942 = vmatprep.mubr.bf16.mxu1 %v1924_v15  ;;  %5971 = vmatpush3.bf16.msra.mxu1 %v6598_v36  ;;  %v6675_v36 = vld [vmem:[%s9418_s4 + $0x18] sm:$0xff]  ;;  %v8850_v15 = vld [vmem:[%s9417_s3 + $0x1c0] sm:$0xff]   ;;  %v1903_v1 = vmul.f32 %v9914_v38, %v9913_v57 }
 0x319   : > { %5972 = vmatprep.subr.bf16.mxu1 %v6600_v49  ;;  %6158 = vmatprep.subr.bf16.mxu0 %v8850_v15  ;;  %v1926_v33 = vpack.c.bf16 %v1901_v31, %v1900_v63  ;;  %v6606_v63 = vld [vmem:[%s9417_s3 + $0xf0] sm:$0xff]   ;;  %v9915_v31 = vld [vmem:[#allocation157_spill] sm:$0xff] }
 0x31a   : > { %v8842_v5 = vpop.permute.xlu0 %2243  ;;  %v1904_v17 = vmul.f32 %v9916_v47, %v9915_v31 }
 0x31b   : > { %3943 = vperm.xlu0 %6550, %v6675_v36   ;;  %v6676_v36 = vld [vmem:[%s9418_s4 + $0x28] sm:$0xff] }
 0x31c   : > { %5973 = vmatpush3.bf16.msra.mxu1 %v6600_v49  ;;  %v9912_v49 = vld [vmem:[#allocation92_spill] sm:$0xff] }
 0x31d   : > { %5974 = vmatprep.subr.bf16.mxu1 %v6602_v43  ;;  %v1902_v58 = vmul.f32 %v9912_v49, %v8293_v50 }
 0x31e   : > { %v8856_v21 = vpop.permute.xlu0 %2251 }
 0x31f   : > { %3951 = vperm.xlu0 %6550, %v6676_v36   ;;  %5943 = vmatmul.mubr.bf16.gmra.mrb[8].mxu1 %v1925_v30  ;;  %v1905_v36 = vmul.f32 %v9918_v41, %v9917_v52  ;;  %v1927_v38 = vpack.c.bf16 %v1903_v1, %v1902_v58  ;;  %v6678_v41 = vld [vmem:[%s9418_s4 + $0x48] sm:$0xff]  ;;  %v9919_v1 = vld [vmem:[#allocation96_spill] sm:$0xff]  ;;  %v9920_v58 = vld [vmem:[#allocation97_spill] sm:$0xff] }
 0x320   : > { %5946 = vmatprep.mubr.bf16.mxu1 %v1926_v33  ;;  %5975 = vmatpush3.bf16.msra.mxu1 %v6602_v43  ;;  %v6677_v43 = vld [vmem:[%s9418_s4 + $0x38] sm:$0xff]  ;;  %v9922_v52 = vld [vmem:[#allocation99_spill] sm:$0xff] }
 0x321   : > { %5976 = vmatprep.subr.bf16.mxu1 %v6604_v42  ;;  %v6608_v33 = vld [vmem:[%s9417_s3 + $0xf8] sm:$0xff]   ;;  %v1928_v49 = vpack.c.bf16 %v1905_v36, %v1904_v17  ;;  %v8885_v47 = vpop.permute.xlu1 %3466  ;;  %v9921_v17 = vld [vmem:[#allocation98_spill] sm:$0xff]  ;;  %v1909_v31 = vmul.f32 %v9922_v52, %v8469_v39 }
 0x322   : > { %v8872_v30 = vpop.permute.xlu0 %2259  ;;  %v1908_v36 = vmul.f32 %v9921_v17, %v8458_v13 }
 0x323   : > { %3959 = vperm.xlu0 %6550, %v6677_v43   ;;  %v1907_v43 = vmul.f32 %v9920_v58, %v8431_v29  ;;  %v6681_v58 = vld [vmem:[%s9418_s4 + $0x68] sm:$0xff] }
 0x324   : > { %5977 = vmatpush3.bf16.msra.mxu1 %v6604_v42  ;;  %v1906_v42 = vmul.f32 %v9919_v1, %v8422_v60  ;;  %v9937_v60 = vld [vmem:[#allocation115_spill] sm:$0xff] }
 0x325   : > { %5978 = vmatprep.subr.bf16.mxu1 %v6606_v63  ;;  %v8906_v1 = vpop.permute.xlu1 %3476 }
 0x326   : > { %v8880_v57 = vpop.permute.xlu0 %2267 }
 0x327   : > { %3967 = vperm.xlu0 %6550, %v6678_v41   ;;  %5947 = vmatmul.mubr.bf16.gmra.mrb[12].mxu1 %v1927_v38  ;;  %v6679_v38 = vld [vmem:[%s9418_s4 + $0x58] sm:$0xff]  ;;  %v1930_v41 = vpack.c.bf16 %v1909_v31, %v1908_v36  ;;  %v9926_v36 = vld [vmem:[#allocation103_spill] sm:$0xff] }
 0x328   : > { %5950 = vmatprep.mubr.bf16.mxu1 %v1928_v49  ;;  %5979 = vmatpush3.bf16.msra.mxu1 %v6606_v63  ;;  %v1929_v63 = vpack.c.bf16 %v1907_v43, %v1906_v42  ;;  %v8903_v49 = vld [vmem:[%s9417_s3 + $0x100] sm:$0xff]   ;;  %v9924_v43 = vld [vmem:[#allocation101_spill] sm:$0xff]  ;;  %v1913_v39 = vmul.f32 %v9926_v36, %v8596_v11 }
 0x329   : > { %5980 = vmatprep.subr.bf16.mxu1 %v6608_v33  ;;  %v1911_v17 = vmul.f32 %v9924_v43, %v8562_v44  ;;  %v6683_v43 = vld [vmem:[%s9418_s4 + $0x88] sm:$0xff]  ;;  %v9928_v11 = vld [vmem:[#allocation105_spill] sm:$0xff] }
 0x32a   : > { %v8895_v50 = vpop.permute.xlu0 %2275 }
 0x32b   : > { %3975 = vperm.xlu0 %6550, %v6679_v38   ;;  %v9925_v38 = vld [vmem:[#allocation102_spill] sm:$0xff] }
 0x32c   : > { %5981 = vmatpush3.bf16.msra.mxu1 %v6608_v33  ;;  %v9923_v33 = vld [vmem:[#allocation100_spill] sm:$0xff]  ;;  %v1912_v31 = vmul.f32 %v9925_v38, %v8586_v9  ;;  %v1915_v9 = vmul.f32 %v9928_v11, %v8672_v46  ;;  %v6685_v11 = vld [vmem:[%s9418_s4 + $0xa8] sm:$0xff] }
 0x32d   : > { %6254 = vmatprep.subr.bf16.mxu1 %v8903_v49  ;;  %v1910_v42 = vmul.f32 %v9923_v33, %v8553_v24  ;;  %v9927_v38 = vld [vmem:[#allocation104_spill] sm:$0xff] }
 0x32e   : > { %v8908_v52 = vpop.permute.xlu0 %2283  ;;  %v1932_v29 = vpack.c.bf16 %v1913_v39, %v1912_v31  ;;  %v1914_v36 = vmul.f32 %v9927_v38, %v8664_v18  ;;  %v9930_v39 = vld [vmem:[#allocation108_spill] sm:$0xff]  ;;  %v9933_v18 = vld [vmem:[#allocation159_spill] sm:$0xff] }
 0x32f   : > { %3983 = vperm.xlu0 %6550, %v6681_v58   ;;  %5951 = vmatmul.mubr.bf16.gmra.mrb[16].mxu1 %v1929_v63  ;;  %v6682_v58 = vld [vmem:[%s9418_s4 + $0x78] sm:$0xff]  ;;  %v3482_v63 = vpop.permute.xlu1 %3481 }
 0x330   : > { %5954 = vmatprep.mubr.bf16.mxu1 %v1930_v41  ;;  %v1931_v41 = vpack.c.bf16 %v1911_v17, %v1910_v42  ;;  %v1917_v42 = vmul.f32 %v9930_v39, %v8700_v61  ;;  %v9931_v39 = vld [vmem:[#allocation110_spill] sm:$0xff] }
 0x331   : > { %v1918_v61 = vmul.f32 %v9931_v39, %v8766_v0 }
 0x332   : > { %v8921_v13 = vpop.permute.xlu0 %2291 }
 0x333   : > { %3991 = vperm.xlu0 %6550, %v6682_v58   ;;  %v9929_v58 = vld [vmem:[#allocation107_spill] sm:$0xff]  ;;  %v3492_v17 = vpop.permute.xlu1 %3491 }
 0x334   : > { %v1916_v44 = vmul.f32 %v9929_v58, %v8696_v28  ;;  %v9932_v28 = vld [vmem:[#allocation111_spill] sm:$0xff] }
 0x335   : > { %v1919_v46 = vmul.f32 %v9932_v28, %v8770_v32 }
 0x336   : > { %v8926_v33 = vpop.permute.xlu0 %2299 }
 0x337   : > { %3999 = vperm.xlu0 %6550, %v6683_v43   ;;  %5955 = vmatmul.mubr.bf16.gmra.mrb[20].mxu1 %v1931_v41  ;;  %v6684_v41 = vld [vmem:[%s9418_s4 + $0x98] sm:$0xff]  ;;  %v1934_v43 = vpack.c.bf16 %v1917_v42, %v1916_v44  ;;  %v3502_v58 = vpop.permute.xlu1 %3501  ;;  %v1935_v39 = vpack.c.bf16 %v1919_v46, %v1918_v61  ;;  %v9938_v46 = vld [vmem:[#allocation74_spill] sm:$0xff] }
 0x338   : > { %5958 = vmatprep.mubr.bf16.mxu1 %v1932_v29  ;;  %v1933_v29 = vpack.c.bf16 %v1915_v9, %v1914_v36  ;;  %v2323_v9 = vmul.f32 %v8776_v53, %v9933_v18  ;;  %v6686_v36 = vld [vmem:[%s9418_s4 + $0xe8] sm:$0xff]  ;;  %v6688_v53 = vld [vmem:[%s9418_s4 + $0xf8] sm:$0xff] }
 0x339   : > { %v9939_v61 = vld [vmem:[#allocation117_spill] sm:$0xff] }
 0x33a   : > { %v8939_v31 = vpop.permute.xlu0 %2307 }
 0x33b   : > { %4007 = vperm.xlu0 %6550, %v6684_v41   ;;  %v6687_v41 = vld [vmem:[%s9418_s4 + $0xb8] sm:$0xff]  ;;  %v3512_v32 = vpop.permute.xlu1 %3511 }
 0x33e   : > { %v8944_v38 = vpop.permute.xlu0 %2315 }
 0x33f   : > { %4015 = vperm.xlu0 %6550, %v6685_v11   ;;  %5959 = vmatmul.mubr.bf16.gmra.mrb[24].mxu1 %v1933_v29  ;;  %v9934_v29 = vld [vmem:[#allocation23_spill] sm:$0xff] }
 0x340   : > { %5962 = vmatprep.mubr.bf16.mxu1 %v1934_v43  ;;  %v9935_v43 = vld [vmem:[#allocation113_spill] sm:$0xff] }
 0x341   : > { %v2322_v11 = vmul.f32 %v9935_v43, %v9934_v29 }
 0x342   : > { %v3395_v44 = vpop.permute.xlu0 %3394 }
 0x343   : > { %v3461_v42 = vmul.f32 %v6686_v36, %v3395_v44  ;;  %4023 = vperm.xlu0 %6550, %v6687_v41   ;;  %v2354_v28 = vpack.c.bf16 %v2323_v9, %v2322_v11  ;;  %v6689_v44 = vld [vmem:[%s9418_s4 + $0xc8] sm:$0xff]  ;;  %v2325_v9 = vmul.f32 %v9939_v61, %v9938_v46  ;;  %v9940_v11 = vld [vmem:[#allocation24_spill] sm:$0xff]  ;;  %v3522_v61 = vpop.permute.xlu1 %3521 }
 0x344   : > { %v9936_v41 = vld [vmem:[#allocation119_spill] sm:$0xff]  ;;  %v3626_v54 = vmul.f32 %v8906_v1, %v9940_v11  ;;  %v3629_v1 = vmul.f32 %v3492_v17, %v8462_v10 }
 0x345   : > { %3611 = vperm.xlu1 %6549, %v3461_v42   ;;  %v2324_v43 = vmul.f32 %v9937_v60, %v9936_v41  ;;  %v3624_v42 = vmul.f32 %v8885_v47, %v9936_v41  ;;  %v9941_v60 = vld [vmem:[#allocation120_spill] sm:$0xff] }
 0x346   : > { %v3399_v0 = vpop.permute.xlu0 %3398 }
 0x347   : > { %v3463_v24 = vmul.f32 %v6688_v53, %v3399_v0  ;;  %4031 = vperm.xlu0 %6550, %v6689_v44   ;;  %5963 = vmatmul.mubr.bf16.gmra.mrb[28].mxu1 %v1935_v39  ;;  %v2326_v0 = vmul.f32 %v8789_v62, %v9940_v11  ;;  %v3627_v39 = vmul.f32 %v3482_v63, %v8427_v51  ;;  %v9943_v62 = vld [vmem:[#allocation136_spill] sm:$0xff]  ;;  %v3532_v17 = vpop.permute.xlu1 %3531  ;;  %v9946_v11 = vld [vmem:[#allocation73_spill] sm:$0xff] }
 0x348   : > { %5982 = vmatprep.mubr.bf16.mxu1 %v2354_v28  ;;  %v2327_v44 = vmul.f32 %v9941_v60, %v8427_v51  ;;  %v2355_v16 = vpack.c.bf16 %v2325_v9, %v2324_v43  ;;  %v2328_v51 = vmul.f32 %v8800_v7, %v8409_v56 }
 0x349   : > { %3621 = vperm.xlu1 %6549, %v3463_v24   ;;  %v9942_v24 = vmov 3   ;;  %v3657_v26 = vpack.c.bf16 %v3627_v39, %v3626_v54  ;;  %v2330_v54 = vmul.f32 %v8820_v3, %v8449_v45  ;;  %v9945_v3 = vld [vmem:[#allocation124_spill] sm:$0xff]  ;;  %v9949_v39 = vld [vmem:[#allocation2_spill] sm:$0xff] }
 0x34a   : > { %v3472_v23 = vpop.permute.xlu0 %3471  ;;  %v2356_v41 = vpack.c.bf16 %v2327_v44, %v2326_v0  ;;  %v2331_v43 = vmul.f32 %v9945_v3, %v8497_v35  ;;  %v9957_v3 = vld [vmem:[#allocation5_spill] sm:$0xff] }
 0x34b   : > { %v3625_v28 = vmul.f32 %v3472_v23, %v9938_v46  ;;  %4039 = vperm.xlu0 %6550, %v8485_v2   ;;  %v6611_v2 = vld [vmem:[%s9417_s3 + $0x1c8] sm:$0xff]  }
 0x34d   : > { %v3656_v47 = vpack.c.bf16 %v3625_v28, %v3624_v42  ;;  %6551 = vset.pattern.permute.xlu1 %v9942_v24  ;;  %v2358_v42 = vpack.c.bf16 %v2331_v43, %v2330_v54  ;;  %v6612_v28 = vld [vmem:[%s9417_s3 + $0x1d0] sm:$0xff]   ;;  %v9951_v24 = vld [vmem:[#allocation25_spill] sm:$0xff] }
 0x34e   : > { %3935 = vperm.xlu1 %6551, %v9943_v62   ;;  %v3487_v19 = vpop.permute.xlu0 %3486  ;;  %v6693_v62 = vld [vmem:[%s9417_s3 + $0x118] sm:$0xff]   ;;  %v9954_v54 = vld [vmem:[#allocation4_spill] sm:$0xff] }
 0x34f   : > { %v3628_v63 = vmul.f32 %v3487_v19, %v8409_v56  ;;  %4047 = vperm.xlu0 %6550, %v6686_v36   ;;  %5983 = vmatmul.mubr.bf16.vlgmr.msra.gmra.mrb[0].mxu1 %v2355_v16  ;;  %v6690_v19 = vld [vmem:[%s9418_s4 + $0x10] sm:$0xff]  ;;  %v9944_v56 = vld [vmem:[#allocation122_spill] sm:$0xff] }
 0x350   : > { %6126 = vmatprep.mubr.bf16.mxu0 %v3656_v47  ;;  %5986 = vmatprep.mubr.bf16.mxu1 %v2356_v41  ;;  %v2329_v7 = vmul.f32 %v9944_v56, %v8462_v10  ;;  %v6692_v10 = vld [vmem:[%s9417_s3 + $0x110] sm:$0xff]  }
 0x351   : > { %v3658_v23 = vpack.c.bf16 %v3629_v1, %v3628_v63  ;;  %6127 = vmatmul.mubr.bf16.vlgmr.msra.gmra.mrb[0].mxu0 %v3657_v26  ;;  %6262 = vmatpush3.bf16.msra.mxu1 %v8903_v49  ;;  %v6691_v26 = vld [vmem:[%s9417_s3 + $0x108] sm:$0xff]   ;;  %v3631_v49 = vmul.f32 %v3502_v58, %v8497_v35  ;;  %v9947_v58 = vld [vmem:[#allocation28_spill] sm:$0xff]  ;;  %v9948_v35 = vmov 1   ;;  %v9952_v1 = vld [vmem:[#allocation126_spill] sm:$0xff] }
 0x352   : > { %3939 = vperm.xlu1 %6551, %v6690_v19   ;;  %v3497_v16 = vpop.permute.xlu0 %3496  ;;  %6255 = vmatprep.subr.bf16.mxu1 %v6691_v26  ;;  %v2357_v46 = vpack.c.bf16 %v2329_v7, %v2328_v51  ;;  %v2332_v60 = vmul.f32 %v8826_v25, %v9947_v58  ;;  %v2333_v63 = vmul.f32 %v9952_v1, %v8525_v59  ;;  %v9955_v7 = vld [vmem:[#allocation26_spill] sm:$0xff]  ;;  %v6615_v1 = vld [vmem:[%s9417_s3 + $0x1e8] sm:$0xff]  }
 0x353   : > { %v3630_v36 = vmul.f32 %v3497_v16, %v8449_v45  ;;  %4055 = vperm.xlu0 %6550, %v6688_v53   ;;  %6130 = vmatprep.mubr.bf16.mxu0 %v3658_v23  ;;  %v3633_v45 = vmul.f32 %v3512_v32, %v8525_v59  ;;  %v9950_v32 = vld [vmem:[#allocation160_spill] sm:$0xff]  ;;  %v3635_v51 = vmul.f32 %v3522_v61, %v8558_v40  ;;  %v6694_v61 = vld [vmem:[%s9417_s3 + $0x120] sm:$0xff]  }
 0x354   : > { %6159 = vmatpush3.bf16.msra.mxu0 %v8850_v15  ;;  %v3542_v15 = vpop.permute.xlu1 %3541  ;;  %v2334_v47 = vmul.f32 %v8842_v5, %v9950_v32  ;;  %v9953_v23 = vld [vmem:[#allocation128_spill] sm:$0xff]  ;;  %v2359_v19 = vpack.c.bf16 %v2333_v63, %v2332_v60 }
 0x355   : > { %v3659_v9 = vpack.c.bf16 %v3631_v49, %v3630_v36  ;;  %6263 = vmatpush3.bf16.msra.mxu1 %v6691_v26  ;;  %6160 = vmatprep.subr.bf16.mxu0 %v6611_v2  ;;  %v2335_v5 = vmul.f32 %v9953_v23, %v8558_v40  ;;  %v9956_v49 = vld [vmem:[#allocation161_spill] sm:$0xff] }
 0x356   : > { %3947 = vperm.xlu1 %6551, %v9946_v11   ;;  %v3507_v0 = vpop.permute.xlu0 %3506  ;;  %6256 = vmatprep.subr.bf16.mxu1 %v6692_v10  ;;  %v6613_v36 = vld [vmem:[%s9417_s3 + $0x1d8] sm:$0xff]   ;;  %v2336_v43 = vmul.f32 %v8856_v21, %v9956_v49  ;;  %v9959_v21 = vld [vmem:[#allocation131_spill] sm:$0xff] }
 0x357   : > { %v3632_v53 = vmul.f32 %v3507_v0, %v9947_v58  ;;  %6553 = vset.pattern.permute.xlu0 %v9948_v35  ;;  %5987 = vmatmul.mubr.bf16.gmra.mrb[4].mxu1 %v2357_v46  ;;  %v2360_v26 = vpack.c.bf16 %v2335_v5, %v2334_v47  ;;  %v6695_v0 = vld [vmem:[%s9417_s3 + $0x128] sm:$0xff]   ;;  %v9962_v47 = vld [vmem:[#allocation141_spill] sm:$0xff] }
 0x358   : > { %4369 = vperm.xlu0 %6553, %v9949_v39   ;;  %5990 = vmatprep.mubr.bf16.mxu1 %v2358_v42  ;;  %v3552_v56 = vpop.permute.xlu1 %3551  ;;  %v9958_v42 = vld [vmem:[#allocation27_spill] sm:$0xff] }
 0x359   : > { %v3660_v44 = vpack.c.bf16 %v3633_v45, %v3632_v53  ;;  %6131 = vmatmul.mubr.bf16.gmra.mrb[4].mxu0 %v3659_v9  ;;  %6264 = vmatpush3.bf16.msra.mxu1 %v6692_v10  ;;  %v2338_v9 = vmul.f32 %v8872_v30, %v8577_v34  ;;  %v2337_v10 = vmul.f32 %v9959_v21, %v8590_v37  ;;  %v9960_v53 = vld [vmem:[#allocation132_spill] sm:$0xff]  ;;  %v6617_v21 = vld [vmem:[%s9417_s3 + $0x1f8] sm:$0xff]  }
 0x35a   : > { %3955 = vperm.xlu1 %6551, %v9951_v24   ;;  %v3517_v41 = vpop.permute.xlu0 %3516  ;;  %6257 = vmatprep.subr.bf16.mxu1 %v6693_v62  ;;  %v3639_v45 = vmul.f32 %v3542_v15, %v8617_v6  ;;  %v2339_v30 = vmul.f32 %v9960_v53, %v8617_v6  ;;  %v9963_v15 = vld [vmem:[#allocation167_spill] sm:$0xff]  ;;  %v9964_v6 = vld [vmem:[#allocation32_spill] sm:$0xff]  ;;  %v9975_v53 = vld [vmem:[#allocation165_spill] sm:$0xff] }
 0x35b   : > { %v3634_v25 = vmul.f32 %v3517_v41, %v9950_v32  ;;  %6134 = vmatprep.mubr.bf16.mxu0 %v3660_v44  ;;  %6161 = vmatpush3.bf16.msra.mxu0 %v6611_v2  ;;  %v3637_v2 = vmul.f32 %v3532_v17, %v8590_v37  ;;  %v6614_v17 = vld [vmem:[%s9417_s3 + $0x1e0] sm:$0xff]   ;;  %v2361_v60 = vpack.c.bf16 %v2337_v10, %v2336_v43  ;;  %v9972_v43 = vld [vmem:[#allocation163_spill] sm:$0xff] }
 0x35c   : > { %4381 = vperm.xlu0 %6553, %v9954_v54   ;;  %6162 = vmatprep.subr.bf16.mxu0 %v6612_v28  ;;  %v3562_v39 = vpop.permute.xlu1 %3561  ;;  %v2362_v32 = vpack.c.bf16 %v2339_v30, %v2338_v9  ;;  %v3641_v24 = vmul.f32 %v3552_v56, %v9963_v15  ;;  %v2340_v63 = vmul.f32 %v8880_v57, %v9964_v6  ;;  %v9967_v54 = vld [vmem:[#allocation29_spill] sm:$0xff] }
 0x35d   : > { %v3661_v16 = vpack.c.bf16 %v3635_v51, %v3634_v25  ;;  %6265 = vmatpush3.bf16.msra.mxu1 %v6693_v62  ;;  %v9965_v62 = vld [vmem:[#allocation7_spill] sm:$0xff]  ;;  %v9966_v25 = vld [vmem:[#allocation33_spill] sm:$0xff] }
 0x35e   : > { %3963 = vperm.xlu1 %6551, %v9955_v7   ;;  %v3527_v59 = vpop.permute.xlu0 %3526  ;;  %6258 = vmatprep.subr.bf16.mxu1 %v6694_v61  ;;  %v2342_v23 = vmul.f32 %v8895_v50, %v9966_v25  ;;  %v9969_v7 = vld [vmem:[#allocation169_spill] sm:$0xff]  ;;  %v9970_v50 = vld [vmem:[#allocation134_spill] sm:$0xff] }
 0x35f   : > { %v3636_v40 = vmul.f32 %v3527_v59, %v9956_v49  ;;  %5991 = vmatmul.mubr.bf16.gmra.mrb[8].mxu1 %v2359_v19  ;;  %6163 = vmatpush3.bf16.msra.mxu0 %v6612_v28  ;;  %v9961_v28 = vld [vmem:[#allocation6_spill] sm:$0xff]  ;;  %v3643_v57 = vmul.f32 %v3562_v39, %v9969_v7  ;;  %v9976_v39 = vld [vmem:[#allocation135_spill] sm:$0xff] }
 0x360   : > { %4389 = vperm.xlu0 %6553, %v9957_v3   ;;  %5994 = vmatprep.mubr.bf16.mxu1 %v2360_v26  ;;  %v3572_v5 = vpop.permute.xlu1 %3571  ;;  %v9968_v26 = vld [vmem:[#allocation133_spill] sm:$0xff] }
 0x361   : > { %v3662_v46 = vpack.c.bf16 %v3637_v2, %v3636_v40  ;;  %6135 = vmatmul.mubr.bf16.gmra.mrb[8].mxu0 %v3661_v16  ;;  %6266 = vmatpush3.bf16.msra.mxu1 %v6694_v61  ;;  %v6697_v16 = vld [vmem:[%s9417_s3 + $0x138] sm:$0xff]   ;;  %v2341_v56 = vmul.f32 %v9968_v26, %v9963_v15  ;;  %v2343_v61 = vmul.f32 %v9970_v50, %v9969_v7  ;;  %v9971_v2 = vld [vmem:[#allocation8_spill] sm:$0xff]  ;;  %v9979_v15 = vld [vmem:[#allocation166_spill] sm:$0xff] }
 0x362   : > { %3971 = vperm.xlu1 %6551, %v9958_v42   ;;  %v3537_v11 = vpop.permute.xlu0 %3536  ;;  %6259 = vmatprep.subr.bf16.mxu1 %v6695_v0  ;;  %v3645_v9 = vmul.f32 %v3572_v5, %v8690_v22  ;;  %v9986_v26 = vld [vmem:[#allocation36_spill] sm:$0xff]  ;;  %v9987_v7 = vld [vmem:[#allocation13_spill] sm:$0xff] }
 0x363   : > { %v3638_v58 = vmul.f32 %v3537_v11, %v8577_v34  ;;  %6138 = vmatprep.mubr.bf16.mxu0 %v3662_v46  ;;  %6164 = vmatprep.subr.bf16.mxu0 %v6613_v36  ;;  %v6696_v34 = vld [vmem:[%s9417_s3 + $0x130] sm:$0xff]   ;;  %v2363_v49 = vpack.c.bf16 %v2341_v56, %v2340_v63  ;;  %v2364_v3 = vpack.c.bf16 %v2343_v61, %v2342_v23 }
 0x364   : > { %4397 = vperm.xlu0 %6553, %v9961_v28   ;;  %6165 = vmatpush3.bf16.msra.mxu0 %v6613_v36  ;;  %v6616_v36 = vld [vmem:[%s9417_s3 + $0x1f0] sm:$0xff]   ;;  %v3582_v11 = vpop.permute.xlu1 %3581  ;;  %v2345_v28 = vmul.f32 %v9976_v39, %v8690_v22 }
 0x365   : > { %v3663_v44 = vpack.c.bf16 %v3639_v45, %v3638_v58  ;;  %6267 = vmatpush3.bf16.msra.mxu1 %v6695_v0  ;;  %6166 = vmatprep.subr.bf16.mxu0 %v6614_v17  ;;  %v9974_v0 = vld [vmem:[#allocation9_spill] sm:$0xff]  ;;  %v2346_v58 = vmul.f32 %v8921_v13, %v8686_v48  ;;  %v9985_v23 = vld [vmem:[#allocation12_spill] sm:$0xff] }
 0x366   : > { %3979 = vperm.xlu1 %6551, %v9962_v47   ;;  %v3547_v37 = vpop.permute.xlu0 %3546  ;;  %6260 = vmatprep.subr.bf16.mxu1 %v6696_v34  ;;  %v9978_v47 = vld [vmem:[#allocation10_spill] sm:$0xff] }
 0x367   : > { %v3640_v41 = vmul.f32 %v3547_v37, %v9964_v6  ;;  %5995 = vmatmul.mubr.bf16.gmra.mrb[12].mxu1 %v2361_v60  ;;  %v3647_v60 = vmul.f32 %v3582_v11, %v8710_v12  ;;  %v2350_v6 = vmul.f32 %v8939_v31, %v8744_v27  ;;  %v9998_v11 = vld [vmem:[#allocation61_spill] sm:$0xff] }
 0x368   : > { %4405 = vperm.xlu0 %6553, %v9965_v62   ;;  %5998 = vmatprep.mubr.bf16.mxu1 %v2362_v32  ;;  %v9982_v62 = vld [vmem:[#allocation173_spill] sm:$0xff] }
 0x369   : > { %v3664_v51 = vpack.c.bf16 %v3641_v24, %v3640_v41  ;;  %6139 = vmatmul.mubr.bf16.gmra.mrb[12].mxu0 %v3663_v44  ;;  %6268 = vmatpush3.bf16.msra.mxu1 %v6696_v34  ;;  %v9113_v34 = vld [vmem:[%s9417_s3 + $0x200] sm:$0xff]   ;;  %v3592_v24 = vpop.permute.xlu1 %3591  ;;  %v9981_v41 = vld [vmem:[#allocation168_spill] sm:$0xff] }
 0x36a   : > { %3987 = vperm.xlu1 %6551, %v9967_v54   ;;  %v3557_v19 = vpop.permute.xlu0 %3556  ;;  %6261 = vmatprep.subr.bf16.mxu1 %v6697_v16 }
 0x36b   : > { %v3642_v59 = vmul.f32 %v3557_v19, %v9966_v25  ;;  %6142 = vmatprep.mubr.bf16.mxu0 %v3664_v51  ;;  %6167 = vmatpush3.bf16.msra.mxu0 %v6614_v17  ;;  %v9973_v17 = vld [vmem:[#allocation171_spill] sm:$0xff]  ;;  %v9984_v51 = vld [vmem:[#allocation138_spill] sm:$0xff]  ;;  %v3649_v19 = vmul.f32 %v3592_v24, %v9982_v62 }
 0x36c   : > { %4413 = vperm.xlu0 %6553, %v9971_v2   ;;  %6168 = vmatprep.subr.bf16.mxu0 %v6615_v1  ;;  %v2344_v10 = vmul.f32 %v8908_v52, %v9973_v17  ;;  %v9977_v52 = vld [vmem:[#allocation137_spill] sm:$0xff]  ;;  %v2351_v25 = vmul.f32 %v9984_v51, %v8760_v20  ;;  %v10013_v24 = vld [vmem:[#allocation114_spill] sm:$0xff] }
 0x36d   : > { %v3665_v40 = vpack.c.bf16 %v3643_v57, %v3642_v59  ;;  %6269 = vmatpush3.bf16.msra.mxu1 %v6697_v16  ;;  %v2347_v32 = vmul.f32 %v9977_v52, %v8710_v12  ;;  %v2348_v12 = vmul.f32 %v8926_v33, %v8718_v14  ;;  %v3602_v31 = vpop.permute.xlu1 %3601  ;;  %v9988_v57 = vld [vmem:[#allocation156_spill] sm:$0xff]  ;;  %v10017_v51 = vld [vmem:[#allocation118_spill] sm:$0xff] }
 0x36e   : > { %3995 = vperm.xlu1 %6551, %v9972_v43   ;;  %v3567_v46 = vpop.permute.xlu0 %3566  ;;  %v2365_v37 = vpack.c.bf16 %v2345_v28, %v2344_v10  ;;  %v2368_v33 = vpack.c.bf16 %v2351_v25, %v2350_v6  ;;  %v2352_v59 = vmul.f32 %v8944_v38, %v9988_v57  ;;  %v3651_v61 = vmul.f32 %v3602_v31, %v8760_v20  ;;  %v9992_v43 = vld [vmem:[#allocation57_spill] sm:$0xff]  ;;  %v9994_v20 = vld [vmem:[#allocation15_spill] sm:$0xff] }
 0x36f   : > { %v3644_v42 = vmul.f32 %v3567_v46, %v9973_v17  ;;  %5999 = vmatmul.mubr.bf16.gmra.mrb[16].mxu1 %v2363_v49  ;;  %6169 = vmatpush3.bf16.msra.mxu0 %v6615_v1  ;;  %v2366_v22 = vpack.c.bf16 %v2347_v32, %v2346_v58  ;;  %v9983_v1 = vld [vmem:[#allocation77_spill] sm:$0xff]  ;;  %v9990_v49 = vld [vmem:[#allocation140_spill] sm:$0xff]  ;;  %v9993_v46 = vld [vmem:[#allocation58_spill] sm:$0xff] }
 0x370   : > { %4421 = vperm.xlu0 %6553, %v9974_v0   ;;  %6002 = vmatprep.mubr.bf16.mxu1 %v2364_v3  ;;  %v2349_v63 = vmul.f32 %v9983_v1, %v9982_v62  ;;  %v9991_v3 = vld [vmem:[#allocation14_spill] sm:$0xff]  ;;  %v10005_v28 = vld [vmem:[#allocation65_spill] sm:$0xff]  ;;  %v10015_v62 = vld [vmem:[#allocation40_spill] sm:$0xff] }
 0x371   : > { %v3666_v45 = vpack.c.bf16 %v3645_v9, %v3644_v42  ;;  %6143 = vmatmul.mubr.bf16.gmra.mrb[16].mxu0 %v3665_v40  ;;  %6170 = vmatprep.subr.bf16.mxu0 %v6616_v36  ;;  %v2636_v9 = vpack.c.bf16 %v9993_v46, %v9992_v43  ;;  %v9997_v42 = vld [vmem:[#allocation16_spill] sm:$0xff]  ;;  %v9999_v0 = vld [vmem:[#allocation62_spill] sm:$0xff]  ;;  %v10007_v32 = vld [vmem:[#allocation109_spill] sm:$0xff] }
 0x372   : > { %4003 = vperm.xlu1 %6551, %v9975_v53   ;;  %v3577_v30 = vpop.permute.xlu0 %3576  ;;  %v2367_v5 = vpack.c.bf16 %v2349_v63, %v2348_v12  ;;  %v10002_v53 = vld [vmem:[#allocation3_spill] sm:$0xff]  ;;  %v10022_v31 = vld [vmem:[#allocation129_spill] sm:$0xff] }
 0x373   : > { %v3646_v44 = vmul.f32 %v3577_v30, %v8686_v48  ;;  %6146 = vmatprep.mubr.bf16.mxu0 %v3666_v45  ;;  %6171 = vmatpush3.bf16.msra.mxu0 %v6616_v36  ;;  %v9980_v48 = vld [vmem:[#allocation11_spill] sm:$0xff]  ;;  %v10000_v45 = vld [vmem:[#allocation106_spill] sm:$0xff]  ;;  %v10004_v30 = vld [vmem:[#allocation64_spill] sm:$0xff] }
 0x374   : > { %4429 = vperm.xlu0 %6553, %v9978_v47   ;;  %6172 = vmatprep.subr.bf16.mxu0 %v6617_v21  ;;  %v10009_v47 = vld [vmem:[#allocation67_spill] sm:$0xff] }
 0x375   : > { %v3667_v13 = vpack.c.bf16 %v3647_v60, %v3646_v44  ;;  %v10006_v60 = vld [vmem:[#allocation66_spill] sm:$0xff]  ;;  %v10016_v1 = vld [vmem:[#allocation39_spill] sm:$0xff] }
 0x376   : > { %4011 = vperm.xlu1 %6551, %v9979_v15   ;;  %v2640_v44 = vpack.c.bf16 %v10006_v60, %v10005_v28  ;;  %v10012_v15 = vld [vmem:[#allocation69_spill] sm:$0xff]  ;;  %v2643_v63 = vpack.c.bf16 %v10016_v1, %v10015_v62 }
 0x377   : > { %6003 = vmatmul.mubr.bf16.gmra.mrb[20].mxu1 %v2365_v37  ;;  %6173 = vmatpush3.bf16.msra.mxu0 %v6617_v21  ;;  %v2638_v21 = vpack.c.bf16 %v9999_v0, %v9998_v11  ;;  %v10010_v37 = vld [vmem:[#allocation68_spill] sm:$0xff] }
 0x378   : > { %4437 = vperm.xlu0 %6553, %v9980_v48   ;;  %6006 = vmatprep.mubr.bf16.mxu1 %v2366_v22  ;;  %v10011_v22 = vld [vmem:[#allocation70_spill] sm:$0xff] }
 0x379   : > { %6147 = vmatmul.mubr.bf16.gmra.mrb[20].mxu0 %v3667_v13  ;;  %6206 = vmatprep.subr.bf16.mxu0 %v9113_v34  ;;  %v2641_v13 = vpack.c.bf16 %v10010_v37, %v10009_v47  ;;  %v2642_v48 = vpack.c.bf16 %v10012_v15, %v10011_v22 }
 0x37a   : > { %4019 = vperm.xlu1 %6551, %v9981_v41   ;;  %v10014_v41 = vld [vmem:[#allocation116_spill] sm:$0xff] }
 0x37c   : > { %4445 = vperm.xlu0 %6553, %v9985_v23   ;;  %v10018_v23 = vld [vmem:[#allocation121_spill] sm:$0xff] }
 0x37d   : > { %v3587_v54 = vpop.permute.xlu0 %3586 }
 0x37e   : > { %v3648_v16 = vmul.f32 %v3587_v54, %v8718_v14  ;;  %4027 = vperm.xlu1 %6551, %v9986_v26   ;;  %v9989_v14 = vld [vmem:[#allocation153_spill] sm:$0xff]  ;;  %v10019_v54 = vld [vmem:[#allocation123_spill] sm:$0xff] }
 0x37f   : > { %6007 = vmatmul.mubr.bf16.gmra.mrb[24].mxu1 %v2367_v5  ;;  %v2353_v40 = vmul.f32 %v9990_v49, %v9989_v14 }
 0x380   : > { %v3668_v56 = vpack.c.bf16 %v3649_v19, %v3648_v16  ;;  %4453 = vperm.xlu0 %6553, %v9987_v7   ;;  %6010 = vmatprep.mubr.bf16.mxu1 %v2368_v33  ;;  %v10020_v33 = vld [vmem:[#allocation125_spill] sm:$0xff]  ;;  %v10021_v16 = vld [vmem:[#allocation127_spill] sm:$0xff] }
 0x381   : > { %v3597_v50 = vpop.permute.xlu0 %3596  ;;  %v2369_v17 = vpack.c.bf16 %v2353_v40, %v2352_v59  ;;  %v10024_v59 = vld [vmem:[#allocation19_spill] sm:$0xff] }
 0x382   : > { %v3650_v2 = vmul.f32 %v3597_v50, %v8744_v27  ;;  %4035 = vperm.xlu1 %6551, %v8749_v8   ;;  %6150 = vmatprep.mubr.bf16.mxu0 %v3668_v56  ;;  %v9995_v27 = vld [vmem:[#allocation59_spill] sm:$0xff]  ;;  %v9996_v8 = vld [vmem:[#allocation60_spill] sm:$0xff]  ;;  %v10023_v56 = vld [vmem:[#allocation18_spill] sm:$0xff] }
 0x383   : > { %v2637_v38 = vpack.c.bf16 %v9996_v8, %v9995_v27 }
 0x384   : > { %v3669_v36 = vpack.c.bf16 %v3651_v61, %v3650_v2  ;;  %4461 = vperm.xlu0 %6553, %v9991_v3  }
 0x386   : > { %4043 = vperm.xlu1 %6551, %v8794_v4   ;;  %6151 = vmatmul.mubr.bf16.gmra.mrb[24].mxu0 %v3669_v36  ;;  %v10001_v4 = vld [vmem:[#allocation17_spill] sm:$0xff]  ;;  %v10025_v36 = vld [vmem:[#allocation20_spill] sm:$0xff] }
 0x387   : > { %6011 = vmatmul.mubr.bf16.gmra.mrb[28].mxu1 %v2369_v17 }
 0x388   : > { %4469 = vperm.xlu0 %6553, %v9994_v20   ;;  %6046 = vmatprep.mubr.bf16.mxu1 %v2636_v9 }
 0x38a   : > { %4051 = vperm.xlu1 %6551, %v8805_v55   ;;  %v10003_v55 = vld [vmem:[#allocation63_spill] sm:$0xff] }
 0x38b   : > { %v2639_v39 = vpack.c.bf16 %v10004_v30, %v10003_v55 }
 0x38c   : > { %4477 = vperm.xlu0 %6553, %v9997_v42   ;;  %v10027_v42 = vld [vmem:[#allocation43_spill] sm:$0xff] }
 0x38d   : > { %v3607_v10 = vpop.permute.xlu0 %3606 }
 0x38e   : > { %6552 = vset.pattern.permute.xlu1 %v9948_v35  ;;  %v10008_v35 = vld [vmem:[#allocation112_spill] sm:$0xff]  ;;  %v3652_v61 = vmul.f32 %v3607_v10, %v9988_v57 }
 0x38f   : > { %4365 = vperm.xlu1 %6552, %v10000_v45   ;;  %6047 = vmatmul.mubr.bf16.vlgmr.msra.gmra.mrb[16].mxu1 %v2637_v38  ;;  %v10026_v38 = vld [vmem:[#allocation21_spill] sm:$0xff] }
 0x390   : > { %4485 = vperm.xlu0 %6553, %v10001_v4   ;;  %6050 = vmatprep.mubr.bf16.mxu1 %v2638_v21  ;;  %v10029_v4 = vld [vmem:[#allocation22_spill] sm:$0xff] }
 0x391   : > { %v3617_v58 = vpop.permute.xlu0 %3616 }
 0x392   : > { %v3654_v9 = vmul.f32 %v3617_v58, %v9934_v29  ;;  %v10031_v58 = vld [vmem:[#allocation45_spill] sm:$0xff] }
 0x393   : > { %4373 = vperm.xlu1 %6552, %v10002_v53   ;;  %v10030_v53 = vld [vmem:[#allocation46_spill] sm:$0xff] }
 0x396   : > { %v3932_v52 = vpop.permute.xlu0 %3931 }
 0x397   : > { %4377 = vperm.xlu1 %6552, %v10007_v32   ;;  %6051 = vmatmul.mubr.bf16.gmra.mrb[20].mxu1 %v2639_v39  ;;  %v4058_v21 = vmul.f32 %v3932_v52, %v10027_v42  ;;  %v6619_v52 = vld [vmem:[%s9417_s3 + $0x208] sm:$0xff]  }
 0x398   : > { %6054 = vmatprep.mubr.bf16.mxu1 %v2640_v44 }
 0x39a   : > { %v3944_v12 = vpop.permute.xlu0 %3943 }
 0x39b   : > { %4385 = vperm.xlu1 %6552, %v10008_v35   ;;  %v4061_v39 = vmul.f32 %v3944_v12, %v10030_v53  ;;  %v10041_v53 = vld [vmem:[#allocation55_spill] sm:$0xff] }
 0x39e   : > { %v3952_v6 = vpop.permute.xlu0 %3951 }
 0x39f   : > { %4393 = vperm.xlu1 %6552, %v10013_v24   ;;  %6055 = vmatmul.mubr.bf16.gmra.mrb[24].mxu1 %v2641_v13 }
 0x3a0   : > { %6058 = vmatprep.mubr.bf16.mxu1 %v2642_v48  ;;  %v10032_v48 = vld [vmem:[#allocation48_spill] sm:$0xff] }
 0x3a1   : > { %v4063_v24 = vmul.f32 %v3952_v6, %v10032_v48 }
 0x3a2   : > { %v3960_v25 = vpop.permute.xlu0 %3959 }
 0x3a3   : > { %4401 = vperm.xlu1 %6552, %v10014_v41   ;;  %v10033_v41 = vld [vmem:[#allocation47_spill] sm:$0xff] }
 0x3a6   : > { %v3968_v5 = vpop.permute.xlu0 %3967 }
 0x3a7   : > { %4409 = vperm.xlu1 %6552, %v10017_v51   ;;  %6059 = vmatmul.mubr.bf16.gmra.mrb[28].mxu1 %v2643_v63  ;;  %v6620_v51 = vld [vmem:[%s9417_s3 + $0x210] sm:$0xff]  }
 0x3aa   : > { %v3976_v19 = vpop.permute.xlu0 %3975 }
 0x3ab   : > { %4417 = vperm.xlu1 %6552, %v10018_v23  }
 0x3ae   : > { %v9173_v26 = vpop.permute.xlu0 %3983 }
 0x3af   : > { %4425 = vperm.xlu1 %6552, %v10019_v54  }
 0x3b2   : > { %v9177_v7 = vpop.permute.xlu0 %3991 }
 0x3b3   : > { %4433 = vperm.xlu1 %6552, %v10020_v33   ;;  %v10034_v33 = vld [vmem:[#allocation50_spill] sm:$0xff] }
 0x3b6   : > { %v9182_v49 = vpop.permute.xlu0 %3999 }
 0x3b7   : > { %4441 = vperm.xlu1 %6552, %v10021_v16   ;;  %v4065_v16 = vmul.f32 %v3960_v25, %v10034_v33  ;;  %v6622_v25 = vld [vmem:[%s9417_s3 + $0x220] sm:$0xff]   ;;  %v4075_v48 = vmul.f32 %v9182_v49, %v9996_v8 }
 0x3ba   : > { %v9189_v45 = vpop.permute.xlu0 %4007 }
 0x3bb   : > { %4449 = vperm.xlu1 %6552, %v10022_v31   ;;  %v10035_v31 = vld [vmem:[#allocation49_spill] sm:$0xff] }
 0x3be   : > { %v9195_v32 = vpop.permute.xlu0 %4015 }
 0x3bf   : > { %4457 = vperm.xlu1 %6552, %v10023_v56   ;;  %v4079_v8 = vmul.f32 %v9195_v32, %v10004_v30 }
 0x3c2   : > { %v9206_v23 = vpop.permute.xlu0 %4023 }
 0x3c3   : > { %4465 = vperm.xlu1 %6552, %v10024_v59  }
 0x3c4   : > { %v3612_v50 = vpop.permute.xlu1 %3611 }
 0x3c5   : > { %v3653_v2 = vmul.f32 %v3612_v50, %v9989_v14  ;;  %v10028_v14 = vld [vmem:[#allocation44_spill] sm:$0xff] }
 0x3c6   : > { %v10036_v50 = vld [vmem:[#allocation52_spill] sm:$0xff] }
 0x3c7   : > { %v3670_v40 = vpack.c.bf16 %v3653_v2, %v3652_v61  ;;  %4473 = vperm.xlu1 %6552, %v10025_v36   ;;  %v4067_v61 = vmul.f32 %v3968_v5, %v10036_v50  ;;  %v10037_v2 = vld [vmem:[#allocation51_spill] sm:$0xff]  ;;  %v4032_v36 = vpop.permute.xlu0 %4031 }
 0x3c8   : > { %v3622_v3 = vpop.permute.xlu1 %3621  ;;  %v6623_v5 = vld [vmem:[%s9417_s3 + $0x228] sm:$0xff]  }
 0x3c9   : > { %v3655_v17 = vmul.f32 %v3622_v3, %v9933_v18  ;;  %6154 = vmatprep.mubr.bf16.mxu0 %v3670_v40 }
 0x3cb   : > { %v3671_v20 = vpack.c.bf16 %v3655_v17, %v3654_v9  ;;  %4481 = vperm.xlu1 %6552, %v10026_v38   ;;  %v10038_v17 = vld [vmem:[#allocation54_spill] sm:$0xff]  ;;  %v10039_v38 = vld [vmem:[#allocation53_spill] sm:$0xff] }
 0x3cd   : > { %v3936_v57 = vpop.permute.xlu1 %3935  ;;  %6155 = vmatmul.mubr.bf16.gmra.mrb[28].mxu0 %v3671_v20  ;;  %v4069_v20 = vmul.f32 %v3976_v19, %v10038_v17 }
 0x3ce   : > { %v4059_v10 = vmul.f32 %v3936_v57, %v10028_v14  ;;  %v4040_v57 = vpop.permute.xlu0 %4039 }
 0x3cf   : > { %4489 = vperm.xlu1 %6552, %v10029_v4   ;;  %v4085_v32 = vmul.f32 %v4040_v57, %v10012_v15 }
 0x3d0   : > { %v4090_v44 = vpack.c.bf16 %v4059_v10, %v4058_v21  ;;  %v10040_v10 = vld [vmem:[#allocation56_spill] sm:$0xff] }
 0x3d1   : > { %v3940_v29 = vpop.permute.xlu1 %3939  ;;  %v4071_v4 = vmul.f32 %v9173_v26, %v10040_v10 }
 0x3d2   : > { %v4060_v18 = vmul.f32 %v3940_v29, %v10031_v58  ;;  %6174 = vmatprep.mubr.bf16.mxu0 %v4090_v44  ;;  %v6624_v44 = vld [vmem:[%s9417_s3 + $0x230] sm:$0xff]   ;;  %v4073_v58 = vmul.f32 %v9177_v7, %v9993_v46 }
 0x3d4   : > { %v4091_v35 = vpack.c.bf16 %v4061_v39, %v4060_v18 }
 0x3d5   : > { %v3948_v13 = vpop.permute.xlu1 %3947 }
 0x3d6   : > { %v4062_v63 = vmul.f32 %v3948_v13, %v10033_v41  ;;  %6175 = vmatmul.mubr.bf16.vlgmr.msra.gmra.mrb[0].mxu0 %v4091_v35  ;;  %v4048_v35 = vpop.permute.xlu0 %4047  ;;  %v4077_v41 = vmul.f32 %v9189_v45, %v9999_v0 }
 0x3d7   : > { %6207 = vmatpush3.bf16.msra.mxu0 %v9113_v34  ;;  %v6621_v34 = vld [vmem:[%s9417_s3 + $0x218] sm:$0xff]  }
 0x3d8   : > { %v4092_v12 = vpack.c.bf16 %v4063_v24, %v4062_v63  ;;  %6208 = vmatprep.subr.bf16.mxu0 %v6619_v52 }
 0x3d9   : > { %v3956_v54 = vpop.permute.xlu1 %3955 }
 0x3da   : > { %v4064_v56 = vmul.f32 %v3956_v54, %v10035_v31  ;;  %6178 = vmatprep.mubr.bf16.mxu0 %v4092_v12 }
 0x3db   : > { %6209 = vmatpush3.bf16.msra.mxu0 %v6619_v52  ;;  %v6625_v52 = vld [vmem:[%s9417_s3 + $0x238] sm:$0xff]  }
 0x3dc   : > { %v4093_v6 = vpack.c.bf16 %v4065_v16, %v4064_v56  ;;  %6210 = vmatprep.subr.bf16.mxu0 %v6620_v51  ;;  %v4081_v16 = vmul.f32 %v9206_v23, %v10006_v60  ;;  %v4083_v56 = vmul.f32 %v4032_v36, %v10010_v37  ;;  %v10043_v36 = vld [vmem:[#allocation41_spill] sm:$0xff] }
 0x3dd   : > { %v3964_v59 = vpop.permute.xlu1 %3963 }
 0x3de   : > { %v4066_v40 = vmul.f32 %v3964_v59, %v10037_v2  ;;  %6179 = vmatmul.mubr.bf16.gmra.mrb[4].mxu0 %v4093_v6 }
 0x3df   : > { %6211 = vmatpush3.bf16.msra.mxu0 %v6620_v51 }
 0x3e0   : > { %v4094_v3 = vpack.c.bf16 %v4067_v61, %v4066_v40  ;;  %6212 = vmatprep.subr.bf16.mxu0 %v6621_v34 }
 0x3e1   : > { %v3972_v9 = vpop.permute.xlu1 %3971 }
 0x3e2   : > { %v4068_v42 = vmul.f32 %v3972_v9, %v10039_v38  ;;  %6182 = vmatprep.mubr.bf16.mxu0 %v4094_v3 }
 0x3e3   : > { %6213 = vmatpush3.bf16.msra.mxu0 %v6621_v34 }
 0x3e4   : > { %v4095_v21 = vpack.c.bf16 %v4069_v20, %v4068_v42  ;;  %6214 = vmatprep.subr.bf16.mxu0 %v6622_v25  ;;  %v10045_v20 = vld [vmem:[#allocation143_spill] sm:$0xff] }
 0x3e5   : > { %v3980_v14 = vpop.permute.xlu1 %3979 }
 0x3e6   : > { %v4070_v39 = vmul.f32 %v3980_v14, %v10041_v53  ;;  %6183 = vmatmul.mubr.bf16.gmra.mrb[8].mxu0 %v4095_v21  ;;  %v10047_v14 = vld [vmem:[#allocation146_spill] sm:$0xff] }
 0x3e7   : > { %6215 = vmatpush3.bf16.msra.mxu0 %v6622_v25 }
 0x3e8   : > { %v4096_v19 = vpack.c.bf16 %v4071_v4, %v4070_v39  ;;  %6216 = vmatprep.subr.bf16.mxu0 %v6623_v5  ;;  %v10048_v39 = vld [vmem:[#allocation147_spill] sm:$0xff] }
 0x3e9   : > { %v3988_v29 = vpop.permute.xlu1 %3987 }
 0x3ea   : > { %v4072_v18 = vmul.f32 %v3988_v29, %v9992_v43  ;;  %6186 = vmatprep.mubr.bf16.mxu0 %v4096_v19  ;;  %v4056_v43 = vpop.permute.xlu0 %4055  ;;  %v10049_v29 = vld [vmem:[#allocation148_spill] sm:$0xff] }
 0x3eb   : > { %6217 = vmatpush3.bf16.msra.mxu0 %v6623_v5  ;;  %v10046_v5 = vld [vmem:[#allocation145_spill] sm:$0xff] }
 0x3ec   : > { %v4097_v26 = vpack.c.bf16 %v4073_v58, %v4072_v18  ;;  %6218 = vmatprep.subr.bf16.mxu0 %v6624_v44 }
 0x3ed   : > { %v3996_v13 = vpop.permute.xlu1 %3995 }
 0x3ee   : > { %v4074_v24 = vmul.f32 %v3996_v13, %v9995_v27  ;;  %6187 = vmatmul.mubr.bf16.gmra.mrb[12].mxu0 %v4097_v26  ;;  %v4370_v49 = vpop.permute.xlu0 %4369  ;;  %v10050_v26 = vld [vmem:[#allocation149_spill] sm:$0xff]  ;;  %v10051_v13 = vld [vmem:[#allocation150_spill] sm:$0xff] }
 0x3ef   : > { %6219 = vmatpush3.bf16.msra.mxu0 %v6624_v44 }
 0x3f0   : > { %v4098_v46 = vpack.c.bf16 %v4075_v48, %v4074_v24  ;;  %6220 = vmatprep.subr.bf16.mxu0 %v6625_v52 }
 0x3f1   : > { %v4004_v7 = vpop.permute.xlu1 %4003 }
 0x3f2   : > { %v4076_v63 = vmul.f32 %v4004_v7, %v9998_v11  ;;  %6190 = vmatprep.mubr.bf16.mxu0 %v4098_v46  ;;  %v4382_v45 = vpop.permute.xlu0 %4381 }
 0x3f3   : > { %6221 = vmatpush3.bf16.msra.mxu0 %v6625_v52  ;;  %v4496_v19 = vmul.f32 %v4382_v45, %v10048_v39  ;;  %v10055_v45 = vld [vmem:[#allocation155_spill] sm:$0xff] }
 0x3f4   : > { %v4099_v12 = vpack.c.bf16 %v4077_v41, %v4076_v63  ;;  %v10052_v41 = vld [vmem:[#allocation151_spill] sm:$0xff] }
 0x3f5   : > { %v4012_v51 = vpop.permute.xlu1 %4011 }
 0x3f6   : > { %v4078_v27 = vmul.f32 %v4012_v51, %v10003_v55  ;;  %6191 = vmatmul.mubr.bf16.gmra.mrb[16].mxu0 %v4099_v12  ;;  %v4390_v59 = vpop.permute.xlu0 %4389  ;;  %v10053_v12 = vld [vmem:[#allocation152_spill] sm:$0xff] }
 0x3f7   : > { %v4498_v52 = vmul.f32 %v4390_v59, %v10050_v26 }
 0x3f8   : > { %v4100_v54 = vpack.c.bf16 %v4079_v8, %v4078_v27 }
 0x3f9   : > { %v4020_v33 = vpop.permute.xlu1 %4019 }
 0x3fa   : > { %v4080_v0 = vmul.f32 %v4020_v33, %v10005_v28  ;;  %6194 = vmatprep.mubr.bf16.mxu0 %v4100_v54  ;;  %v4087_v28 = vmul.f32 %v4048_v35, %v10016_v1  ;;  %v4398_v37 = vpop.permute.xlu0 %4397 }
 0x3fb   : > { %v4500_v63 = vmul.f32 %v4398_v37, %v10052_v41  ;;  %v10067_v41 = vld [vmem:[#allocation170_spill] sm:$0xff] }
 0x3fc   : > { %v4101_v11 = vpack.c.bf16 %v4081_v16, %v4080_v0  ;;  %v10054_v16 = vld [vmem:[#allocation154_spill] sm:$0xff] }
 0x3fd   : > { %v4028_v31 = vpop.permute.xlu1 %4027 }
 0x3fe   : > { %v4082_v6 = vmul.f32 %v4028_v31, %v10009_v47  ;;  %6195 = vmatmul.mubr.bf16.gmra.mrb[20].mxu0 %v4101_v11  ;;  %v10042_v47 = vld [vmem:[#allocation42_spill] sm:$0xff]  ;;  %v4406_v17 = vpop.permute.xlu0 %4405 }
 0x3ff   : > { %v4089_v40 = vmul.f32 %v4056_v43, %v10042_v47  ;;  %v4502_v0 = vmul.f32 %v4406_v17, %v10054_v16 }
 0x400   : > { %v4102_v30 = vpack.c.bf16 %v4083_v56, %v4082_v6 }
 0x401   : > { %v4036_v55 = vpop.permute.xlu1 %4035 }
 0x402   : > { %v4084_v34 = vmul.f32 %v4036_v55, %v10011_v22  ;;  %6198 = vmatprep.mubr.bf16.mxu0 %v4102_v30  ;;  %v10044_v22 = vld [vmem:[#allocation144_spill] sm:$0xff]  ;;  %v10056_v55 = vld [vmem:[#allocation157_spill] sm:$0xff] }
 0x403   : > { %v4493_v9 = vmul.f32 %v4370_v49, %v10044_v22  ;;  %v10060_v22 = vld [vmem:[#allocation139_spill] sm:$0xff] }
 0x404   : > { %v4103_v60 = vpack.c.bf16 %v4085_v32, %v4084_v34  ;;  %v10057_v34 = vld [vmem:[#allocation158_spill] sm:$0xff] }
 0x405   : > { %v4044_v23 = vpop.permute.xlu1 %4043 }
 0x406   : > { %v4086_v50 = vmul.f32 %v4044_v23, %v10015_v62  ;;  %6199 = vmatmul.mubr.bf16.gmra.mrb[24].mxu0 %v4103_v60  ;;  %v4414_v62 = vpop.permute.xlu0 %4413 }
 0x407   : > { %v4504_v32 = vmul.f32 %v4414_v62, %v10056_v55 }
 0x408   : > { %v4104_v61 = vpack.c.bf16 %v4087_v28, %v4086_v50 }
 0x409   : > { %v4052_v2 = vpop.permute.xlu1 %4051 }
 0x40a   : > { %v4088_v3 = vmul.f32 %v4052_v2, %v10043_v36  ;;  %6202 = vmatprep.mubr.bf16.mxu0 %v4104_v61  ;;  %v4422_v44 = vpop.permute.xlu0 %4421  ;;  %v10058_v2 = vld [vmem:[#allocation75_spill] sm:$0xff] }
 0x40b   : > { %v4506_v47 = vmul.f32 %v4422_v44, %v10058_v2  ;;  %v10073_v2 = vld [vmem:[#allocation72_spill] sm:$0xff] }
 0x40c   : > { %v4105_v15 = vpack.c.bf16 %v4089_v40, %v4088_v3  ;;  %v10059_v40 = vld [vmem:[#allocation130_spill] sm:$0xff] }
 0x40e   : > { %v4366_v25 = vpop.permute.xlu1 %4365  ;;  %6203 = vmatmul.mubr.bf16.gmra.mrb[28].mxu0 %v4105_v15  ;;  %v4430_v24 = vpop.permute.xlu0 %4429 }
 0x40f   : > { %v4492_v38 = vmul.f32 %v4366_v25, %v10045_v20  ;;  %v10061_v20 = vld [vmem:[#allocation76_spill] sm:$0xff] }
 0x411   : > { %v4524_v1 = vpack.c.bf16 %v4493_v9, %v4492_v38  ;;  %v4508_v9 = vmul.f32 %v4430_v24, %v10060_v22 }
 0x412   : > { %v4374_v42 = vpop.permute.xlu1 %4373  ;;  %v4438_v11 = vpop.permute.xlu0 %4437 }
 0x413   : > { %6222 = vmatprep.mubr.bf16.mxu0 %v4524_v1  ;;  %v4494_v57 = vmul.f32 %v4374_v42, %v10046_v5 }
 0x416   : > { %v4378_v21 = vpop.permute.xlu1 %4377  ;;  %v4446_v28 = vpop.permute.xlu0 %4445 }
 0x417   : > { %v4495_v10 = vmul.f32 %v4378_v21, %v10047_v14 }
 0x419   : > { %v4525_v4 = vpack.c.bf16 %v4495_v10, %v4494_v57  ;;  %v10062_v57 = vld [vmem:[#allocation30_spill] sm:$0xff] }
 0x41a   : > { %v4386_v53 = vpop.permute.xlu1 %4385  ;;  %v4454_v17 = vpop.permute.xlu0 %4453  ;;  %v4510_v14 = vmul.f32 %v4438_v11, %v10062_v57  ;;  %v10063_v10 = vld [vmem:[#allocation162_spill] sm:$0xff] }
 0x41b   : > { %v4497_v58 = vmul.f32 %v4386_v53, %v10049_v29  ;;  %6223 = vmatmul.mubr.bf16.vlgmr.msra.gmra.mrb[0].mxu0 %v4525_v4  ;;  %v10064_v29 = vld [vmem:[#allocation31_spill] sm:$0xff] }
 0x41d   : > { %v4526_v18 = vpack.c.bf16 %v4497_v58, %v4496_v19  ;;  %v4512_v58 = vmul.f32 %v4446_v28, %v10064_v29 }
 0x41e   : > { %v4394_v35 = vpop.permute.xlu1 %4393  ;;  %v4462_v53 = vpop.permute.xlu0 %4461 }
 0x41f   : > { %v4499_v48 = vmul.f32 %v4394_v35, %v10051_v13  ;;  %6226 = vmatprep.mubr.bf16.mxu0 %v4526_v18  ;;  %v10065_v18 = vld [vmem:[#allocation164_spill] sm:$0xff] }
 0x421   : > { %v4527_v46 = vpack.c.bf16 %v4499_v48, %v4498_v52 }
 0x422   : > { %v4402_v43 = vpop.permute.xlu1 %4401  ;;  %v9263_v7 = vpop.f32.mrb[0].mxu1 }
 0x423   : > { %v4501_v51 = vmul.f32 %v4402_v43, %v10053_v12  ;;  %v9267_v8 = vpop.f32.mrb[1].mxu1  ;;  %6227 = vmatmul.mubr.bf16.gmra.mrb[4].mxu0 %v4527_v46  ;;  %v10066_v46 = vld [vmem:[#allocation34_spill] sm:$0xff]  ;;  %v4470_v12 = vpop.permute.xlu0 %4469 }
 0x424   : > { %v9269_v27 = vpop.f32.mrb[2].mxu1  ;;  %v4514_v43 = vmul.f32 %v4454_v17, %v10066_v46 }
 0x425   : > { %v4528_v49 = vpack.c.bf16 %v4501_v51, %v4500_v63  ;;  %v9271_v54 = vpop.f32.mrb[3].mxu1 }
 0x426   : > { %v4410_v33 = vpop.permute.xlu1 %4409 }
 0x427   : > { %v4503_v31 = vmul.f32 %v4410_v33, %v10055_v45  ;;  %6230 = vmatprep.mubr.bf16.mxu0 %v4528_v49  ;;  %v10068_v33 = vld [vmem:[#allocation35_spill] sm:$0xff] }
 0x428   : > { %v4516_v16 = vmul.f32 %v4462_v53, %v10068_v33 }
 0x429   : > { %v4529_v56 = vpack.c.bf16 %v4503_v31, %v4502_v0  ;;  %v10069_v0 = vld [vmem:[#allocation172_spill] sm:$0xff]  ;;  %v4478_v31 = vpop.permute.xlu0 %4477 }
 0x42a   : > { %v4418_v6 = vpop.permute.xlu1 %4417  ;;  %v9275_v30 = vpop.f32.mrb[4].mxu1 }
 0x42b   : > { %v4505_v59 = vmul.f32 %v4418_v6, %v10057_v34  ;;  %v9279_v60 = vpop.f32.mrb[5].mxu1  ;;  %6231 = vmatmul.mubr.bf16.gmra.mrb[8].mxu0 %v4529_v56  ;;  %v10070_v6 = vld [vmem:[#allocation79_spill] sm:$0xff] }
 0x42c   : > { %v9281_v23 = vpop.f32.mrb[6].mxu1  ;;  %v4518_v55 = vmul.f32 %v4470_v12, %v10070_v6 }
 0x42d   : > { %v4530_v50 = vpack.c.bf16 %v4505_v59, %v4504_v32  ;;  %v9283_v61 = vpop.f32.mrb[7].mxu1  ;;  %v10071_v32 = vld [vmem:[#allocation78_spill] sm:$0xff] }
 0x42e   : > { %v4426_v37 = vpop.permute.xlu1 %4425 }
 0x42f   : > { %v4507_v36 = vmul.f32 %v4426_v37, %v10059_v40  ;;  %6234 = vmatprep.mubr.bf16.mxu0 %v4530_v50  ;;  %v10072_v50 = vld [vmem:[#allocation37_spill] sm:$0xff]  ;;  %v4486_v40 = vpop.permute.xlu0 %4485 }
 0x430   : > { %v4520_v37 = vmul.f32 %v4478_v31, %v10072_v50 }
 0x431   : > { %v4531_v3 = vpack.c.bf16 %v4507_v36, %v4506_v47 }
 0x432   : > { %v4434_v15 = vpop.permute.xlu1 %4433  ;;  %v9287_v25 = vpop.f32.mrb[8].mxu1 }
 0x433   : > { %v4509_v38 = vmul.f32 %v4434_v15, %v10061_v20  ;;  %v9291_v1 = vpop.f32.mrb[9].mxu1  ;;  %6235 = vmatmul.mubr.bf16.gmra.mrb[12].mxu0 %v4531_v3  ;;  %v10074_v15 = vld [vmem:[#allocation71_spill] sm:$0xff] }
 0x434   : > { %v9293_v42 = vpop.f32.mrb[10].mxu1  ;;  %v4522_v22 = vmul.f32 %v4486_v40, %v10074_v15 }
 0x435   : > { %v4532_v62 = vpack.c.bf16 %v4509_v38, %v4508_v9  ;;  %v9295_v21 = vpop.f32.mrb[11].mxu1  ;;  %v10075_v9 = vld [vmem:[#allocation142_spill] sm:$0xff] }
 0x436   : > { %v4442_v5 = vpop.permute.xlu1 %4441 }
 0x437   : > { %v4511_v4 = vmul.f32 %v4442_v5, %v10063_v10  ;;  %6238 = vmatprep.mubr.bf16.mxu0 %v4532_v62 }
 0x439   : > { %v4533_v39 = vpack.c.bf16 %v4511_v4, %v4510_v14 }
 0x43a   : > { %v4450_v19 = vpop.permute.xlu1 %4449  ;;  %v9299_v44 = vpop.f32.mrb[12].mxu1 }
 0x43b   : > { %v4513_v35 = vmul.f32 %v4450_v19, %v10065_v18  ;;  %v9303_v26 = vpop.f32.mrb[13].mxu1  ;;  %6239 = vmatmul.mubr.bf16.gmra.mrb[16].mxu0 %v4533_v39 }
 0x43c   : > { %v9305_v52 = vpop.f32.mrb[14].mxu1 }
 0x43d   : > { %v4534_v13 = vpack.c.bf16 %v4513_v35, %v4512_v58  ;;  %v9307_v48 = vpop.f32.mrb[15].mxu1 }
 0x43e   : > { %v4458_v24 = vpop.permute.xlu1 %4457 }
 0x43f   : > { %v4515_v63 = vmul.f32 %v4458_v24, %v10067_v41  ;;  %6242 = vmatprep.mubr.bf16.mxu0 %v4534_v13 }
 0x441   : > { %v4535_v51 = vpack.c.bf16 %v4515_v63, %v4514_v43 }
 0x442   : > { %v4466_v49 = vpop.permute.xlu1 %4465 }
 0x443   : > { %v4517_v11 = vmul.f32 %v4466_v49, %v10069_v0  ;;  %6243 = vmatmul.mubr.bf16.gmra.mrb[20].mxu0 %v4535_v51 }
 0x445   : > { %v4536_v45 = vpack.c.bf16 %v4517_v11, %v4516_v16 }
 0x446   : > { %v4474_v56 = vpop.permute.xlu1 %4473 }
 0x447   : > { %v4519_v34 = vmul.f32 %v4474_v56, %v10071_v32  ;;  %6246 = vmatprep.mubr.bf16.mxu0 %v4536_v45 }
 0x449   : > { %v4537_v59 = vpack.c.bf16 %v4519_v34, %v4518_v55 }
 0x44a   : > { %v4482_v28 = vpop.permute.xlu1 %4481 }
 0x44b   : > { %v4521_v47 = vmul.f32 %v4482_v28, %v10073_v2  ;;  %6247 = vmatmul.mubr.bf16.gmra.mrb[24].mxu0 %v4537_v59 }
 0x44d   : > { %v4538_v36 = vpack.c.bf16 %v4521_v47, %v4520_v37 }
 0x44e   : > { %v4490_v3 = vpop.permute.xlu1 %4489 }
 0x44f   : > { %v4523_v17 = vmul.f32 %v4490_v3, %v10075_v9  ;;  %6250 = vmatprep.mubr.bf16.mxu0 %v4538_v36 }
 0x451   : > { %v4539_v20 = vpack.c.bf16 %v4523_v17, %v4522_v22 }
 0x453   : > { %6251 = vmatmul.mubr.bf16.gmra.mrb[28].mxu0 %v4539_v20 }
 0x462   : > { %v9319_v38 = vpop.f32.mrb[16].mxu1 }
 0x463   : > { %v9321_v62 = vpop.f32.mrb[17].mxu1 }
 0x464   : > { %v9323_v5 = vpop.f32.mrb[18].mxu1 }
 0x465   : > { %v9325_v57 = vpop.f32.mrb[19].mxu1 }
 0x46a   : > { %v9327_v14 = vpop.f32.mrb[20].mxu1 }
 0x46b   : > { %v9329_v10 = vpop.f32.mrb[21].mxu1 }
 0x46c   : > { %v9331_v4 = vpop.f32.mrb[22].mxu1 }
 0x46d   : > { %v9333_v53 = vpop.f32.mrb[23].mxu1 }
 0x472   : > { %v9335_v39 = vpop.f32.mrb[24].mxu1 }
 0x473   : > { %v9337_v19 = vpop.f32.mrb[25].mxu1 }
 0x474   : > { %v9339_v29 = vpop.f32.mrb[26].mxu1 }
 0x475   : > { %v9341_v58 = vpop.f32.mrb[27].mxu1 }
 0x47a   : > { %v9343_v18 = vpop.f32.mrb[28].mxu1 }
 0x47b   : > { %v9345_v35 = vpop.f32.mrb[29].mxu1 }
 0x47c   : > { %v9347_v13 = vpop.f32.mrb[30].mxu1 }
 0x47d   : > { %v9349_v24 = vpop.f32.mrb[31].mxu1 }
 0x4ee   : > { %v6224_v46 = vpop.f32.mrb[0].mxu0 }
 0x4ef   : > { %v6270_v43 = vadd.f32 %v6224_v46, %v9263_v7  ;;  %v4639_v41 = vpop.f32.mrb[1].mxu0 }
 0x4f0   : > { %v6271_v63 = vadd.f32 %v4639_v41, %v9267_v8  ;;  %v6225_v12 = vpop.f32.mrb[2].mxu0 }
 0x4f1   : > { %v6272_v51 = vadd.f32 %v6225_v12, %v9269_v27  ;;  %v4642_v49 = vpop.f32.mrb[3].mxu0  ;;  %v4997_v8 = vmul.f32 %v6270_v43, %v6270_v43 }
 0x4f2   : > { %v6273_v33 = vadd.f32 %v4642_v49, %v9271_v54  ;;  %v4995_v0 = vmul.f32 %v6271_v63, %v6271_v63 }
 0x4f3   : > { %v5504_v16 = vpack.c.bf16 %v6272_v51, %v6270_v43  ;;  %v4998_v32 = vmul.f32 %v6272_v51, %v6272_v51 }
 0x4f4   : > { %v5499_v7 = vpack.c.bf16 %v6273_v33, %v6271_v63  ;;  %v4958_v11 = vadd.f32 %v6273_v33, %v6271_v63  ;;  %v4996_v45 = vmul.f32 %v6273_v33, %v6273_v33 }
 0x4f5   : > { %5591 = vst [vmem:[%s9359_s26 + $0x8] sm:$0xff] %v5504_v16  }
 0x4f6   : > { %5500 = vst [vmem:[%s9359_s26] sm:$0xff] %v5499_v7   ;;  %v4959_v27 = vadd.f32 %v6270_v43, %v4958_v11  ;;  %v5027_v31 = vadd.f32 %v4996_v45, %v4995_v0  ;;  %v6228_v56 = vpop.f32.mrb[4].mxu0 }
 0x4f7   : > { %v6274_v6 = vadd.f32 %v6228_v56, %v9275_v30  ;;  %v4655_v55 = vpop.f32.mrb[5].mxu0 }
 0x4f8   : > { %v5028_v34 = vadd.f32 %v5027_v31, %v4997_v8  ;;  %v6275_v59 = vadd.f32 %v4655_v55, %v9279_v60  ;;  %v4960_v54 = vadd.f32 %v6272_v51, %v4959_v27  ;;  %v6229_v28 = vpop.f32.mrb[6].mxu0 }
 0x4f9   : > { %v6276_v50 = vadd.f32 %v6229_v28, %v9281_v23  ;;  %v4658_v37 = vpop.f32.mrb[7].mxu0  ;;  %v5001_v17 = vmul.f32 %v6274_v6, %v6274_v6 }
 0x4fa   : > { %v4961_v2 = vadd.f32 %v6275_v59, %v4960_v54  ;;  %v4999_v47 = vmul.f32 %v6275_v59, %v6275_v59  ;;  %v5029_v40 = vadd.f32 %v5028_v34, %v4998_v32  ;;  %v6277_v36 = vadd.f32 %v4658_v37, %v9283_v61 }
 0x4fb   : > { %v5514_v3 = vpack.c.bf16 %v6276_v50, %v6274_v6  ;;  %v5002_v41 = vmul.f32 %v6276_v50, %v6276_v50 }
 0x4fc   : > { %v5030_v15 = vadd.f32 %v5029_v40, %v4999_v47  ;;  %v5509_v30 = vpack.c.bf16 %v6277_v36, %v6275_v59  ;;  %v4962_v22 = vadd.f32 %v6277_v36, %v4961_v2  ;;  %v5000_v9 = vmul.f32 %v6277_v36, %v6277_v36 }
 0x4fd   : > { %5593 = vst [vmem:[%s9359_s26 + $0x18] sm:$0xff] %v5514_v3  }
 0x4fe   : > { %5592 = vst [vmem:[%s9359_s26 + $0x10] sm:$0xff] %v5509_v30   ;;  %v4963_v60 = vadd.f32 %v6274_v6, %v4962_v22  ;;  %v5031_v20 = vadd.f32 %v5030_v15, %v5000_v9  ;;  %v6232_v46 = vpop.f32.mrb[8].mxu0 }
 0x4ff   : > { %v6278_v43 = vadd.f32 %v6232_v46, %v9287_v25  ;;  %v4671_v23 = vpop.f32.mrb[9].mxu0 }
 0x500   : > { %v5032_v63 = vadd.f32 %v5031_v20, %v5001_v17  ;;  %v6279_v12 = vadd.f32 %v4671_v23, %v9291_v1  ;;  %v4964_v61 = vadd.f32 %v6276_v50, %v4963_v60  ;;  %v6233_v51 = vpop.f32.mrb[10].mxu0 }
 0x501   : > { %v6280_v49 = vadd.f32 %v6233_v51, %v9293_v42  ;;  %v4674_v33 = vpop.f32.mrb[11].mxu0  ;;  %v5005_v56 = vmul.f32 %v6278_v43, %v6278_v43 }
 0x502   : > { %v4965_v16 = vadd.f32 %v6279_v12, %v4964_v61  ;;  %v5003_v0 = vmul.f32 %v6279_v12, %v6279_v12  ;;  %v5033_v7 = vadd.f32 %v5032_v63, %v5002_v41  ;;  %v6281_v11 = vadd.f32 %v4674_v33, %v9295_v21 }
 0x503   : > { %v5524_v45 = vpack.c.bf16 %v6280_v49, %v6278_v43  ;;  %v5006_v34 = vmul.f32 %v6280_v49, %v6280_v49 }
 0x504   : > { %v5034_v8 = vadd.f32 %v5033_v7, %v5003_v0  ;;  %v5519_v25 = vpack.c.bf16 %v6281_v11, %v6279_v12  ;;  %v4966_v27 = vadd.f32 %v6281_v11, %v4965_v16  ;;  %v5004_v31 = vmul.f32 %v6281_v11, %v6281_v11 }
 0x505   : > { %5595 = vst [vmem:[%s9359_s26 + $0x28] sm:$0xff] %v5524_v45  }
 0x506   : > { %5594 = vst [vmem:[%s9359_s26 + $0x20] sm:$0xff] %v5519_v25   ;;  %v4967_v1 = vadd.f32 %v6278_v43, %v4966_v27  ;;  %v5035_v6 = vadd.f32 %v5034_v8, %v5004_v31  ;;  %v6236_v55 = vpop.f32.mrb[12].mxu0 }
 0x507   : > { %v6282_v32 = vadd.f32 %v6236_v55, %v9299_v44  ;;  %v4687_v42 = vpop.f32.mrb[13].mxu0 }
 0x508   : > { %v5036_v59 = vadd.f32 %v5035_v6, %v5005_v56  ;;  %v6283_v54 = vadd.f32 %v4687_v42, %v9303_v26  ;;  %v4968_v21 = vadd.f32 %v6280_v49, %v4967_v1  ;;  %v6237_v28 = vpop.f32.mrb[14].mxu0 }
 0x509   : > { %v6284_v50 = vadd.f32 %v6237_v28, %v9305_v52  ;;  %v4690_v37 = vpop.f32.mrb[15].mxu0  ;;  %v5009_v9 = vmul.f32 %v6282_v32, %v6282_v32 }
 0x50a   : > { %v4969_v2 = vadd.f32 %v6283_v54, %v4968_v21  ;;  %v5007_v47 = vmul.f32 %v6283_v54, %v6283_v54  ;;  %v5037_v40 = vadd.f32 %v5036_v59, %v5006_v34  ;;  %v6285_v36 = vadd.f32 %v4690_v37, %v9307_v48 }
 0x50b   : > { %v5534_v3 = vpack.c.bf16 %v6284_v50, %v6282_v32  ;;  %v5010_v46 = vmul.f32 %v6284_v50, %v6284_v50 }
 0x50c   : > { %v5038_v15 = vadd.f32 %v5037_v40, %v5007_v47  ;;  %v5529_v44 = vpack.c.bf16 %v6285_v36, %v6283_v54  ;;  %v4970_v30 = vadd.f32 %v6285_v36, %v4969_v2  ;;  %v5008_v22 = vmul.f32 %v6285_v36, %v6285_v36 }
 0x50d   : > { %5597 = vst [vmem:[%s9359_s26 + $0x38] sm:$0xff] %v5534_v3  }
 0x50e   : > { %5596 = vst [vmem:[%s9359_s26 + $0x30] sm:$0xff] %v5529_v44   ;;  %v4971_v26 = vadd.f32 %v6282_v32, %v4970_v30  ;;  %v5039_v17 = vadd.f32 %v5038_v15, %v5008_v22  ;;  %v6240_v60 = vpop.f32.mrb[16].mxu0 }
 0x50f   : > { %v6286_v20 = vadd.f32 %v6240_v60, %v9319_v38  ;;  %v4703_v52 = vpop.f32.mrb[17].mxu0 }
 0x510   : > { %v5040_v43 = vadd.f32 %v5039_v17, %v5009_v9  ;;  %v6287_v23 = vadd.f32 %v4703_v52, %v9321_v62  ;;  %v4972_v48 = vadd.f32 %v6284_v50, %v4971_v26  ;;  %v6241_v41 = vpop.f32.mrb[18].mxu0 }
 0x511   : > { %v6288_v63 = vadd.f32 %v6241_v41, %v9323_v5  ;;  %v4706_v12 = vpop.f32.mrb[19].mxu0  ;;  %v5013_v45 = vmul.f32 %v6286_v20, %v6286_v20 }
 0x512   : > { %v4973_v61 = vadd.f32 %v6287_v23, %v4972_v48  ;;  %v5011_v51 = vmul.f32 %v6287_v23, %v6287_v23  ;;  %v5041_v49 = vadd.f32 %v5040_v43, %v5010_v46  ;;  %v6289_v33 = vadd.f32 %v4706_v12, %v9325_v57 }
 0x513   : > { %v5544_v16 = vpack.c.bf16 %v6288_v63, %v6286_v20  ;;  %v5014_v31 = vmul.f32 %v6288_v63, %v6288_v63 }
 0x514   : > { %v5042_v0 = vadd.f32 %v5041_v49, %v5011_v51  ;;  %v5539_v38 = vpack.c.bf16 %v6289_v33, %v6287_v23  ;;  %v4974_v7 = vadd.f32 %v6289_v33, %v4973_v61  ;;  %v5012_v11 = vmul.f32 %v6289_v33, %v6289_v33 }
 0x515   : > { %5599 = vst [vmem:[%s9359_s26 + $0x48] sm:$0xff] %v5544_v16  }
 0x516   : > { %5598 = vst [vmem:[%s9359_s26 + $0x40] sm:$0xff] %v5539_v38   ;;  %v4975_v62 = vadd.f32 %v6286_v20, %v4974_v7  ;;  %v5043_v8 = vadd.f32 %v5042_v0, %v5012_v11  ;;  %v6244_v25 = vpop.f32.mrb[20].mxu0 }
 0x517   : > { %v6290_v27 = vadd.f32 %v6244_v25, %v9327_v14  ;;  %v4719_v5 = vpop.f32.mrb[21].mxu0 }
 0x518   : > { %v5044_v56 = vadd.f32 %v5043_v8, %v5013_v45  ;;  %v6291_v1 = vadd.f32 %v4719_v5, %v9329_v10  ;;  %v4976_v57 = vadd.f32 %v6288_v63, %v4975_v62  ;;  %v6245_v6 = vpop.f32.mrb[22].mxu0 }
 0x519   : > { %v6292_v55 = vadd.f32 %v6245_v6, %v9331_v4  ;;  %v4722_v32 = vpop.f32.mrb[23].mxu0  ;;  %v5017_v2 = vmul.f32 %v6290_v27, %v6290_v27 }
 0x51a   : > { %v4977_v42 = vadd.f32 %v6291_v1, %v4976_v57  ;;  %v5015_v34 = vmul.f32 %v6291_v1, %v6291_v1  ;;  %v5045_v59 = vadd.f32 %v5044_v56, %v5014_v31  ;;  %v6293_v54 = vadd.f32 %v4722_v32, %v9333_v53 }
 0x51b   : > { %v5554_v21 = vpack.c.bf16 %v6292_v55, %v6290_v27  ;;  %v5018_v3 = vmul.f32 %v6292_v55, %v6292_v55 }
 0x51c   : > { %v5046_v28 = vadd.f32 %v5045_v59, %v5015_v34  ;;  %v5549_v14 = vpack.c.bf16 %v6293_v54, %v6291_v1  ;;  %v4978_v50 = vadd.f32 %v6293_v54, %v4977_v42  ;;  %v5016_v37 = vmul.f32 %v6293_v54, %v6293_v54 }
 0x51d   : > { %5601 = vst [vmem:[%s9359_s26 + $0x58] sm:$0xff] %v5554_v21  }
 0x51e   : > { %5600 = vst [vmem:[%s9359_s26 + $0x50] sm:$0xff] %v5549_v14   ;;  %v4979_v10 = vadd.f32 %v6290_v27, %v4978_v50  ;;  %v5047_v47 = vadd.f32 %v5046_v28, %v5016_v37  ;;  %v6248_v40 = vpop.f32.mrb[24].mxu0 }
 0x51f   : > { %v6294_v36 = vadd.f32 %v6248_v40, %v9335_v39  ;;  %v4735_v4 = vpop.f32.mrb[25].mxu0 }
 0x520   : > { %v5048_v15 = vadd.f32 %v5047_v47, %v5017_v2  ;;  %v6295_v44 = vadd.f32 %v4735_v4, %v9337_v19  ;;  %v4980_v53 = vadd.f32 %v6292_v55, %v4979_v10  ;;  %v6249_v30 = vpop.f32.mrb[26].mxu0 }
 0x521   : > { %v6296_v22 = vadd.f32 %v6249_v30, %v9339_v29  ;;  %v4738_v9 = vpop.f32.mrb[27].mxu0  ;;  %v5021_v48 = vmul.f32 %v6294_v36, %v6294_v36 }
 0x522   : > { %v4981_v26 = vadd.f32 %v6295_v44, %v4980_v53  ;;  %v5019_v17 = vmul.f32 %v6295_v44, %v6295_v44  ;;  %v5049_v60 = vadd.f32 %v5048_v15, %v5018_v3  ;;  %v6297_v20 = vadd.f32 %v4738_v9, %v9341_v58 }
 0x523   : > { %v5564_v52 = vpack.c.bf16 %v6296_v22, %v6294_v36  ;;  %v5022_v61 = vmul.f32 %v6296_v22, %v6296_v22 }
 0x524   : > { %v5050_v46 = vadd.f32 %v5049_v60, %v5019_v17  ;;  %v5559_v39 = vpack.c.bf16 %v6297_v20, %v6295_v44  ;;  %v4982_v43 = vadd.f32 %v6297_v20, %v4981_v26  ;;  %v5020_v23 = vmul.f32 %v6297_v20, %v6297_v20 }
 0x525   : > { %5603 = vst [vmem:[%s9359_s26 + $0x68] sm:$0xff] %v5564_v52  }
 0x526   : > { %5602 = vst [vmem:[%s9359_s26 + $0x60] sm:$0xff] %v5559_v39   ;;  %v4983_v19 = vadd.f32 %v6294_v36, %v4982_v43  ;;  %v5051_v41 = vadd.f32 %v5050_v46, %v5020_v23  ;;  %v6252_v63 = vpop.f32.mrb[28].mxu0 }
 0x527   : > { %v6298_v12 = vadd.f32 %v6252_v63, %v9343_v18  ;;  %v4751_v29 = vpop.f32.mrb[29].mxu0 }
 0x528   : > { %v5052_v51 = vadd.f32 %v5051_v41, %v5021_v48  ;;  %v6299_v49 = vadd.f32 %v4751_v29, %v9345_v35  ;;  %v4984_v58 = vadd.f32 %v6296_v22, %v4983_v19  ;;  %v6253_v33 = vpop.f32.mrb[30].mxu0 }
 0x529   : > { %v6300_v16 = vadd.f32 %v6253_v33, %v9347_v13  ;;  %v4754_v0 = vpop.f32.mrb[31].mxu0  ;;  %v5025_v35 = vmul.f32 %v6298_v12, %v6298_v12 }
 0x52a   : > { %v4985_v38 = vadd.f32 %v6299_v49, %v4984_v58  ;;  %v5023_v7 = vmul.f32 %v6299_v49, %v6299_v49  ;;  %v5053_v11 = vadd.f32 %v5052_v51, %v5022_v61  ;;  %v6301_v45 = vadd.f32 %v4754_v0, %v9349_v24 }
 0x52b   : > { %v5574_v62 = vpack.c.bf16 %v6300_v16, %v6298_v12  ;;  %v5026_v56 = vmul.f32 %v6300_v16, %v6300_v16 }
 0x52c   : > { %v5054_v18 = vadd.f32 %v5053_v11, %v5023_v7  ;;  %v5569_v8 = vpack.c.bf16 %v6301_v45, %v6299_v49  ;;  %v4986_v25 = vadd.f32 %v6301_v45, %v4985_v38  ;;  %v5024_v27 = vmul.f32 %v6301_v45, %v6301_v45 }
 0x52d   : > { %5605 = vst [vmem:[%s9359_s26 + $0x78] sm:$0xff] %v5574_v62  }
 0x52e   : > { %5604 = vst [vmem:[%s9359_s26 + $0x70] sm:$0xff] %v5569_v8   ;;  %v4987_v5 = vadd.f32 %v6298_v12, %v4986_v25  ;;  %v5055_v31 = vadd.f32 %v5054_v18, %v5024_v27 }
 0x530   : > { %v4988_v13 = vadd.f32 %v6300_v16, %v4987_v5  ;;  %v5056_v1 = vadd.f32 %v5055_v31, %v5025_v35 }
 0x532   : > { %v4989_v57 = vrot.slane %v4988_v13, 4  ;;  %v5057_v6 = vadd.f32 %v5056_v1, %v5026_v56 }
 0x534   : > { %v4990_v55 = vadd.f32 %v4989_v57, %v4988_v13  ;;  %v5058_v24 = vrot.slane %v5057_v6, 4 }
 0x536   : > { %v4991_v32 = vrot.slane %v4990_v55, 2  ;;  %v5059_v42 = vadd.f32 %v5058_v24, %v5057_v6 }
 0x538   : > { %v4992_v34 = vadd.f32 %v4991_v32, %v4990_v55  ;;  %v5060_v59 = vrot.slane %v5059_v42, 2 }
 0x53a   : > { %v4993_v54 = vrot.slane %v4992_v34, 1  ;;  %v5061_v21 = vadd.f32 %v5060_v59, %v5059_v42 }
 0x53c   : > { %v5062_v28 = vrot.slane %v5061_v21, 1  ;;  %v4994_v14 = vadd.f32 %v4993_v54, %v4992_v34 }
 0x53e   : > { %v5063_v50 = vadd.f32 %v5062_v28, %v5061_v21 }
 0x540   : > { %v5065_v37 = vsel %vm5064_vm2, %v4994_v14, %v5063_v50 }
 0x541   : > { %5066 = vst [vmem:[%s265_s30] sm:$0x3] %v5065_v37 }
 0x542 PF: > { %s17_s21 = sadd.s32 1, %s6704_s21  }
 0x543   : > { %p14_p5 = scmp.ge.s32.totalorder %s17_s21, 4  }
 0x545   :  { %16 = sbr.rel (!%p14_p5) target bundleno = 1 (0x1), region = 90 }

</bundles_post_ra>
